<compile_context>
chip_gen: v7x
topology: tpu7x:2x2x1
jax: 0.10.0
libtpu: 0.0.40
codegen_flags: <defaults>
</compile_context>

<pallas_src>
import math

import jax
import jax.numpy as jnp
from jax import lax
from jax.experimental import pallas as pl
from jax.experimental.pallas import tpu as pltpu

# ----------------------------- model hyper-params -----------------------------
D_MODEL = 32
N_HEADS = 4
D_K = D_MODEL // N_HEADS
D_FF = 64
N_LAYERS = 2
VOCAB = 16
EPS = 1e-6
NEG_INF = -1e9


# ----------------------------- fused forward kernel ---------------------------
def _fused_kernel(
    # activations (per-batch blocks)
    xs_ref, xt_ref, sm_ref, tm_ref,
    # encoder weights (stacked over layers, full-array blocks)
    e_qkv_w, e_qkv_b, e_o_w, e_o_b,
    e_f1_w, e_f1_b, e_f2_w, e_f2_b,
    e_ln_g, e_ln_b, e_fn_g, e_fn_b,
    # decoder weights
    d_qkv_w, d_qkv_b, d_so_w, d_so_b,
    d_cq_w, d_cq_b, d_ckv_w, d_ckv_b, d_co_w, d_co_b,
    d_f1_w, d_f1_b, d_f2_w, d_f2_b,
    d_ln_g, d_ln_b, d_fn_g, d_fn_b,
    # output
    out_ref,
):
    inv_sqrt_dk = 1.0 / math.sqrt(D_K)

    def layernorm(v, g, b):
        # a_2 * (x - mean) / (std + eps) + b_2   with torch's unbiased std (ddof=1)
        mean = jnp.mean(v, axis=-1, keepdims=True)
        cen = v - mean
        var = jnp.sum(cen * cen, axis=-1, keepdims=True) * (1.0 / (D_MODEL - 1))
        std = jnp.sqrt(var)
        return g * (cen / (std + EPS)) + b

    def attn_core(q, k, v, masked, w_o, b_o):
        # q: (Tq, D) already scaled by 1/sqrt(d_k); k/v: (S, D)
        # masked: (Tq, S) boolean, True => position is masked out (hoisted broadcast)
        heads = []
        for h in range(N_HEADS):
            sl = slice(h * D_K, (h + 1) * D_K)
            s = lax.dot_general(q[:, sl], k[:, sl],
                                (((1,), (1,)), ((), ())),
                                preferred_element_type=jnp.float32)     # q @ k^T
            s = jnp.where(masked, NEG_INF, s)
            s = s - jnp.max(s, axis=-1, keepdims=True)
            e = jnp.exp(s)
            p = e / jnp.sum(e, axis=-1, keepdims=True)
            heads.append(jnp.dot(p, v[:, sl], preferred_element_type=jnp.float32))
        o = jnp.concatenate(heads, axis=-1)                             # (Tq, D)
        return jnp.dot(o, w_o, preferred_element_type=jnp.float32) + b_o

    def ffn(v, w1, b1, w2, b2):
        h = jnp.dot(v, w1, preferred_element_type=jnp.float32) + b1
        h = jnp.maximum(h, 0.0)
        return jnp.dot(h, w2, preferred_element_type=jnp.float32) + b2

    x = xs_ref[0]                    # (S, D)
    y = xt_ref[0]                    # (T, D)
    S = x.shape[0]
    T = y.shape[0]
    src_mask = sm_ref[0]             # (1, S)
    tgt_mask = tm_ref[0]             # (T, T)

    # Hoist mask broadcast + compare out of all layer/head loops (computed once).
    enc_masked = jnp.broadcast_to(src_mask, (S, S)) == 0.0
    self_masked = tgt_mask == 0.0
    cross_masked = jnp.broadcast_to(src_mask, (T, S)) == 0.0

    # -------------------------------- encoder --------------------------------
    for l in range(N_LAYERS):
        lng = e_ln_g[l]              # (2, D)
        lnb = e_ln_b[l]
        # self-attention sublayer (single LN reused for q/k/v, fused QKV matmul)
        n = layernorm(x, lng[0:1], lnb[0:1])
        qkv = jnp.dot(n, e_qkv_w[l], preferred_element_type=jnp.float32) + e_qkv_b[l]
        q = qkv[:, 0:D_MODEL] * inv_sqrt_dk
        k = qkv[:, D_MODEL:2 * D_MODEL]
        v = qkv[:, 2 * D_MODEL:3 * D_MODEL]
        x = x + attn_core(q, k, v, enc_masked, e_o_w[l], e_o_b[l])
        # feed-forward sublayer
        n2 = layernorm(x, lng[1:2], lnb[1:2])
        x = x + ffn(n2, e_f1_w[l], e_f1_b[l], e_f2_w[l], e_f2_b[l])
    memory = layernorm(x, e_fn_g[...], e_fn_b[...])                     # (S, D)

    # -------------------------------- decoder --------------------------------
    for l in range(N_LAYERS):
        lng = d_ln_g[l]              # (3, D)
        lnb = d_ln_b[l]
        # masked self-attention
        n1 = layernorm(y, lng[0:1], lnb[0:1])
        qkv = jnp.dot(n1, d_qkv_w[l], preferred_element_type=jnp.float32) + d_qkv_b[l]
        q = qkv[:, 0:D_MODEL] * inv_sqrt_dk
        k = qkv[:, D_MODEL:2 * D_MODEL]
        v = qkv[:, 2 * D_MODEL:3 * D_MODEL]
        y = y + attn_core(q, k, v, self_masked, d_so_w[l], d_so_b[l])
        # cross-attention over encoder memory (fused KV matmul)
        n2 = layernorm(y, lng[1:2], lnb[1:2])
        q2 = (jnp.dot(n2, d_cq_w[l], preferred_element_type=jnp.float32)
              + d_cq_b[l]) * inv_sqrt_dk
        kv = jnp.dot(memory, d_ckv_w[l], preferred_element_type=jnp.float32) + d_ckv_b[l]
        k2 = kv[:, 0:D_MODEL]
        v2 = kv[:, D_MODEL:2 * D_MODEL]
        y = y + attn_core(q2, k2, v2, cross_masked, d_co_w[l], d_co_b[l])
        # feed-forward
        n3 = layernorm(y, lng[2:3], lnb[2:3])
        y = y + ffn(n3, d_f1_w[l], d_f1_b[l], d_f2_w[l], d_f2_b[l])

    out_ref[0] = layernorm(y, d_fn_g[...], d_fn_b[...])


# ----------------------------- host-side glue ----------------------------------
_ENC_W_NAMES = ["qkv_w", "qkv_b", "o_w", "o_b", "f1_w", "f1_b", "f2_w", "f2_b",
                "ln_g", "ln_b", "fn_g", "fn_b"]
_DEC_W_NAMES = ["qkv_w", "qkv_b", "so_w", "so_b", "cq_w", "cq_b", "ckv_w", "ckv_b",
                "co_w", "co_b", "f1_w", "f1_b", "f2_w", "f2_b",
                "ln_g", "ln_b", "fn_g", "fn_b"]


def _const_index_map(ndim):
    if ndim == 2:
        return lambda b: (0, 0)
    return lambda b: (0, 0, 0)


def positional_encoding(T, d_model):
    pos = jnp.arange(T, dtype=jnp.float32)[:, None]
    div = jnp.exp(jnp.arange(0, d_model, 2, dtype=jnp.float32) *
                  (-math.log(10000.0) / d_model))
    pe = jnp.zeros((T, d_model), jnp.float32)
    pe = pe.at[:, 0::2].set(jnp.sin(pos * div))
    pe = pe.at[:, 1::2].set(jnp.cos(pos * div))
    return pe


def embed(table, tokens):
    # TODO(synk): embedding lookup + positional encoding stay as plain XLA ops
    # (a single tiny gather + add); everything downstream is one fused Pallas call.
    x = jnp.take(table, tokens, axis=0) * math.sqrt(D_MODEL)
    return x + positional_encoding(tokens.shape[1], D_MODEL)[None, :, :]


def encoder_decoder_forward(params, source, target, source_mask, target_mask):
    B, S = source.shape
    T = target.shape[1]

    x_src = embed(params["src_emb"], source)                    # (B, S, D)
    x_tgt = embed(params["tgt_emb"], target)                    # (B, T, D)
    sm = source_mask.astype(jnp.float32)                        # (B, 1, S)
    tm = target_mask.astype(jnp.float32)                        # (B, T, T)

    enc, dec = params["enc"], params["dec"]
    weights = [enc[n] for n in _ENC_W_NAMES] + [dec[n] for n in _DEC_W_NAMES]

    act_inputs = [x_src, x_tgt, sm, tm]
    act_specs = [
        pl.BlockSpec((1, S, D_MODEL), lambda b: (b, 0, 0)),
        pl.BlockSpec((1, T, D_MODEL), lambda b: (b, 0, 0)),
        pl.BlockSpec((1, 1, S), lambda b: (b, 0, 0)),
        pl.BlockSpec((1, T, T), lambda b: (b, 0, 0)),
    ]
    # Weights: full-array VMEM blocks, same block for every grid step
    # (constant index_map => no re-DMA across grid steps).
    w_specs = [pl.BlockSpec(w.shape, _const_index_map(w.ndim)) for w in weights]

    return pl.pallas_call(
        _fused_kernel,
        out_shape=jax.ShapeDtypeStruct((B, T, D_MODEL), jnp.float32),
        grid=(B,),
        in_specs=act_specs + w_specs,
        out_specs=pl.BlockSpec((1, T, D_MODEL), lambda b: (b, 0, 0)),
        compiler_params=pltpu.CompilerParams(
            dimension_semantics=("parallel",)),   # batch elements across TCs on v7x
    )(*act_inputs, *weights)


# ----------------------------- deterministic init ------------------------------
def init_params(key):
    keys = iter(jax.random.split(key, 64))

    def w(shape):
        return jax.random.normal(next(keys), shape, jnp.float32) * 0.02

    def zeros(shape):
        return jnp.zeros(shape, jnp.float32)

    def ones(shape):
        return jnp.ones(shape, jnp.float32)

    L = N_LAYERS
    enc = {
        "qkv_w": w((L, D_MODEL, 3 * D_MODEL)), "qkv_b": zeros((L, 1, 3 * D_MODEL)),
        "o_w": w((L, D_MODEL, D_MODEL)),       "o_b": zeros((L, 1, D_MODEL)),
        "f1_w": w((L, D_MODEL, D_FF)),         "f1_b": zeros((L, 1, D_FF)),
        "f2_w": w((L, D_FF, D_MODEL)),         "f2_b": zeros((L, 1, D_MODEL)),
        "ln_g": ones((L, 2, D_MODEL)),         "ln_b": zeros((L, 2, D_MODEL)),
        "fn_g": ones((1, D_MODEL)),            "fn_b": zeros((1, D_MODEL)),
    }
    dec = {
        "qkv_w": w((L, D_MODEL, 3 * D_MODEL)), "qkv_b": zeros((L, 1, 3 * D_MODEL)),
        "so_w": w((L, D_MODEL, D_MODEL)),      "so_b": zeros((L, 1, D_MODEL)),
        "cq_w": w((L, D_MODEL, D_MODEL)),      "cq_b": zeros((L, 1, D_MODEL)),
        "ckv_w": w((L, D_MODEL, 2 * D_MODEL)), "ckv_b": zeros((L, 1, 2 * D_MODEL)),
        "co_w": w((L, D_MODEL, D_MODEL)),      "co_b": zeros((L, 1, D_MODEL)),
        "f1_w": w((L, D_MODEL, D_FF)),         "f1_b": zeros((L, 1, D_FF)),
        "f2_w": w((L, D_FF, D_MODEL)),         "f2_b": zeros((L, 1, D_MODEL)),
        "ln_g": ones((L, 3, D_MODEL)),         "ln_b": zeros((L, 3, D_MODEL)),
        "fn_g": ones((1, D_MODEL)),            "fn_b": zeros((1, D_MODEL)),
    }
    return {
        "src_emb": w((VOCAB, D_MODEL)),
        "tgt_emb": w((VOCAB, D_MODEL)),
        "enc": enc,
        "dec": dec,
        # generator (Linear d_model->vocab + log_softmax) — unused by forward()
        "generator": {"w": w((D_MODEL, VOCAB)), "b": zeros((VOCAB,))},
    }


# ----------------------------------- main ---------------------------------------
if __name__ == "__main__":
    params = init_params(jax.random.PRNGKey(0))

    B, S, T = 2, 8, 8
    k1, k2 = jax.random.split(jax.random.PRNGKey(0))
    source = jax.random.randint(k1, (B, S), 0, VOCAB, dtype=jnp.int32)
    target = jax.random.randint(k2, (B, T), 0, VOCAB, dtype=jnp.int32)

    # source_mask: (B, 1, S) all-ones (no padding); target_mask: (B, T, T) causal
    source_mask = jnp.ones((B, 1, S), jnp.int32)
    target_mask = jnp.broadcast_to(
        jnp.tril(jnp.ones((T, T), jnp.int32))[None, :, :], (B, T, T))

    fwd = jax.jit(encoder_decoder_forward)
    out = jax.block_until_ready(fwd(params, source, target, source_mask, target_mask))

    assert out.shape == (B, T, D_MODEL) and out.dtype == jnp.float32
    assert bool(jnp.all(jnp.isfinite(out)))
    print("KERNEL_OK")
</pallas_src>

<mosaic_0001>
module attributes {stable_mosaic.version = 11 : i64} {
  func.func @_fused_kernel(%arg0: i32, %arg1: memref<1x8x32xf32, #tpu.memory_space<vmem>>, %arg2: memref<1x8x32xf32, #tpu.memory_space<vmem>>, %arg3: memref<1x1x8xf32, #tpu.memory_space<vmem>>, %arg4: memref<1x8x8xf32, #tpu.memory_space<vmem>>, %arg5: memref<2x32x96xf32, #tpu.memory_space<vmem>>, %arg6: memref<2x1x96xf32, #tpu.memory_space<vmem>>, %arg7: memref<2x32x32xf32, #tpu.memory_space<vmem>>, %arg8: memref<2x1x32xf32, #tpu.memory_space<vmem>>, %arg9: memref<2x32x64xf32, #tpu.memory_space<vmem>>, %arg10: memref<2x1x64xf32, #tpu.memory_space<vmem>>, %arg11: memref<2x64x32xf32, #tpu.memory_space<vmem>>, %arg12: memref<2x1x32xf32, #tpu.memory_space<vmem>>, %arg13: memref<2x2x32xf32, #tpu.memory_space<vmem>>, %arg14: memref<2x2x32xf32, #tpu.memory_space<vmem>>, %arg15: memref<1x32xf32, #tpu.memory_space<vmem>>, %arg16: memref<1x32xf32, #tpu.memory_space<vmem>>, %arg17: memref<2x32x96xf32, #tpu.memory_space<vmem>>, %arg18: memref<2x1x96xf32, #tpu.memory_space<vmem>>, %arg19: memref<2x32x32xf32, #tpu.memory_space<vmem>>, %arg20: memref<2x1x32xf32, #tpu.memory_space<vmem>>, %arg21: memref<2x32x32xf32, #tpu.memory_space<vmem>>, %arg22: memref<2x1x32xf32, #tpu.memory_space<vmem>>, %arg23: memref<2x32x64xf32, #tpu.memory_space<vmem>>, %arg24: memref<2x1x64xf32, #tpu.memory_space<vmem>>, %arg25: memref<2x32x32xf32, #tpu.memory_space<vmem>>, %arg26: memref<2x1x32xf32, #tpu.memory_space<vmem>>, %arg27: memref<2x32x64xf32, #tpu.memory_space<vmem>>, %arg28: memref<2x1x64xf32, #tpu.memory_space<vmem>>, %arg29: memref<2x64x32xf32, #tpu.memory_space<vmem>>, %arg30: memref<2x1x32xf32, #tpu.memory_space<vmem>>, %arg31: memref<2x3x32xf32, #tpu.memory_space<vmem>>, %arg32: memref<2x3x32xf32, #tpu.memory_space<vmem>>, %arg33: memref<1x32xf32, #tpu.memory_space<vmem>>, %arg34: memref<1x32xf32, #tpu.memory_space<vmem>>, %arg35: memref<1x8x32xf32, #tpu.memory_space<vmem>>) attributes {dimension_semantics = [#tpu.dimension_semantics<parallel>], iteration_bounds = array<i64: 2>, scalar_prefetch = 0 : i64, scratch_operands = 0 : i64, tpu.core_type = #tpu.core_type<tc>, window_params = [{transform_indices = @transform_0, window_bounds = array<i64: 1, 8, 32>}, {transform_indices = @transform_1, window_bounds = array<i64: 1, 8, 32>}, {transform_indices = @transform_2, window_bounds = array<i64: 1, 1, 8>}, {transform_indices = @transform_3, window_bounds = array<i64: 1, 8, 8>}, {pipeline_mode = #tpu.pipeline_mode<synchronous>, transform_indices = @transform_4, window_bounds = array<i64: 2, 32, 96>}, {pipeline_mode = #tpu.pipeline_mode<synchronous>, transform_indices = @transform_5, window_bounds = array<i64: 2, 1, 96>}, {pipeline_mode = #tpu.pipeline_mode<synchronous>, transform_indices = @transform_6, window_bounds = array<i64: 2, 32, 32>}, {pipeline_mode = #tpu.pipeline_mode<synchronous>, transform_indices = @transform_7, window_bounds = array<i64: 2, 1, 32>}, {pipeline_mode = #tpu.pipeline_mode<synchronous>, transform_indices = @transform_8, window_bounds = array<i64: 2, 32, 64>}, {pipeline_mode = #tpu.pipeline_mode<synchronous>, transform_indices = @transform_9, window_bounds = array<i64: 2, 1, 64>}, {pipeline_mode = #tpu.pipeline_mode<synchronous>, transform_indices = @transform_10, window_bounds = array<i64: 2, 64, 32>}, {pipeline_mode = #tpu.pipeline_mode<synchronous>, transform_indices = @transform_11, window_bounds = array<i64: 2, 1, 32>}, {pipeline_mode = #tpu.pipeline_mode<synchronous>, transform_indices = @transform_12, window_bounds = array<i64: 2, 2, 32>}, {pipeline_mode = #tpu.pipeline_mode<synchronous>, transform_indices = @transform_13, window_bounds = array<i64: 2, 2, 32>}, {pipeline_mode = #tpu.pipeline_mode<synchronous>, transform_indices = @transform_14, window_bounds = array<i64: 1, 32>}, {pipeline_mode = #tpu.pipeline_mode<synchronous>, transform_indices = @transform_15, window_bounds = array<i64: 1, 32>}, {pipeline_mode = #tpu.pipeline_mode<synchronous>, transform_indices = @transform_16, window_bounds = array<i64: 2, 32, 96>}, {pipeline_mode = #tpu.pipeline_mode<synchronous>, transform_indices = @transform_17, window_bounds = array<i64: 2, 1, 96>}, {pipeline_mode = #tpu.pipeline_mode<synchronous>, transform_indices = @transform_18, window_bounds = array<i64: 2, 32, 32>}, {pipeline_mode = #tpu.pipeline_mode<synchronous>, transform_indices = @transform_19, window_bounds = array<i64: 2, 1, 32>}, {pipeline_mode = #tpu.pipeline_mode<synchronous>, transform_indices = @transform_20, window_bounds = array<i64: 2, 32, 32>}, {pipeline_mode = #tpu.pipeline_mode<synchronous>, transform_indices = @transform_21, window_bounds = array<i64: 2, 1, 32>}, {pipeline_mode = #tpu.pipeline_mode<synchronous>, transform_indices = @transform_22, window_bounds = array<i64: 2, 32, 64>}, {pipeline_mode = #tpu.pipeline_mode<synchronous>, transform_indices = @transform_23, window_bounds = array<i64: 2, 1, 64>}, {pipeline_mode = #tpu.pipeline_mode<synchronous>, transform_indices = @transform_24, window_bounds = array<i64: 2, 32, 32>}, {pipeline_mode = #tpu.pipeline_mode<synchronous>, transform_indices = @transform_25, window_bounds = array<i64: 2, 1, 32>}, {pipeline_mode = #tpu.pipeline_mode<synchronous>, transform_indices = @transform_26, window_bounds = array<i64: 2, 32, 64>}, {pipeline_mode = #tpu.pipeline_mode<synchronous>, transform_indices = @transform_27, window_bounds = array<i64: 2, 1, 64>}, {pipeline_mode = #tpu.pipeline_mode<synchronous>, transform_indices = @transform_28, window_bounds = array<i64: 2, 64, 32>}, {pipeline_mode = #tpu.pipeline_mode<synchronous>, transform_indices = @transform_29, window_bounds = array<i64: 2, 1, 32>}, {pipeline_mode = #tpu.pipeline_mode<synchronous>, transform_indices = @transform_30, window_bounds = array<i64: 2, 3, 32>}, {pipeline_mode = #tpu.pipeline_mode<synchronous>, transform_indices = @transform_31, window_bounds = array<i64: 2, 3, 32>}, {pipeline_mode = #tpu.pipeline_mode<synchronous>, transform_indices = @transform_32, window_bounds = array<i64: 1, 32>}, {pipeline_mode = #tpu.pipeline_mode<synchronous>, transform_indices = @transform_33, window_bounds = array<i64: 1, 32>}, {transform_indices = @transform_34, window_bounds = array<i64: 1, 8, 32>}]} {
    %c0 = arith.constant 0 : index
    %c0_0 = arith.constant 0 : index
    %c0_1 = arith.constant 0 : index
    %0 = vector.load %arg1[%c0, %c0_0, %c0_1] : memref<1x8x32xf32, #tpu.memory_space<vmem>>, vector<1x8x32xf32>
    %1 = vector.shape_cast %0 : vector<1x8x32xf32> to vector<8x32xf32>
    %c0_2 = arith.constant 0 : index
    %c0_3 = arith.constant 0 : index
    %c0_4 = arith.constant 0 : index
    %2 = vector.load %arg2[%c0_2, %c0_3, %c0_4] : memref<1x8x32xf32, #tpu.memory_space<vmem>>, vector<1x8x32xf32>
    %3 = vector.shape_cast %2 : vector<1x8x32xf32> to vector<8x32xf32>
    %c0_5 = arith.constant 0 : index
    %c0_6 = arith.constant 0 : index
    %c0_7 = arith.constant 0 : index
    %4 = vector.load %arg3[%c0_5, %c0_6, %c0_7] : memref<1x1x8xf32, #tpu.memory_space<vmem>>, vector<1x1x8xf32>
    %5 = vector.shape_cast %4 : vector<1x1x8xf32> to vector<1x8xf32>
    %c0_8 = arith.constant 0 : index
    %c0_9 = arith.constant 0 : index
    %c0_10 = arith.constant 0 : index
    %6 = vector.load %arg4[%c0_8, %c0_9, %c0_10] : memref<1x8x8xf32, #tpu.memory_space<vmem>>, vector<1x8x8xf32>
    %7 = vector.shape_cast %6 : vector<1x8x8xf32> to vector<8x8xf32>
    %8 = vector.shape_cast %5 : vector<1x8xf32> to vector<1x8xf32>
    %9 = vector.broadcast %8 : vector<1x8xf32> to vector<8x8xf32>
    %cst = arith.constant 0.000000e+00 : f32
    %10 = vector.broadcast %cst : f32 to vector<8x8xf32>
    %11 = arith.cmpf oeq, %9, %10 : vector<8x8xf32>
    %cst_11 = arith.constant 0.000000e+00 : f32
    %12 = vector.broadcast %cst_11 : f32 to vector<8x8xf32>
    %13 = arith.cmpf oeq, %7, %12 : vector<8x8xf32>
    %14 = vector.shape_cast %5 : vector<1x8xf32> to vector<1x8xf32>
    %15 = vector.broadcast %14 : vector<1x8xf32> to vector<8x8xf32>
    %cst_12 = arith.constant 0.000000e+00 : f32
    %16 = vector.broadcast %cst_12 : f32 to vector<8x8xf32>
    %17 = arith.cmpf oeq, %15, %16 : vector<8x8xf32>
    %c0_13 = arith.constant 0 : index
    %c0_14 = arith.constant 0 : index
    %c0_15 = arith.constant 0 : index
    %18 = vector.load %arg13[%c0_13, %c0_14, %c0_15] : memref<2x2x32xf32, #tpu.memory_space<vmem>>, vector<1x2x32xf32>
    %19 = vector.shape_cast %18 : vector<1x2x32xf32> to vector<2x32xf32>
    %c0_16 = arith.constant 0 : index
    %c0_17 = arith.constant 0 : index
    %c0_18 = arith.constant 0 : index
    %20 = vector.load %arg14[%c0_16, %c0_17, %c0_18] : memref<2x2x32xf32, #tpu.memory_space<vmem>>, vector<1x2x32xf32>
    %21 = vector.shape_cast %20 : vector<1x2x32xf32> to vector<2x32xf32>
    %22 = vector.extract_strided_slice %19 {offsets = [0, 0], sizes = [1, 32], strides = [1, 1]} : vector<2x32xf32> to vector<1x32xf32>
    %23 = vector.extract_strided_slice %21 {offsets = [0, 0], sizes = [1, 32], strides = [1, 1]} : vector<2x32xf32> to vector<1x32xf32>
    %cst_19 = arith.constant dense<0.000000e+00> : vector<8xf32>
    %24 = vector.multi_reduction <add>, %1, %cst_19 [1] : vector<8x32xf32> to vector<8xf32>
    %25 = vector.shape_cast %24 : vector<8xf32> to vector<8x1xf32>
    %cst_20 = arith.constant 3.200000e+01 : f32
    %26 = vector.broadcast %cst_20 : f32 to vector<8x1xf32>
    %27 = arith.divf %25, %26 : vector<8x1xf32>
    %28 = vector.broadcast %27 : vector<8x1xf32> to vector<8x32xf32>
    %29 = arith.subf %1, %28 : vector<8x32xf32>
    %30 = arith.mulf %29, %29 : vector<8x32xf32>
    %cst_21 = arith.constant dense<0.000000e+00> : vector<8xf32>
    %31 = vector.multi_reduction <add>, %30, %cst_21 [1] : vector<8x32xf32> to vector<8xf32>
    %32 = vector.shape_cast %31 : vector<8xf32> to vector<8x1xf32>
    %cst_22 = arith.constant 0.0322580636 : f32
    %33 = vector.broadcast %cst_22 : f32 to vector<8x1xf32>
    %34 = arith.mulf %32, %33 : vector<8x1xf32>
    %35 = math.sqrt %34 : vector<8x1xf32>
    %cst_23 = arith.constant 9.99999997E-7 : f32
    %36 = vector.broadcast %cst_23 : f32 to vector<8x1xf32>
    %37 = arith.addf %35, %36 : vector<8x1xf32>
    %38 = vector.broadcast %37 : vector<8x1xf32> to vector<8x32xf32>
    %39 = arith.divf %29, %38 : vector<8x32xf32>
    %40 = vector.broadcast %22 : vector<1x32xf32> to vector<8x32xf32>
    %41 = arith.mulf %40, %39 : vector<8x32xf32>
    %42 = vector.broadcast %23 : vector<1x32xf32> to vector<8x32xf32>
    %43 = arith.addf %41, %42 : vector<8x32xf32>
    %c0_24 = arith.constant 0 : index
    %c0_25 = arith.constant 0 : index
    %c0_26 = arith.constant 0 : index
    %44 = vector.load %arg5[%c0_24, %c0_25, %c0_26] : memref<2x32x96xf32, #tpu.memory_space<vmem>>, vector<1x32x96xf32>
    %45 = vector.shape_cast %44 : vector<1x32x96xf32> to vector<32x96xf32>
    %cst_27 = arith.constant dense<0.000000e+00> : vector<8x96xf32>
    %46 = tpu.matmul %43, %45, %cst_27 {dimension_numbers = #tpu.dot_dimension_numbers<[1], [0], [0], [1], [0, 0, 1, 1], [], []>} : vector<8x32xf32>, vector<32x96xf32>, vector<8x96xf32> -> vector<8x96xf32>
    %c0_28 = arith.constant 0 : index
    %c0_29 = arith.constant 0 : index
    %c0_30 = arith.constant 0 : index
    %47 = vector.load %arg6[%c0_28, %c0_29, %c0_30] : memref<2x1x96xf32, #tpu.memory_space<vmem>>, vector<1x1x96xf32>
    %48 = vector.shape_cast %47 : vector<1x1x96xf32> to vector<1x96xf32>
    %49 = vector.broadcast %48 : vector<1x96xf32> to vector<8x96xf32>
    %50 = arith.addf %46, %49 : vector<8x96xf32>
    %51 = vector.extract_strided_slice %50 {offsets = [0, 0], sizes = [8, 32], strides = [1, 1]} : vector<8x96xf32> to vector<8x32xf32>
    %cst_31 = arith.constant 0.353553385 : f32
    %52 = vector.broadcast %cst_31 : f32 to vector<8x32xf32>
    %53 = arith.mulf %51, %52 : vector<8x32xf32>
    %54 = vector.extract_strided_slice %50 {offsets = [0, 32], sizes = [8, 32], strides = [1, 1]} : vector<8x96xf32> to vector<8x32xf32>
    %55 = vector.extract_strided_slice %50 {offsets = [0, 64], sizes = [8, 32], strides = [1, 1]} : vector<8x96xf32> to vector<8x32xf32>
    %c0_32 = arith.constant 0 : index
    %c0_33 = arith.constant 0 : index
    %c0_34 = arith.constant 0 : index
    %56 = vector.load %arg7[%c0_32, %c0_33, %c0_34] : memref<2x32x32xf32, #tpu.memory_space<vmem>>, vector<1x32x32xf32>
    %57 = vector.shape_cast %56 : vector<1x32x32xf32> to vector<32x32xf32>
    %c0_35 = arith.constant 0 : index
    %c0_36 = arith.constant 0 : index
    %c0_37 = arith.constant 0 : index
    %58 = vector.load %arg8[%c0_35, %c0_36, %c0_37] : memref<2x1x32xf32, #tpu.memory_space<vmem>>, vector<1x1x32xf32>
    %59 = vector.shape_cast %58 : vector<1x1x32xf32> to vector<1x32xf32>
    %60 = vector.extract_strided_slice %53 {offsets = [0, 0], sizes = [8, 8], strides = [1, 1]} : vector<8x32xf32> to vector<8x8xf32>
    %61 = vector.extract_strided_slice %54 {offsets = [0, 0], sizes = [8, 8], strides = [1, 1]} : vector<8x32xf32> to vector<8x8xf32>
    %cst_38 = arith.constant dense<0.000000e+00> : vector<8x8xf32>
    %62 = tpu.matmul %60, %61, %cst_38 {dimension_numbers = #tpu.dot_dimension_numbers<[1], [1], [0], [0], [0, 0, 1, 0], [], []>} : vector<8x8xf32>, vector<8x8xf32>, vector<8x8xf32> -> vector<8x8xf32>
    %cst_39 = arith.constant -1.000000e+09 : f32
    %63 = vector.broadcast %cst_39 : f32 to vector<8x8xf32>
    %64 = arith.select %11, %63, %62 : vector<8x8xi1>, vector<8x8xf32>
    %cst_40 = arith.constant dense<0xFF800000> : vector<8xf32>
    %65 = vector.multi_reduction <maximumf>, %64, %cst_40 [1] : vector<8x8xf32> to vector<8xf32>
    %66 = vector.shape_cast %65 : vector<8xf32> to vector<8x1xf32>
    %67 = vector.broadcast %66 : vector<8x1xf32> to vector<8x8xf32>
    %68 = arith.subf %64, %67 : vector<8x8xf32>
    %69 = math.exp %68 : vector<8x8xf32>
    %cst_41 = arith.constant dense<0.000000e+00> : vector<8xf32>
    %70 = vector.multi_reduction <add>, %69, %cst_41 [1] : vector<8x8xf32> to vector<8xf32>
    %71 = vector.shape_cast %70 : vector<8xf32> to vector<8x1xf32>
    %72 = vector.broadcast %71 : vector<8x1xf32> to vector<8x8xf32>
    %73 = arith.divf %69, %72 : vector<8x8xf32>
    %74 = vector.extract_strided_slice %55 {offsets = [0, 0], sizes = [8, 8], strides = [1, 1]} : vector<8x32xf32> to vector<8x8xf32>
    %cst_42 = arith.constant dense<0.000000e+00> : vector<8x8xf32>
    %75 = tpu.matmul %73, %74, %cst_42 {dimension_numbers = #tpu.dot_dimension_numbers<[1], [0], [0], [1], [0, 0, 1, 1], [], []>} : vector<8x8xf32>, vector<8x8xf32>, vector<8x8xf32> -> vector<8x8xf32>
    %76 = vector.extract_strided_slice %53 {offsets = [0, 8], sizes = [8, 8], strides = [1, 1]} : vector<8x32xf32> to vector<8x8xf32>
    %77 = vector.extract_strided_slice %54 {offsets = [0, 8], sizes = [8, 8], strides = [1, 1]} : vector<8x32xf32> to vector<8x8xf32>
    %cst_43 = arith.constant dense<0.000000e+00> : vector<8x8xf32>
    %78 = tpu.matmul %76, %77, %cst_43 {dimension_numbers = #tpu.dot_dimension_numbers<[1], [1], [0], [0], [0, 0, 1, 0], [], []>} : vector<8x8xf32>, vector<8x8xf32>, vector<8x8xf32> -> vector<8x8xf32>
    %cst_44 = arith.constant -1.000000e+09 : f32
    %79 = vector.broadcast %cst_44 : f32 to vector<8x8xf32>
    %80 = arith.select %11, %79, %78 : vector<8x8xi1>, vector<8x8xf32>
    %cst_45 = arith.constant dense<0xFF800000> : vector<8xf32>
    %81 = vector.multi_reduction <maximumf>, %80, %cst_45 [1] : vector<8x8xf32> to vector<8xf32>
    %82 = vector.shape_cast %81 : vector<8xf32> to vector<8x1xf32>
    %83 = vector.broadcast %82 : vector<8x1xf32> to vector<8x8xf32>
    %84 = arith.subf %80, %83 : vector<8x8xf32>
    %85 = math.exp %84 : vector<8x8xf32>
    %cst_46 = arith.constant dense<0.000000e+00> : vector<8xf32>
    %86 = vector.multi_reduction <add>, %85, %cst_46 [1] : vector<8x8xf32> to vector<8xf32>
    %87 = vector.shape_cast %86 : vector<8xf32> to vector<8x1xf32>
    %88 = vector.broadcast %87 : vector<8x1xf32> to vector<8x8xf32>
    %89 = arith.divf %85, %88 : vector<8x8xf32>
    %90 = vector.extract_strided_slice %55 {offsets = [0, 8], sizes = [8, 8], strides = [1, 1]} : vector<8x32xf32> to vector<8x8xf32>
    %cst_47 = arith.constant dense<0.000000e+00> : vector<8x8xf32>
    %91 = tpu.matmul %89, %90, %cst_47 {dimension_numbers = #tpu.dot_dimension_numbers<[1], [0], [0], [1], [0, 0, 1, 1], [], []>} : vector<8x8xf32>, vector<8x8xf32>, vector<8x8xf32> -> vector<8x8xf32>
    %92 = vector.extract_strided_slice %53 {offsets = [0, 16], sizes = [8, 8], strides = [1, 1]} : vector<8x32xf32> to vector<8x8xf32>
    %93 = vector.extract_strided_slice %54 {offsets = [0, 16], sizes = [8, 8], strides = [1, 1]} : vector<8x32xf32> to vector<8x8xf32>
    %cst_48 = arith.constant dense<0.000000e+00> : vector<8x8xf32>
    %94 = tpu.matmul %92, %93, %cst_48 {dimension_numbers = #tpu.dot_dimension_numbers<[1], [1], [0], [0], [0, 0, 1, 0], [], []>} : vector<8x8xf32>, vector<8x8xf32>, vector<8x8xf32> -> vector<8x8xf32>
    %cst_49 = arith.constant -1.000000e+09 : f32
    %95 = vector.broadcast %cst_49 : f32 to vector<8x8xf32>
    %96 = arith.select %11, %95, %94 : vector<8x8xi1>, vector<8x8xf32>
    %cst_50 = arith.constant dense<0xFF800000> : vector<8xf32>
    %97 = vector.multi_reduction <maximumf>, %96, %cst_50 [1] : vector<8x8xf32> to vector<8xf32>
    %98 = vector.shape_cast %97 : vector<8xf32> to vector<8x1xf32>
    %99 = vector.broadcast %98 : vector<8x1xf32> to vector<8x8xf32>
    %100 = arith.subf %96, %99 : vector<8x8xf32>
    %101 = math.exp %100 : vector<8x8xf32>
    %cst_51 = arith.constant dense<0.000000e+00> : vector<8xf32>
    %102 = vector.multi_reduction <add>, %101, %cst_51 [1] : vector<8x8xf32> to vector<8xf32>
    %103 = vector.shape_cast %102 : vector<8xf32> to vector<8x1xf32>
    %104 = vector.broadcast %103 : vector<8x1xf32> to vector<8x8xf32>
    %105 = arith.divf %101, %104 : vector<8x8xf32>
    %106 = vector.extract_strided_slice %55 {offsets = [0, 16], sizes = [8, 8], strides = [1, 1]} : vector<8x32xf32> to vector<8x8xf32>
    %cst_52 = arith.constant dense<0.000000e+00> : vector<8x8xf32>
    %107 = tpu.matmul %105, %106, %cst_52 {dimension_numbers = #tpu.dot_dimension_numbers<[1], [0], [0], [1], [0, 0, 1, 1], [], []>} : vector<8x8xf32>, vector<8x8xf32>, vector<8x8xf32> -> vector<8x8xf32>
    %108 = vector.extract_strided_slice %53 {offsets = [0, 24], sizes = [8, 8], strides = [1, 1]} : vector<8x32xf32> to vector<8x8xf32>
    %109 = vector.extract_strided_slice %54 {offsets = [0, 24], sizes = [8, 8], strides = [1, 1]} : vector<8x32xf32> to vector<8x8xf32>
    %cst_53 = arith.constant dense<0.000000e+00> : vector<8x8xf32>
    %110 = tpu.matmul %108, %109, %cst_53 {dimension_numbers = #tpu.dot_dimension_numbers<[1], [1], [0], [0], [0, 0, 1, 0], [], []>} : vector<8x8xf32>, vector<8x8xf32>, vector<8x8xf32> -> vector<8x8xf32>
    %cst_54 = arith.constant -1.000000e+09 : f32
    %111 = vector.broadcast %cst_54 : f32 to vector<8x8xf32>
    %112 = arith.select %11, %111, %110 : vector<8x8xi1>, vector<8x8xf32>
    %cst_55 = arith.constant dense<0xFF800000> : vector<8xf32>
    %113 = vector.multi_reduction <maximumf>, %112, %cst_55 [1] : vector<8x8xf32> to vector<8xf32>
    %114 = vector.shape_cast %113 : vector<8xf32> to vector<8x1xf32>
    %115 = vector.broadcast %114 : vector<8x1xf32> to vector<8x8xf32>
    %116 = arith.subf %112, %115 : vector<8x8xf32>
    %117 = math.exp %116 : vector<8x8xf32>
    %cst_56 = arith.constant dense<0.000000e+00> : vector<8xf32>
    %118 = vector.multi_reduction <add>, %117, %cst_56 [1] : vector<8x8xf32> to vector<8xf32>
    %119 = vector.shape_cast %118 : vector<8xf32> to vector<8x1xf32>
    %120 = vector.broadcast %119 : vector<8x1xf32> to vector<8x8xf32>
    %121 = arith.divf %117, %120 : vector<8x8xf32>
    %122 = vector.extract_strided_slice %55 {offsets = [0, 24], sizes = [8, 8], strides = [1, 1]} : vector<8x32xf32> to vector<8x8xf32>
    %cst_57 = arith.constant dense<0.000000e+00> : vector<8x8xf32>
    %123 = tpu.matmul %121, %122, %cst_57 {dimension_numbers = #tpu.dot_dimension_numbers<[1], [0], [0], [1], [0, 0, 1, 1], [], []>} : vector<8x8xf32>, vector<8x8xf32>, vector<8x8xf32> -> vector<8x8xf32>
    %124 = tpu.concatenate %75, %91, %107, %123 in 1 : vector<8x8xf32>, vector<8x8xf32>, vector<8x8xf32>, vector<8x8xf32> -> vector<8x32xf32>
    %cst_58 = arith.constant dense<0.000000e+00> : vector<8x32xf32>
    %125 = tpu.matmul %124, %57, %cst_58 {dimension_numbers = #tpu.dot_dimension_numbers<[1], [0], [0], [1], [0, 0, 1, 1], [], []>} : vector<8x32xf32>, vector<32x32xf32>, vector<8x32xf32> -> vector<8x32xf32>
    %126 = vector.broadcast %59 : vector<1x32xf32> to vector<8x32xf32>
    %127 = arith.addf %125, %126 : vector<8x32xf32>
    %128 = arith.addf %1, %127 : vector<8x32xf32>
    %129 = vector.extract_strided_slice %19 {offsets = [1, 0], sizes = [1, 32], strides = [1, 1]} : vector<2x32xf32> to vector<1x32xf32>
    %130 = vector.extract_strided_slice %21 {offsets = [1, 0], sizes = [1, 32], strides = [1, 1]} : vector<2x32xf32> to vector<1x32xf32>
    %cst_59 = arith.constant dense<0.000000e+00> : vector<8xf32>
    %131 = vector.multi_reduction <add>, %128, %cst_59 [1] : vector<8x32xf32> to vector<8xf32>
    %132 = vector.shape_cast %131 : vector<8xf32> to vector<8x1xf32>
    %cst_60 = arith.constant 3.200000e+01 : f32
    %133 = vector.broadcast %cst_60 : f32 to vector<8x1xf32>
    %134 = arith.divf %132, %133 : vector<8x1xf32>
    %135 = vector.broadcast %134 : vector<8x1xf32> to vector<8x32xf32>
    %136 = arith.subf %128, %135 : vector<8x32xf32>
    %137 = arith.mulf %136, %136 : vector<8x32xf32>
    %cst_61 = arith.constant dense<0.000000e+00> : vector<8xf32>
    %138 = vector.multi_reduction <add>, %137, %cst_61 [1] : vector<8x32xf32> to vector<8xf32>
    %139 = vector.shape_cast %138 : vector<8xf32> to vector<8x1xf32>
    %cst_62 = arith.constant 0.0322580636 : f32
    %140 = vector.broadcast %cst_62 : f32 to vector<8x1xf32>
    %141 = arith.mulf %139, %140 : vector<8x1xf32>
    %142 = math.sqrt %141 : vector<8x1xf32>
    %cst_63 = arith.constant 9.99999997E-7 : f32
    %143 = vector.broadcast %cst_63 : f32 to vector<8x1xf32>
    %144 = arith.addf %142, %143 : vector<8x1xf32>
    %145 = vector.broadcast %144 : vector<8x1xf32> to vector<8x32xf32>
    %146 = arith.divf %136, %145 : vector<8x32xf32>
    %147 = vector.broadcast %129 : vector<1x32xf32> to vector<8x32xf32>
    %148 = arith.mulf %147, %146 : vector<8x32xf32>
    %149 = vector.broadcast %130 : vector<1x32xf32> to vector<8x32xf32>
    %150 = arith.addf %148, %149 : vector<8x32xf32>
    %c0_64 = arith.constant 0 : index
    %c0_65 = arith.constant 0 : index
    %c0_66 = arith.constant 0 : index
    %151 = vector.load %arg9[%c0_64, %c0_65, %c0_66] : memref<2x32x64xf32, #tpu.memory_space<vmem>>, vector<1x32x64xf32>
    %152 = vector.shape_cast %151 : vector<1x32x64xf32> to vector<32x64xf32>
    %c0_67 = arith.constant 0 : index
    %c0_68 = arith.constant 0 : index
    %c0_69 = arith.constant 0 : index
    %153 = vector.load %arg10[%c0_67, %c0_68, %c0_69] : memref<2x1x64xf32, #tpu.memory_space<vmem>>, vector<1x1x64xf32>
    %154 = vector.shape_cast %153 : vector<1x1x64xf32> to vector<1x64xf32>
    %c0_70 = arith.constant 0 : index
    %c0_71 = arith.constant 0 : index
    %c0_72 = arith.constant 0 : index
    %155 = vector.load %arg11[%c0_70, %c0_71, %c0_72] : memref<2x64x32xf32, #tpu.memory_space<vmem>>, vector<1x64x32xf32>
    %156 = vector.shape_cast %155 : vector<1x64x32xf32> to vector<64x32xf32>
    %c0_73 = arith.constant 0 : index
    %c0_74 = arith.constant 0 : index
    %c0_75 = arith.constant 0 : index
    %157 = vector.load %arg12[%c0_73, %c0_74, %c0_75] : memref<2x1x32xf32, #tpu.memory_space<vmem>>, vector<1x1x32xf32>
    %158 = vector.shape_cast %157 : vector<1x1x32xf32> to vector<1x32xf32>
    %cst_76 = arith.constant dense<0.000000e+00> : vector<8x64xf32>
    %159 = tpu.matmul %150, %152, %cst_76 {dimension_numbers = #tpu.dot_dimension_numbers<[1], [0], [0], [1], [0, 0, 1, 1], [], []>} : vector<8x32xf32>, vector<32x64xf32>, vector<8x64xf32> -> vector<8x64xf32>
    %160 = vector.broadcast %154 : vector<1x64xf32> to vector<8x64xf32>
    %161 = arith.addf %159, %160 : vector<8x64xf32>
    %cst_77 = arith.constant 0.000000e+00 : f32
    %162 = vector.broadcast %cst_77 : f32 to vector<8x64xf32>
    %163 = arith.maximumf %161, %162 : vector<8x64xf32>
    %cst_78 = arith.constant dense<0.000000e+00> : vector<8x32xf32>
    %164 = tpu.matmul %163, %156, %cst_78 {dimension_numbers = #tpu.dot_dimension_numbers<[1], [0], [0], [1], [0, 0, 1, 1], [], []>} : vector<8x64xf32>, vector<64x32xf32>, vector<8x32xf32> -> vector<8x32xf32>
    %165 = vector.broadcast %158 : vector<1x32xf32> to vector<8x32xf32>
    %166 = arith.addf %164, %165 : vector<8x32xf32>
    %167 = arith.addf %128, %166 : vector<8x32xf32>
    %c1 = arith.constant 1 : index
    %c0_79 = arith.constant 0 : index
    %c0_80 = arith.constant 0 : index
    %168 = vector.load %arg13[%c1, %c0_79, %c0_80] : memref<2x2x32xf32, #tpu.memory_space<vmem>>, vector<1x2x32xf32>
    %169 = vector.shape_cast %168 : vector<1x2x32xf32> to vector<2x32xf32>
    %c1_81 = arith.constant 1 : index
    %c0_82 = arith.constant 0 : index
    %c0_83 = arith.constant 0 : index
    %170 = vector.load %arg14[%c1_81, %c0_82, %c0_83] : memref<2x2x32xf32, #tpu.memory_space<vmem>>, vector<1x2x32xf32>
    %171 = vector.shape_cast %170 : vector<1x2x32xf32> to vector<2x32xf32>
    %172 = vector.extract_strided_slice %169 {offsets = [0, 0], sizes = [1, 32], strides = [1, 1]} : vector<2x32xf32> to vector<1x32xf32>
    %173 = vector.extract_strided_slice %171 {offsets = [0, 0], sizes = [1, 32], strides = [1, 1]} : vector<2x32xf32> to vector<1x32xf32>
    %cst_84 = arith.constant dense<0.000000e+00> : vector<8xf32>
    %174 = vector.multi_reduction <add>, %167, %cst_84 [1] : vector<8x32xf32> to vector<8xf32>
    %175 = vector.shape_cast %174 : vector<8xf32> to vector<8x1xf32>
    %cst_85 = arith.constant 3.200000e+01 : f32
    %176 = vector.broadcast %cst_85 : f32 to vector<8x1xf32>
    %177 = arith.divf %175, %176 : vector<8x1xf32>
    %178 = vector.broadcast %177 : vector<8x1xf32> to vector<8x32xf32>
    %179 = arith.subf %167, %178 : vector<8x32xf32>
    %180 = arith.mulf %179, %179 : vector<8x32xf32>
    %cst_86 = arith.constant dense<0.000000e+00> : vector<8xf32>
    %181 = vector.multi_reduction <add>, %180, %cst_86 [1] : vector<8x32xf32> to vector<8xf32>
    %182 = vector.shape_cast %181 : vector<8xf32> to vector<8x1xf32>
    %cst_87 = arith.constant 0.0322580636 : f32
    %183 = vector.broadcast %cst_87 : f32 to vector<8x1xf32>
    %184 = arith.mulf %182, %183 : vector<8x1xf32>
    %185 = math.sqrt %184 : vector<8x1xf32>
    %cst_88 = arith.constant 9.99999997E-7 : f32
    %186 = vector.broadcast %cst_88 : f32 to vector<8x1xf32>
    %187 = arith.addf %185, %186 : vector<8x1xf32>
    %188 = vector.broadcast %187 : vector<8x1xf32> to vector<8x32xf32>
    %189 = arith.divf %179, %188 : vector<8x32xf32>
    %190 = vector.broadcast %172 : vector<1x32xf32> to vector<8x32xf32>
    %191 = arith.mulf %190, %189 : vector<8x32xf32>
    %192 = vector.broadcast %173 : vector<1x32xf32> to vector<8x32xf32>
    %193 = arith.addf %191, %192 : vector<8x32xf32>
    %c1_89 = arith.constant 1 : index
    %c0_90 = arith.constant 0 : index
    %c0_91 = arith.constant 0 : index
    %194 = vector.load %arg5[%c1_89, %c0_90, %c0_91] : memref<2x32x96xf32, #tpu.memory_space<vmem>>, vector<1x32x96xf32>
    %195 = vector.shape_cast %194 : vector<1x32x96xf32> to vector<32x96xf32>
    %cst_92 = arith.constant dense<0.000000e+00> : vector<8x96xf32>
    %196 = tpu.matmul %193, %195, %cst_92 {dimension_numbers = #tpu.dot_dimension_numbers<[1], [0], [0], [1], [0, 0, 1, 1], [], []>} : vector<8x32xf32>, vector<32x96xf32>, vector<8x96xf32> -> vector<8x96xf32>
    %c1_93 = arith.constant 1 : index
    %c0_94 = arith.constant 0 : index
    %c0_95 = arith.constant 0 : index
    %197 = vector.load %arg6[%c1_93, %c0_94, %c0_95] : memref<2x1x96xf32, #tpu.memory_space<vmem>>, vector<1x1x96xf32>
    %198 = vector.shape_cast %197 : vector<1x1x96xf32> to vector<1x96xf32>
    %199 = vector.broadcast %198 : vector<1x96xf32> to vector<8x96xf32>
    %200 = arith.addf %196, %199 : vector<8x96xf32>
    %201 = vector.extract_strided_slice %200 {offsets = [0, 0], sizes = [8, 32], strides = [1, 1]} : vector<8x96xf32> to vector<8x32xf32>
    %cst_96 = arith.constant 0.353553385 : f32
    %202 = vector.broadcast %cst_96 : f32 to vector<8x32xf32>
    %203 = arith.mulf %201, %202 : vector<8x32xf32>
    %204 = vector.extract_strided_slice %200 {offsets = [0, 32], sizes = [8, 32], strides = [1, 1]} : vector<8x96xf32> to vector<8x32xf32>
    %205 = vector.extract_strided_slice %200 {offsets = [0, 64], sizes = [8, 32], strides = [1, 1]} : vector<8x96xf32> to vector<8x32xf32>
    %c1_97 = arith.constant 1 : index
    %c0_98 = arith.constant 0 : index
    %c0_99 = arith.constant 0 : index
    %206 = vector.load %arg7[%c1_97, %c0_98, %c0_99] : memref<2x32x32xf32, #tpu.memory_space<vmem>>, vector<1x32x32xf32>
    %207 = vector.shape_cast %206 : vector<1x32x32xf32> to vector<32x32xf32>
    %c1_100 = arith.constant 1 : index
    %c0_101 = arith.constant 0 : index
    %c0_102 = arith.constant 0 : index
    %208 = vector.load %arg8[%c1_100, %c0_101, %c0_102] : memref<2x1x32xf32, #tpu.memory_space<vmem>>, vector<1x1x32xf32>
    %209 = vector.shape_cast %208 : vector<1x1x32xf32> to vector<1x32xf32>
    %210 = vector.extract_strided_slice %203 {offsets = [0, 0], sizes = [8, 8], strides = [1, 1]} : vector<8x32xf32> to vector<8x8xf32>
    %211 = vector.extract_strided_slice %204 {offsets = [0, 0], sizes = [8, 8], strides = [1, 1]} : vector<8x32xf32> to vector<8x8xf32>
    %cst_103 = arith.constant dense<0.000000e+00> : vector<8x8xf32>
    %212 = tpu.matmul %210, %211, %cst_103 {dimension_numbers = #tpu.dot_dimension_numbers<[1], [1], [0], [0], [0, 0, 1, 0], [], []>} : vector<8x8xf32>, vector<8x8xf32>, vector<8x8xf32> -> vector<8x8xf32>
    %cst_104 = arith.constant -1.000000e+09 : f32
    %213 = vector.broadcast %cst_104 : f32 to vector<8x8xf32>
    %214 = arith.select %11, %213, %212 : vector<8x8xi1>, vector<8x8xf32>
    %cst_105 = arith.constant dense<0xFF800000> : vector<8xf32>
    %215 = vector.multi_reduction <maximumf>, %214, %cst_105 [1] : vector<8x8xf32> to vector<8xf32>
    %216 = vector.shape_cast %215 : vector<8xf32> to vector<8x1xf32>
    %217 = vector.broadcast %216 : vector<8x1xf32> to vector<8x8xf32>
    %218 = arith.subf %214, %217 : vector<8x8xf32>
    %219 = math.exp %218 : vector<8x8xf32>
    %cst_106 = arith.constant dense<0.000000e+00> : vector<8xf32>
    %220 = vector.multi_reduction <add>, %219, %cst_106 [1] : vector<8x8xf32> to vector<8xf32>
    %221 = vector.shape_cast %220 : vector<8xf32> to vector<8x1xf32>
    %222 = vector.broadcast %221 : vector<8x1xf32> to vector<8x8xf32>
    %223 = arith.divf %219, %222 : vector<8x8xf32>
    %224 = vector.extract_strided_slice %205 {offsets = [0, 0], sizes = [8, 8], strides = [1, 1]} : vector<8x32xf32> to vector<8x8xf32>
    %cst_107 = arith.constant dense<0.000000e+00> : vector<8x8xf32>
    %225 = tpu.matmul %223, %224, %cst_107 {dimension_numbers = #tpu.dot_dimension_numbers<[1], [0], [0], [1], [0, 0, 1, 1], [], []>} : vector<8x8xf32>, vector<8x8xf32>, vector<8x8xf32> -> vector<8x8xf32>
    %226 = vector.extract_strided_slice %203 {offsets = [0, 8], sizes = [8, 8], strides = [1, 1]} : vector<8x32xf32> to vector<8x8xf32>
    %227 = vector.extract_strided_slice %204 {offsets = [0, 8], sizes = [8, 8], strides = [1, 1]} : vector<8x32xf32> to vector<8x8xf32>
    %cst_108 = arith.constant dense<0.000000e+00> : vector<8x8xf32>
    %228 = tpu.matmul %226, %227, %cst_108 {dimension_numbers = #tpu.dot_dimension_numbers<[1], [1], [0], [0], [0, 0, 1, 0], [], []>} : vector<8x8xf32>, vector<8x8xf32>, vector<8x8xf32> -> vector<8x8xf32>
    %cst_109 = arith.constant -1.000000e+09 : f32
    %229 = vector.broadcast %cst_109 : f32 to vector<8x8xf32>
    %230 = arith.select %11, %229, %228 : vector<8x8xi1>, vector<8x8xf32>
    %cst_110 = arith.constant dense<0xFF800000> : vector<8xf32>
    %231 = vector.multi_reduction <maximumf>, %230, %cst_110 [1] : vector<8x8xf32> to vector<8xf32>
    %232 = vector.shape_cast %231 : vector<8xf32> to vector<8x1xf32>
    %233 = vector.broadcast %232 : vector<8x1xf32> to vector<8x8xf32>
    %234 = arith.subf %230, %233 : vector<8x8xf32>
    %235 = math.exp %234 : vector<8x8xf32>
    %cst_111 = arith.constant dense<0.000000e+00> : vector<8xf32>
    %236 = vector.multi_reduction <add>, %235, %cst_111 [1] : vector<8x8xf32> to vector<8xf32>
    %237 = vector.shape_cast %236 : vector<8xf32> to vector<8x1xf32>
    %238 = vector.broadcast %237 : vector<8x1xf32> to vector<8x8xf32>
    %239 = arith.divf %235, %238 : vector<8x8xf32>
    %240 = vector.extract_strided_slice %205 {offsets = [0, 8], sizes = [8, 8], strides = [1, 1]} : vector<8x32xf32> to vector<8x8xf32>
    %cst_112 = arith.constant dense<0.000000e+00> : vector<8x8xf32>
    %241 = tpu.matmul %239, %240, %cst_112 {dimension_numbers = #tpu.dot_dimension_numbers<[1], [0], [0], [1], [0, 0, 1, 1], [], []>} : vector<8x8xf32>, vector<8x8xf32>, vector<8x8xf32> -> vector<8x8xf32>
    %242 = vector.extract_strided_slice %203 {offsets = [0, 16], sizes = [8, 8], strides = [1, 1]} : vector<8x32xf32> to vector<8x8xf32>
    %243 = vector.extract_strided_slice %204 {offsets = [0, 16], sizes = [8, 8], strides = [1, 1]} : vector<8x32xf32> to vector<8x8xf32>
    %cst_113 = arith.constant dense<0.000000e+00> : vector<8x8xf32>
    %244 = tpu.matmul %242, %243, %cst_113 {dimension_numbers = #tpu.dot_dimension_numbers<[1], [1], [0], [0], [0, 0, 1, 0], [], []>} : vector<8x8xf32>, vector<8x8xf32>, vector<8x8xf32> -> vector<8x8xf32>
    %cst_114 = arith.constant -1.000000e+09 : f32
    %245 = vector.broadcast %cst_114 : f32 to vector<8x8xf32>
    %246 = arith.select %11, %245, %244 : vector<8x8xi1>, vector<8x8xf32>
    %cst_115 = arith.constant dense<0xFF800000> : vector<8xf32>
    %247 = vector.multi_reduction <maximumf>, %246, %cst_115 [1] : vector<8x8xf32> to vector<8xf32>
    %248 = vector.shape_cast %247 : vector<8xf32> to vector<8x1xf32>
    %249 = vector.broadcast %248 : vector<8x1xf32> to vector<8x8xf32>
    %250 = arith.subf %246, %249 : vector<8x8xf32>
    %251 = math.exp %250 : vector<8x8xf32>
    %cst_116 = arith.constant dense<0.000000e+00> : vector<8xf32>
    %252 = vector.multi_reduction <add>, %251, %cst_116 [1] : vector<8x8xf32> to vector<8xf32>
    %253 = vector.shape_cast %252 : vector<8xf32> to vector<8x1xf32>
    %254 = vector.broadcast %253 : vector<8x1xf32> to vector<8x8xf32>
    %255 = arith.divf %251, %254 : vector<8x8xf32>
    %256 = vector.extract_strided_slice %205 {offsets = [0, 16], sizes = [8, 8], strides = [1, 1]} : vector<8x32xf32> to vector<8x8xf32>
    %cst_117 = arith.constant dense<0.000000e+00> : vector<8x8xf32>
    %257 = tpu.matmul %255, %256, %cst_117 {dimension_numbers = #tpu.dot_dimension_numbers<[1], [0], [0], [1], [0, 0, 1, 1], [], []>} : vector<8x8xf32>, vector<8x8xf32>, vector<8x8xf32> -> vector<8x8xf32>
    %258 = vector.extract_strided_slice %203 {offsets = [0, 24], sizes = [8, 8], strides = [1, 1]} : vector<8x32xf32> to vector<8x8xf32>
    %259 = vector.extract_strided_slice %204 {offsets = [0, 24], sizes = [8, 8], strides = [1, 1]} : vector<8x32xf32> to vector<8x8xf32>
    %cst_118 = arith.constant dense<0.000000e+00> : vector<8x8xf32>
    %260 = tpu.matmul %258, %259, %cst_118 {dimension_numbers = #tpu.dot_dimension_numbers<[1], [1], [0], [0], [0, 0, 1, 0], [], []>} : vector<8x8xf32>, vector<8x8xf32>, vector<8x8xf32> -> vector<8x8xf32>
    %cst_119 = arith.constant -1.000000e+09 : f32
    %261 = vector.broadcast %cst_119 : f32 to vector<8x8xf32>
    %262 = arith.select %11, %261, %260 : vector<8x8xi1>, vector<8x8xf32>
    %cst_120 = arith.constant dense<0xFF800000> : vector<8xf32>
    %263 = vector.multi_reduction <maximumf>, %262, %cst_120 [1] : vector<8x8xf32> to vector<8xf32>
    %264 = vector.shape_cast %263 : vector<8xf32> to vector<8x1xf32>
    %265 = vector.broadcast %264 : vector<8x1xf32> to vector<8x8xf32>
    %266 = arith.subf %262, %265 : vector<8x8xf32>
    %267 = math.exp %266 : vector<8x8xf32>
    %cst_121 = arith.constant dense<0.000000e+00> : vector<8xf32>
    %268 = vector.multi_reduction <add>, %267, %cst_121 [1] : vector<8x8xf32> to vector<8xf32>
    %269 = vector.shape_cast %268 : vector<8xf32> to vector<8x1xf32>
    %270 = vector.broadcast %269 : vector<8x1xf32> to vector<8x8xf32>
    %271 = arith.divf %267, %270 : vector<8x8xf32>
    %272 = vector.extract_strided_slice %205 {offsets = [0, 24], sizes = [8, 8], strides = [1, 1]} : vector<8x32xf32> to vector<8x8xf32>
    %cst_122 = arith.constant dense<0.000000e+00> : vector<8x8xf32>
    %273 = tpu.matmul %271, %272, %cst_122 {dimension_numbers = #tpu.dot_dimension_numbers<[1], [0], [0], [1], [0, 0, 1, 1], [], []>} : vector<8x8xf32>, vector<8x8xf32>, vector<8x8xf32> -> vector<8x8xf32>
    %274 = tpu.concatenate %225, %241, %257, %273 in 1 : vector<8x8xf32>, vector<8x8xf32>, vector<8x8xf32>, vector<8x8xf32> -> vector<8x32xf32>
    %cst_123 = arith.constant dense<0.000000e+00> : vector<8x32xf32>
    %275 = tpu.matmul %274, %207, %cst_123 {dimension_numbers = #tpu.dot_dimension_numbers<[1], [0], [0], [1], [0, 0, 1, 1], [], []>} : vector<8x32xf32>, vector<32x32xf32>, vector<8x32xf32> -> vector<8x32xf32>
    %276 = vector.broadcast %209 : vector<1x32xf32> to vector<8x32xf32>
    %277 = arith.addf %275, %276 : vector<8x32xf32>
    %278 = arith.addf %167, %277 : vector<8x32xf32>
    %279 = vector.extract_strided_slice %169 {offsets = [1, 0], sizes = [1, 32], strides = [1, 1]} : vector<2x32xf32> to vector<1x32xf32>
    %280 = vector.extract_strided_slice %171 {offsets = [1, 0], sizes = [1, 32], strides = [1, 1]} : vector<2x32xf32> to vector<1x32xf32>
    %cst_124 = arith.constant dense<0.000000e+00> : vector<8xf32>
    %281 = vector.multi_reduction <add>, %278, %cst_124 [1] : vector<8x32xf32> to vector<8xf32>
    %282 = vector.shape_cast %281 : vector<8xf32> to vector<8x1xf32>
    %cst_125 = arith.constant 3.200000e+01 : f32
    %283 = vector.broadcast %cst_125 : f32 to vector<8x1xf32>
    %284 = arith.divf %282, %283 : vector<8x1xf32>
    %285 = vector.broadcast %284 : vector<8x1xf32> to vector<8x32xf32>
    %286 = arith.subf %278, %285 : vector<8x32xf32>
    %287 = arith.mulf %286, %286 : vector<8x32xf32>
    %cst_126 = arith.constant dense<0.000000e+00> : vector<8xf32>
    %288 = vector.multi_reduction <add>, %287, %cst_126 [1] : vector<8x32xf32> to vector<8xf32>
    %289 = vector.shape_cast %288 : vector<8xf32> to vector<8x1xf32>
    %cst_127 = arith.constant 0.0322580636 : f32
    %290 = vector.broadcast %cst_127 : f32 to vector<8x1xf32>
    %291 = arith.mulf %289, %290 : vector<8x1xf32>
    %292 = math.sqrt %291 : vector<8x1xf32>
    %cst_128 = arith.constant 9.99999997E-7 : f32
    %293 = vector.broadcast %cst_128 : f32 to vector<8x1xf32>
    %294 = arith.addf %292, %293 : vector<8x1xf32>
    %295 = vector.broadcast %294 : vector<8x1xf32> to vector<8x32xf32>
    %296 = arith.divf %286, %295 : vector<8x32xf32>
    %297 = vector.broadcast %279 : vector<1x32xf32> to vector<8x32xf32>
    %298 = arith.mulf %297, %296 : vector<8x32xf32>
    %299 = vector.broadcast %280 : vector<1x32xf32> to vector<8x32xf32>
    %300 = arith.addf %298, %299 : vector<8x32xf32>
    %c1_129 = arith.constant 1 : index
    %c0_130 = arith.constant 0 : index
    %c0_131 = arith.constant 0 : index
    %301 = vector.load %arg9[%c1_129, %c0_130, %c0_131] : memref<2x32x64xf32, #tpu.memory_space<vmem>>, vector<1x32x64xf32>
    %302 = vector.shape_cast %301 : vector<1x32x64xf32> to vector<32x64xf32>
    %c1_132 = arith.constant 1 : index
    %c0_133 = arith.constant 0 : index
    %c0_134 = arith.constant 0 : index
    %303 = vector.load %arg10[%c1_132, %c0_133, %c0_134] : memref<2x1x64xf32, #tpu.memory_space<vmem>>, vector<1x1x64xf32>
    %304 = vector.shape_cast %303 : vector<1x1x64xf32> to vector<1x64xf32>
    %c1_135 = arith.constant 1 : index
    %c0_136 = arith.constant 0 : index
    %c0_137 = arith.constant 0 : index
    %305 = vector.load %arg11[%c1_135, %c0_136, %c0_137] : memref<2x64x32xf32, #tpu.memory_space<vmem>>, vector<1x64x32xf32>
    %306 = vector.shape_cast %305 : vector<1x64x32xf32> to vector<64x32xf32>
    %c1_138 = arith.constant 1 : index
    %c0_139 = arith.constant 0 : index
    %c0_140 = arith.constant 0 : index
    %307 = vector.load %arg12[%c1_138, %c0_139, %c0_140] : memref<2x1x32xf32, #tpu.memory_space<vmem>>, vector<1x1x32xf32>
    %308 = vector.shape_cast %307 : vector<1x1x32xf32> to vector<1x32xf32>
    %cst_141 = arith.constant dense<0.000000e+00> : vector<8x64xf32>
    %309 = tpu.matmul %300, %302, %cst_141 {dimension_numbers = #tpu.dot_dimension_numbers<[1], [0], [0], [1], [0, 0, 1, 1], [], []>} : vector<8x32xf32>, vector<32x64xf32>, vector<8x64xf32> -> vector<8x64xf32>
    %310 = vector.broadcast %304 : vector<1x64xf32> to vector<8x64xf32>
    %311 = arith.addf %309, %310 : vector<8x64xf32>
    %cst_142 = arith.constant 0.000000e+00 : f32
    %312 = vector.broadcast %cst_142 : f32 to vector<8x64xf32>
    %313 = arith.maximumf %311, %312 : vector<8x64xf32>
    %cst_143 = arith.constant dense<0.000000e+00> : vector<8x32xf32>
    %314 = tpu.matmul %313, %306, %cst_143 {dimension_numbers = #tpu.dot_dimension_numbers<[1], [0], [0], [1], [0, 0, 1, 1], [], []>} : vector<8x64xf32>, vector<64x32xf32>, vector<8x32xf32> -> vector<8x32xf32>
    %315 = vector.broadcast %308 : vector<1x32xf32> to vector<8x32xf32>
    %316 = arith.addf %314, %315 : vector<8x32xf32>
    %317 = arith.addf %278, %316 : vector<8x32xf32>
    %c0_144 = arith.constant 0 : index
    %c0_145 = arith.constant 0 : index
    %318 = vector.load %arg15[%c0_144, %c0_145] : memref<1x32xf32, #tpu.memory_space<vmem>>, vector<1x32xf32>
    %c0_146 = arith.constant 0 : index
    %c0_147 = arith.constant 0 : index
    %319 = vector.load %arg16[%c0_146, %c0_147] : memref<1x32xf32, #tpu.memory_space<vmem>>, vector<1x32xf32>
    %cst_148 = arith.constant dense<0.000000e+00> : vector<8xf32>
    %320 = vector.multi_reduction <add>, %317, %cst_148 [1] : vector<8x32xf32> to vector<8xf32>
    %321 = vector.shape_cast %320 : vector<8xf32> to vector<8x1xf32>
    %cst_149 = arith.constant 3.200000e+01 : f32
    %322 = vector.broadcast %cst_149 : f32 to vector<8x1xf32>
    %323 = arith.divf %321, %322 : vector<8x1xf32>
    %324 = vector.broadcast %323 : vector<8x1xf32> to vector<8x32xf32>
    %325 = arith.subf %317, %324 : vector<8x32xf32>
    %326 = arith.mulf %325, %325 : vector<8x32xf32>
    %cst_150 = arith.constant dense<0.000000e+00> : vector<8xf32>
    %327 = vector.multi_reduction <add>, %326, %cst_150 [1] : vector<8x32xf32> to vector<8xf32>
    %328 = vector.shape_cast %327 : vector<8xf32> to vector<8x1xf32>
    %cst_151 = arith.constant 0.0322580636 : f32
    %329 = vector.broadcast %cst_151 : f32 to vector<8x1xf32>
    %330 = arith.mulf %328, %329 : vector<8x1xf32>
    %331 = math.sqrt %330 : vector<8x1xf32>
    %cst_152 = arith.constant 9.99999997E-7 : f32
    %332 = vector.broadcast %cst_152 : f32 to vector<8x1xf32>
    %333 = arith.addf %331, %332 : vector<8x1xf32>
    %334 = vector.broadcast %333 : vector<8x1xf32> to vector<8x32xf32>
    %335 = arith.divf %325, %334 : vector<8x32xf32>
    %336 = vector.broadcast %318 : vector<1x32xf32> to vector<8x32xf32>
    %337 = arith.mulf %336, %335 : vector<8x32xf32>
    %338 = vector.broadcast %319 : vector<1x32xf32> to vector<8x32xf32>
    %339 = arith.addf %337, %338 : vector<8x32xf32>
    %c0_153 = arith.constant 0 : index
    %c0_154 = arith.constant 0 : index
    %c0_155 = arith.constant 0 : index
    %340 = vector.load %arg31[%c0_153, %c0_154, %c0_155] : memref<2x3x32xf32, #tpu.memory_space<vmem>>, vector<1x3x32xf32>
    %341 = vector.shape_cast %340 : vector<1x3x32xf32> to vector<3x32xf32>
    %c0_156 = arith.constant 0 : index
    %c0_157 = arith.constant 0 : index
    %c0_158 = arith.constant 0 : index
    %342 = vector.load %arg32[%c0_156, %c0_157, %c0_158] : memref<2x3x32xf32, #tpu.memory_space<vmem>>, vector<1x3x32xf32>
    %343 = vector.shape_cast %342 : vector<1x3x32xf32> to vector<3x32xf32>
    %344 = vector.extract_strided_slice %341 {offsets = [0, 0], sizes = [1, 32], strides = [1, 1]} : vector<3x32xf32> to vector<1x32xf32>
    %345 = vector.extract_strided_slice %343 {offsets = [0, 0], sizes = [1, 32], strides = [1, 1]} : vector<3x32xf32> to vector<1x32xf32>
    %cst_159 = arith.constant dense<0.000000e+00> : vector<8xf32>
    %346 = vector.multi_reduction <add>, %3, %cst_159 [1] : vector<8x32xf32> to vector<8xf32>
    %347 = vector.shape_cast %346 : vector<8xf32> to vector<8x1xf32>
    %cst_160 = arith.constant 3.200000e+01 : f32
    %348 = vector.broadcast %cst_160 : f32 to vector<8x1xf32>
    %349 = arith.divf %347, %348 : vector<8x1xf32>
    %350 = vector.broadcast %349 : vector<8x1xf32> to vector<8x32xf32>
    %351 = arith.subf %3, %350 : vector<8x32xf32>
    %352 = arith.mulf %351, %351 : vector<8x32xf32>
    %cst_161 = arith.constant dense<0.000000e+00> : vector<8xf32>
    %353 = vector.multi_reduction <add>, %352, %cst_161 [1] : vector<8x32xf32> to vector<8xf32>
    %354 = vector.shape_cast %353 : vector<8xf32> to vector<8x1xf32>
    %cst_162 = arith.constant 0.0322580636 : f32
    %355 = vector.broadcast %cst_162 : f32 to vector<8x1xf32>
    %356 = arith.mulf %354, %355 : vector<8x1xf32>
    %357 = math.sqrt %356 : vector<8x1xf32>
    %cst_163 = arith.constant 9.99999997E-7 : f32
    %358 = vector.broadcast %cst_163 : f32 to vector<8x1xf32>
    %359 = arith.addf %357, %358 : vector<8x1xf32>
    %360 = vector.broadcast %359 : vector<8x1xf32> to vector<8x32xf32>
    %361 = arith.divf %351, %360 : vector<8x32xf32>
    %362 = vector.broadcast %344 : vector<1x32xf32> to vector<8x32xf32>
    %363 = arith.mulf %362, %361 : vector<8x32xf32>
    %364 = vector.broadcast %345 : vector<1x32xf32> to vector<8x32xf32>
    %365 = arith.addf %363, %364 : vector<8x32xf32>
    %c0_164 = arith.constant 0 : index
    %c0_165 = arith.constant 0 : index
    %c0_166 = arith.constant 0 : index
    %366 = vector.load %arg17[%c0_164, %c0_165, %c0_166] : memref<2x32x96xf32, #tpu.memory_space<vmem>>, vector<1x32x96xf32>
    %367 = vector.shape_cast %366 : vector<1x32x96xf32> to vector<32x96xf32>
    %cst_167 = arith.constant dense<0.000000e+00> : vector<8x96xf32>
    %368 = tpu.matmul %365, %367, %cst_167 {dimension_numbers = #tpu.dot_dimension_numbers<[1], [0], [0], [1], [0, 0, 1, 1], [], []>} : vector<8x32xf32>, vector<32x96xf32>, vector<8x96xf32> -> vector<8x96xf32>
    %c0_168 = arith.constant 0 : index
    %c0_169 = arith.constant 0 : index
    %c0_170 = arith.constant 0 : index
    %369 = vector.load %arg18[%c0_168, %c0_169, %c0_170] : memref<2x1x96xf32, #tpu.memory_space<vmem>>, vector<1x1x96xf32>
    %370 = vector.shape_cast %369 : vector<1x1x96xf32> to vector<1x96xf32>
    %371 = vector.broadcast %370 : vector<1x96xf32> to vector<8x96xf32>
    %372 = arith.addf %368, %371 : vector<8x96xf32>
    %373 = vector.extract_strided_slice %372 {offsets = [0, 0], sizes = [8, 32], strides = [1, 1]} : vector<8x96xf32> to vector<8x32xf32>
    %cst_171 = arith.constant 0.353553385 : f32
    %374 = vector.broadcast %cst_171 : f32 to vector<8x32xf32>
    %375 = arith.mulf %373, %374 : vector<8x32xf32>
    %376 = vector.extract_strided_slice %372 {offsets = [0, 32], sizes = [8, 32], strides = [1, 1]} : vector<8x96xf32> to vector<8x32xf32>
    %377 = vector.extract_strided_slice %372 {offsets = [0, 64], sizes = [8, 32], strides = [1, 1]} : vector<8x96xf32> to vector<8x32xf32>
    %c0_172 = arith.constant 0 : index
    %c0_173 = arith.constant 0 : index
    %c0_174 = arith.constant 0 : index
    %378 = vector.load %arg19[%c0_172, %c0_173, %c0_174] : memref<2x32x32xf32, #tpu.memory_space<vmem>>, vector<1x32x32xf32>
    %379 = vector.shape_cast %378 : vector<1x32x32xf32> to vector<32x32xf32>
    %c0_175 = arith.constant 0 : index
    %c0_176 = arith.constant 0 : index
    %c0_177 = arith.constant 0 : index
    %380 = vector.load %arg20[%c0_175, %c0_176, %c0_177] : memref<2x1x32xf32, #tpu.memory_space<vmem>>, vector<1x1x32xf32>
    %381 = vector.shape_cast %380 : vector<1x1x32xf32> to vector<1x32xf32>
    %382 = vector.extract_strided_slice %375 {offsets = [0, 0], sizes = [8, 8], strides = [1, 1]} : vector<8x32xf32> to vector<8x8xf32>
    %383 = vector.extract_strided_slice %376 {offsets = [0, 0], sizes = [8, 8], strides = [1, 1]} : vector<8x32xf32> to vector<8x8xf32>
    %cst_178 = arith.constant dense<0.000000e+00> : vector<8x8xf32>
    %384 = tpu.matmul %382, %383, %cst_178 {dimension_numbers = #tpu.dot_dimension_numbers<[1], [1], [0], [0], [0, 0, 1, 0], [], []>} : vector<8x8xf32>, vector<8x8xf32>, vector<8x8xf32> -> vector<8x8xf32>
    %cst_179 = arith.constant -1.000000e+09 : f32
    %385 = vector.broadcast %cst_179 : f32 to vector<8x8xf32>
    %386 = arith.select %13, %385, %384 : vector<8x8xi1>, vector<8x8xf32>
    %cst_180 = arith.constant dense<0xFF800000> : vector<8xf32>
    %387 = vector.multi_reduction <maximumf>, %386, %cst_180 [1] : vector<8x8xf32> to vector<8xf32>
    %388 = vector.shape_cast %387 : vector<8xf32> to vector<8x1xf32>
    %389 = vector.broadcast %388 : vector<8x1xf32> to vector<8x8xf32>
    %390 = arith.subf %386, %389 : vector<8x8xf32>
    %391 = math.exp %390 : vector<8x8xf32>
    %cst_181 = arith.constant dense<0.000000e+00> : vector<8xf32>
    %392 = vector.multi_reduction <add>, %391, %cst_181 [1] : vector<8x8xf32> to vector<8xf32>
    %393 = vector.shape_cast %392 : vector<8xf32> to vector<8x1xf32>
    %394 = vector.broadcast %393 : vector<8x1xf32> to vector<8x8xf32>
    %395 = arith.divf %391, %394 : vector<8x8xf32>
    %396 = vector.extract_strided_slice %377 {offsets = [0, 0], sizes = [8, 8], strides = [1, 1]} : vector<8x32xf32> to vector<8x8xf32>
    %cst_182 = arith.constant dense<0.000000e+00> : vector<8x8xf32>
    %397 = tpu.matmul %395, %396, %cst_182 {dimension_numbers = #tpu.dot_dimension_numbers<[1], [0], [0], [1], [0, 0, 1, 1], [], []>} : vector<8x8xf32>, vector<8x8xf32>, vector<8x8xf32> -> vector<8x8xf32>
    %398 = vector.extract_strided_slice %375 {offsets = [0, 8], sizes = [8, 8], strides = [1, 1]} : vector<8x32xf32> to vector<8x8xf32>
    %399 = vector.extract_strided_slice %376 {offsets = [0, 8], sizes = [8, 8], strides = [1, 1]} : vector<8x32xf32> to vector<8x8xf32>
    %cst_183 = arith.constant dense<0.000000e+00> : vector<8x8xf32>
    %400 = tpu.matmul %398, %399, %cst_183 {dimension_numbers = #tpu.dot_dimension_numbers<[1], [1], [0], [0], [0, 0, 1, 0], [], []>} : vector<8x8xf32>, vector<8x8xf32>, vector<8x8xf32> -> vector<8x8xf32>
    %cst_184 = arith.constant -1.000000e+09 : f32
    %401 = vector.broadcast %cst_184 : f32 to vector<8x8xf32>
    %402 = arith.select %13, %401, %400 : vector<8x8xi1>, vector<8x8xf32>
    %cst_185 = arith.constant dense<0xFF800000> : vector<8xf32>
    %403 = vector.multi_reduction <maximumf>, %402, %cst_185 [1] : vector<8x8xf32> to vector<8xf32>
    %404 = vector.shape_cast %403 : vector<8xf32> to vector<8x1xf32>
    %405 = vector.broadcast %404 : vector<8x1xf32> to vector<8x8xf32>
    %406 = arith.subf %402, %405 : vector<8x8xf32>
    %407 = math.exp %406 : vector<8x8xf32>
    %cst_186 = arith.constant dense<0.000000e+00> : vector<8xf32>
    %408 = vector.multi_reduction <add>, %407, %cst_186 [1] : vector<8x8xf32> to vector<8xf32>
    %409 = vector.shape_cast %408 : vector<8xf32> to vector<8x1xf32>
    %410 = vector.broadcast %409 : vector<8x1xf32> to vector<8x8xf32>
    %411 = arith.divf %407, %410 : vector<8x8xf32>
    %412 = vector.extract_strided_slice %377 {offsets = [0, 8], sizes = [8, 8], strides = [1, 1]} : vector<8x32xf32> to vector<8x8xf32>
    %cst_187 = arith.constant dense<0.000000e+00> : vector<8x8xf32>
    %413 = tpu.matmul %411, %412, %cst_187 {dimension_numbers = #tpu.dot_dimension_numbers<[1], [0], [0], [1], [0, 0, 1, 1], [], []>} : vector<8x8xf32>, vector<8x8xf32>, vector<8x8xf32> -> vector<8x8xf32>
    %414 = vector.extract_strided_slice %375 {offsets = [0, 16], sizes = [8, 8], strides = [1, 1]} : vector<8x32xf32> to vector<8x8xf32>
    %415 = vector.extract_strided_slice %376 {offsets = [0, 16], sizes = [8, 8], strides = [1, 1]} : vector<8x32xf32> to vector<8x8xf32>
    %cst_188 = arith.constant dense<0.000000e+00> : vector<8x8xf32>
    %416 = tpu.matmul %414, %415, %cst_188 {dimension_numbers = #tpu.dot_dimension_numbers<[1], [1], [0], [0], [0, 0, 1, 0], [], []>} : vector<8x8xf32>, vector<8x8xf32>, vector<8x8xf32> -> vector<8x8xf32>
    %cst_189 = arith.constant -1.000000e+09 : f32
    %417 = vector.broadcast %cst_189 : f32 to vector<8x8xf32>
    %418 = arith.select %13, %417, %416 : vector<8x8xi1>, vector<8x8xf32>
    %cst_190 = arith.constant dense<0xFF800000> : vector<8xf32>
    %419 = vector.multi_reduction <maximumf>, %418, %cst_190 [1] : vector<8x8xf32> to vector<8xf32>
    %420 = vector.shape_cast %419 : vector<8xf32> to vector<8x1xf32>
    %421 = vector.broadcast %420 : vector<8x1xf32> to vector<8x8xf32>
    %422 = arith.subf %418, %421 : vector<8x8xf32>
    %423 = math.exp %422 : vector<8x8xf32>
    %cst_191 = arith.constant dense<0.000000e+00> : vector<8xf32>
    %424 = vector.multi_reduction <add>, %423, %cst_191 [1] : vector<8x8xf32> to vector<8xf32>
    %425 = vector.shape_cast %424 : vector<8xf32> to vector<8x1xf32>
    %426 = vector.broadcast %425 : vector<8x1xf32> to vector<8x8xf32>
    %427 = arith.divf %423, %426 : vector<8x8xf32>
    %428 = vector.extract_strided_slice %377 {offsets = [0, 16], sizes = [8, 8], strides = [1, 1]} : vector<8x32xf32> to vector<8x8xf32>
    %cst_192 = arith.constant dense<0.000000e+00> : vector<8x8xf32>
    %429 = tpu.matmul %427, %428, %cst_192 {dimension_numbers = #tpu.dot_dimension_numbers<[1], [0], [0], [1], [0, 0, 1, 1], [], []>} : vector<8x8xf32>, vector<8x8xf32>, vector<8x8xf32> -> vector<8x8xf32>
    %430 = vector.extract_strided_slice %375 {offsets = [0, 24], sizes = [8, 8], strides = [1, 1]} : vector<8x32xf32> to vector<8x8xf32>
    %431 = vector.extract_strided_slice %376 {offsets = [0, 24], sizes = [8, 8], strides = [1, 1]} : vector<8x32xf32> to vector<8x8xf32>
    %cst_193 = arith.constant dense<0.000000e+00> : vector<8x8xf32>
    %432 = tpu.matmul %430, %431, %cst_193 {dimension_numbers = #tpu.dot_dimension_numbers<[1], [1], [0], [0], [0, 0, 1, 0], [], []>} : vector<8x8xf32>, vector<8x8xf32>, vector<8x8xf32> -> vector<8x8xf32>
    %cst_194 = arith.constant -1.000000e+09 : f32
    %433 = vector.broadcast %cst_194 : f32 to vector<8x8xf32>
    %434 = arith.select %13, %433, %432 : vector<8x8xi1>, vector<8x8xf32>
    %cst_195 = arith.constant dense<0xFF800000> : vector<8xf32>
    %435 = vector.multi_reduction <maximumf>, %434, %cst_195 [1] : vector<8x8xf32> to vector<8xf32>
    %436 = vector.shape_cast %435 : vector<8xf32> to vector<8x1xf32>
    %437 = vector.broadcast %436 : vector<8x1xf32> to vector<8x8xf32>
    %438 = arith.subf %434, %437 : vector<8x8xf32>
    %439 = math.exp %438 : vector<8x8xf32>
    %cst_196 = arith.constant dense<0.000000e+00> : vector<8xf32>
    %440 = vector.multi_reduction <add>, %439, %cst_196 [1] : vector<8x8xf32> to vector<8xf32>
    %441 = vector.shape_cast %440 : vector<8xf32> to vector<8x1xf32>
    %442 = vector.broadcast %441 : vector<8x1xf32> to vector<8x8xf32>
    %443 = arith.divf %439, %442 : vector<8x8xf32>
    %444 = vector.extract_strided_slice %377 {offsets = [0, 24], sizes = [8, 8], strides = [1, 1]} : vector<8x32xf32> to vector<8x8xf32>
    %cst_197 = arith.constant dense<0.000000e+00> : vector<8x8xf32>
    %445 = tpu.matmul %443, %444, %cst_197 {dimension_numbers = #tpu.dot_dimension_numbers<[1], [0], [0], [1], [0, 0, 1, 1], [], []>} : vector<8x8xf32>, vector<8x8xf32>, vector<8x8xf32> -> vector<8x8xf32>
    %446 = tpu.concatenate %397, %413, %429, %445 in 1 : vector<8x8xf32>, vector<8x8xf32>, vector<8x8xf32>, vector<8x8xf32> -> vector<8x32xf32>
    %cst_198 = arith.constant dense<0.000000e+00> : vector<8x32xf32>
    %447 = tpu.matmul %446, %379, %cst_198 {dimension_numbers = #tpu.dot_dimension_numbers<[1], [0], [0], [1], [0, 0, 1, 1], [], []>} : vector<8x32xf32>, vector<32x32xf32>, vector<8x32xf32> -> vector<8x32xf32>
    %448 = vector.broadcast %381 : vector<1x32xf32> to vector<8x32xf32>
    %449 = arith.addf %447, %448 : vector<8x32xf32>
    %450 = arith.addf %3, %449 : vector<8x32xf32>
    %451 = vector.extract_strided_slice %341 {offsets = [1, 0], sizes = [1, 32], strides = [1, 1]} : vector<3x32xf32> to vector<1x32xf32>
    %452 = vector.extract_strided_slice %343 {offsets = [1, 0], sizes = [1, 32], strides = [1, 1]} : vector<3x32xf32> to vector<1x32xf32>
    %cst_199 = arith.constant dense<0.000000e+00> : vector<8xf32>
    %453 = vector.multi_reduction <add>, %450, %cst_199 [1] : vector<8x32xf32> to vector<8xf32>
    %454 = vector.shape_cast %453 : vector<8xf32> to vector<8x1xf32>
    %cst_200 = arith.constant 3.200000e+01 : f32
    %455 = vector.broadcast %cst_200 : f32 to vector<8x1xf32>
    %456 = arith.divf %454, %455 : vector<8x1xf32>
    %457 = vector.broadcast %456 : vector<8x1xf32> to vector<8x32xf32>
    %458 = arith.subf %450, %457 : vector<8x32xf32>
    %459 = arith.mulf %458, %458 : vector<8x32xf32>
    %cst_201 = arith.constant dense<0.000000e+00> : vector<8xf32>
    %460 = vector.multi_reduction <add>, %459, %cst_201 [1] : vector<8x32xf32> to vector<8xf32>
    %461 = vector.shape_cast %460 : vector<8xf32> to vector<8x1xf32>
    %cst_202 = arith.constant 0.0322580636 : f32
    %462 = vector.broadcast %cst_202 : f32 to vector<8x1xf32>
    %463 = arith.mulf %461, %462 : vector<8x1xf32>
    %464 = math.sqrt %463 : vector<8x1xf32>
    %cst_203 = arith.constant 9.99999997E-7 : f32
    %465 = vector.broadcast %cst_203 : f32 to vector<8x1xf32>
    %466 = arith.addf %464, %465 : vector<8x1xf32>
    %467 = vector.broadcast %466 : vector<8x1xf32> to vector<8x32xf32>
    %468 = arith.divf %458, %467 : vector<8x32xf32>
    %469 = vector.broadcast %451 : vector<1x32xf32> to vector<8x32xf32>
    %470 = arith.mulf %469, %468 : vector<8x32xf32>
    %471 = vector.broadcast %452 : vector<1x32xf32> to vector<8x32xf32>
    %472 = arith.addf %470, %471 : vector<8x32xf32>
    %c0_204 = arith.constant 0 : index
    %c0_205 = arith.constant 0 : index
    %c0_206 = arith.constant 0 : index
    %473 = vector.load %arg21[%c0_204, %c0_205, %c0_206] : memref<2x32x32xf32, #tpu.memory_space<vmem>>, vector<1x32x32xf32>
    %474 = vector.shape_cast %473 : vector<1x32x32xf32> to vector<32x32xf32>
    %cst_207 = arith.constant dense<0.000000e+00> : vector<8x32xf32>
    %475 = tpu.matmul %472, %474, %cst_207 {dimension_numbers = #tpu.dot_dimension_numbers<[1], [0], [0], [1], [0, 0, 1, 1], [], []>} : vector<8x32xf32>, vector<32x32xf32>, vector<8x32xf32> -> vector<8x32xf32>
    %c0_208 = arith.constant 0 : index
    %c0_209 = arith.constant 0 : index
    %c0_210 = arith.constant 0 : index
    %476 = vector.load %arg22[%c0_208, %c0_209, %c0_210] : memref<2x1x32xf32, #tpu.memory_space<vmem>>, vector<1x1x32xf32>
    %477 = vector.shape_cast %476 : vector<1x1x32xf32> to vector<1x32xf32>
    %478 = vector.broadcast %477 : vector<1x32xf32> to vector<8x32xf32>
    %479 = arith.addf %475, %478 : vector<8x32xf32>
    %cst_211 = arith.constant 0.353553385 : f32
    %480 = vector.broadcast %cst_211 : f32 to vector<8x32xf32>
    %481 = arith.mulf %479, %480 : vector<8x32xf32>
    %c0_212 = arith.constant 0 : index
    %c0_213 = arith.constant 0 : index
    %c0_214 = arith.constant 0 : index
    %482 = vector.load %arg23[%c0_212, %c0_213, %c0_214] : memref<2x32x64xf32, #tpu.memory_space<vmem>>, vector<1x32x64xf32>
    %483 = vector.shape_cast %482 : vector<1x32x64xf32> to vector<32x64xf32>
    %cst_215 = arith.constant dense<0.000000e+00> : vector<8x64xf32>
    %484 = tpu.matmul %339, %483, %cst_215 {dimension_numbers = #tpu.dot_dimension_numbers<[1], [0], [0], [1], [0, 0, 1, 1], [], []>} : vector<8x32xf32>, vector<32x64xf32>, vector<8x64xf32> -> vector<8x64xf32>
    %c0_216 = arith.constant 0 : index
    %c0_217 = arith.constant 0 : index
    %c0_218 = arith.constant 0 : index
    %485 = vector.load %arg24[%c0_216, %c0_217, %c0_218] : memref<2x1x64xf32, #tpu.memory_space<vmem>>, vector<1x1x64xf32>
    %486 = vector.shape_cast %485 : vector<1x1x64xf32> to vector<1x64xf32>
    %487 = vector.broadcast %486 : vector<1x64xf32> to vector<8x64xf32>
    %488 = arith.addf %484, %487 : vector<8x64xf32>
    %489 = vector.extract_strided_slice %488 {offsets = [0, 0], sizes = [8, 32], strides = [1, 1]} : vector<8x64xf32> to vector<8x32xf32>
    %490 = vector.extract_strided_slice %488 {offsets = [0, 32], sizes = [8, 32], strides = [1, 1]} : vector<8x64xf32> to vector<8x32xf32>
    %c0_219 = arith.constant 0 : index
    %c0_220 = arith.constant 0 : index
    %c0_221 = arith.constant 0 : index
    %491 = vector.load %arg25[%c0_219, %c0_220, %c0_221] : memref<2x32x32xf32, #tpu.memory_space<vmem>>, vector<1x32x32xf32>
    %492 = vector.shape_cast %491 : vector<1x32x32xf32> to vector<32x32xf32>
    %c0_222 = arith.constant 0 : index
    %c0_223 = arith.constant 0 : index
    %c0_224 = arith.constant 0 : index
    %493 = vector.load %arg26[%c0_222, %c0_223, %c0_224] : memref<2x1x32xf32, #tpu.memory_space<vmem>>, vector<1x1x32xf32>
    %494 = vector.shape_cast %493 : vector<1x1x32xf32> to vector<1x32xf32>
    %495 = vector.extract_strided_slice %481 {offsets = [0, 0], sizes = [8, 8], strides = [1, 1]} : vector<8x32xf32> to vector<8x8xf32>
    %496 = vector.extract_strided_slice %489 {offsets = [0, 0], sizes = [8, 8], strides = [1, 1]} : vector<8x32xf32> to vector<8x8xf32>
    %cst_225 = arith.constant dense<0.000000e+00> : vector<8x8xf32>
    %497 = tpu.matmul %495, %496, %cst_225 {dimension_numbers = #tpu.dot_dimension_numbers<[1], [1], [0], [0], [0, 0, 1, 0], [], []>} : vector<8x8xf32>, vector<8x8xf32>, vector<8x8xf32> -> vector<8x8xf32>
    %cst_226 = arith.constant -1.000000e+09 : f32
    %498 = vector.broadcast %cst_226 : f32 to vector<8x8xf32>
    %499 = arith.select %17, %498, %497 : vector<8x8xi1>, vector<8x8xf32>
    %cst_227 = arith.constant dense<0xFF800000> : vector<8xf32>
    %500 = vector.multi_reduction <maximumf>, %499, %cst_227 [1] : vector<8x8xf32> to vector<8xf32>
    %501 = vector.shape_cast %500 : vector<8xf32> to vector<8x1xf32>
    %502 = vector.broadcast %501 : vector<8x1xf32> to vector<8x8xf32>
    %503 = arith.subf %499, %502 : vector<8x8xf32>
    %504 = math.exp %503 : vector<8x8xf32>
    %cst_228 = arith.constant dense<0.000000e+00> : vector<8xf32>
    %505 = vector.multi_reduction <add>, %504, %cst_228 [1] : vector<8x8xf32> to vector<8xf32>
    %506 = vector.shape_cast %505 : vector<8xf32> to vector<8x1xf32>
    %507 = vector.broadcast %506 : vector<8x1xf32> to vector<8x8xf32>
    %508 = arith.divf %504, %507 : vector<8x8xf32>
    %509 = vector.extract_strided_slice %490 {offsets = [0, 0], sizes = [8, 8], strides = [1, 1]} : vector<8x32xf32> to vector<8x8xf32>
    %cst_229 = arith.constant dense<0.000000e+00> : vector<8x8xf32>
    %510 = tpu.matmul %508, %509, %cst_229 {dimension_numbers = #tpu.dot_dimension_numbers<[1], [0], [0], [1], [0, 0, 1, 1], [], []>} : vector<8x8xf32>, vector<8x8xf32>, vector<8x8xf32> -> vector<8x8xf32>
    %511 = vector.extract_strided_slice %481 {offsets = [0, 8], sizes = [8, 8], strides = [1, 1]} : vector<8x32xf32> to vector<8x8xf32>
    %512 = vector.extract_strided_slice %489 {offsets = [0, 8], sizes = [8, 8], strides = [1, 1]} : vector<8x32xf32> to vector<8x8xf32>
    %cst_230 = arith.constant dense<0.000000e+00> : vector<8x8xf32>
    %513 = tpu.matmul %511, %512, %cst_230 {dimension_numbers = #tpu.dot_dimension_numbers<[1], [1], [0], [0], [0, 0, 1, 0], [], []>} : vector<8x8xf32>, vector<8x8xf32>, vector<8x8xf32> -> vector<8x8xf32>
    %cst_231 = arith.constant -1.000000e+09 : f32
    %514 = vector.broadcast %cst_231 : f32 to vector<8x8xf32>
    %515 = arith.select %17, %514, %513 : vector<8x8xi1>, vector<8x8xf32>
    %cst_232 = arith.constant dense<0xFF800000> : vector<8xf32>
    %516 = vector.multi_reduction <maximumf>, %515, %cst_232 [1] : vector<8x8xf32> to vector<8xf32>
    %517 = vector.shape_cast %516 : vector<8xf32> to vector<8x1xf32>
    %518 = vector.broadcast %517 : vector<8x1xf32> to vector<8x8xf32>
    %519 = arith.subf %515, %518 : vector<8x8xf32>
    %520 = math.exp %519 : vector<8x8xf32>
    %cst_233 = arith.constant dense<0.000000e+00> : vector<8xf32>
    %521 = vector.multi_reduction <add>, %520, %cst_233 [1] : vector<8x8xf32> to vector<8xf32>
    %522 = vector.shape_cast %521 : vector<8xf32> to vector<8x1xf32>
    %523 = vector.broadcast %522 : vector<8x1xf32> to vector<8x8xf32>
    %524 = arith.divf %520, %523 : vector<8x8xf32>
    %525 = vector.extract_strided_slice %490 {offsets = [0, 8], sizes = [8, 8], strides = [1, 1]} : vector<8x32xf32> to vector<8x8xf32>
    %cst_234 = arith.constant dense<0.000000e+00> : vector<8x8xf32>
    %526 = tpu.matmul %524, %525, %cst_234 {dimension_numbers = #tpu.dot_dimension_numbers<[1], [0], [0], [1], [0, 0, 1, 1], [], []>} : vector<8x8xf32>, vector<8x8xf32>, vector<8x8xf32> -> vector<8x8xf32>
    %527 = vector.extract_strided_slice %481 {offsets = [0, 16], sizes = [8, 8], strides = [1, 1]} : vector<8x32xf32> to vector<8x8xf32>
    %528 = vector.extract_strided_slice %489 {offsets = [0, 16], sizes = [8, 8], strides = [1, 1]} : vector<8x32xf32> to vector<8x8xf32>
    %cst_235 = arith.constant dense<0.000000e+00> : vector<8x8xf32>
    %529 = tpu.matmul %527, %528, %cst_235 {dimension_numbers = #tpu.dot_dimension_numbers<[1], [1], [0], [0], [0, 0, 1, 0], [], []>} : vector<8x8xf32>, vector<8x8xf32>, vector<8x8xf32> -> vector<8x8xf32>
    %cst_236 = arith.constant -1.000000e+09 : f32
    %530 = vector.broadcast %cst_236 : f32 to vector<8x8xf32>
    %531 = arith.select %17, %530, %529 : vector<8x8xi1>, vector<8x8xf32>
    %cst_237 = arith.constant dense<0xFF800000> : vector<8xf32>
    %532 = vector.multi_reduction <maximumf>, %531, %cst_237 [1] : vector<8x8xf32> to vector<8xf32>
    %533 = vector.shape_cast %532 : vector<8xf32> to vector<8x1xf32>
    %534 = vector.broadcast %533 : vector<8x1xf32> to vector<8x8xf32>
    %535 = arith.subf %531, %534 : vector<8x8xf32>
    %536 = math.exp %535 : vector<8x8xf32>
    %cst_238 = arith.constant dense<0.000000e+00> : vector<8xf32>
    %537 = vector.multi_reduction <add>, %536, %cst_238 [1] : vector<8x8xf32> to vector<8xf32>
    %538 = vector.shape_cast %537 : vector<8xf32> to vector<8x1xf32>
    %539 = vector.broadcast %538 : vector<8x1xf32> to vector<8x8xf32>
    %540 = arith.divf %536, %539 : vector<8x8xf32>
    %541 = vector.extract_strided_slice %490 {offsets = [0, 16], sizes = [8, 8], strides = [1, 1]} : vector<8x32xf32> to vector<8x8xf32>
    %cst_239 = arith.constant dense<0.000000e+00> : vector<8x8xf32>
    %542 = tpu.matmul %540, %541, %cst_239 {dimension_numbers = #tpu.dot_dimension_numbers<[1], [0], [0], [1], [0, 0, 1, 1], [], []>} : vector<8x8xf32>, vector<8x8xf32>, vector<8x8xf32> -> vector<8x8xf32>
    %543 = vector.extract_strided_slice %481 {offsets = [0, 24], sizes = [8, 8], strides = [1, 1]} : vector<8x32xf32> to vector<8x8xf32>
    %544 = vector.extract_strided_slice %489 {offsets = [0, 24], sizes = [8, 8], strides = [1, 1]} : vector<8x32xf32> to vector<8x8xf32>
    %cst_240 = arith.constant dense<0.000000e+00> : vector<8x8xf32>
    %545 = tpu.matmul %543, %544, %cst_240 {dimension_numbers = #tpu.dot_dimension_numbers<[1], [1], [0], [0], [0, 0, 1, 0], [], []>} : vector<8x8xf32>, vector<8x8xf32>, vector<8x8xf32> -> vector<8x8xf32>
    %cst_241 = arith.constant -1.000000e+09 : f32
    %546 = vector.broadcast %cst_241 : f32 to vector<8x8xf32>
    %547 = arith.select %17, %546, %545 : vector<8x8xi1>, vector<8x8xf32>
    %cst_242 = arith.constant dense<0xFF800000> : vector<8xf32>
    %548 = vector.multi_reduction <maximumf>, %547, %cst_242 [1] : vector<8x8xf32> to vector<8xf32>
    %549 = vector.shape_cast %548 : vector<8xf32> to vector<8x1xf32>
    %550 = vector.broadcast %549 : vector<8x1xf32> to vector<8x8xf32>
    %551 = arith.subf %547, %550 : vector<8x8xf32>
    %552 = math.exp %551 : vector<8x8xf32>
    %cst_243 = arith.constant dense<0.000000e+00> : vector<8xf32>
    %553 = vector.multi_reduction <add>, %552, %cst_243 [1] : vector<8x8xf32> to vector<8xf32>
    %554 = vector.shape_cast %553 : vector<8xf32> to vector<8x1xf32>
    %555 = vector.broadcast %554 : vector<8x1xf32> to vector<8x8xf32>
    %556 = arith.divf %552, %555 : vector<8x8xf32>
    %557 = vector.extract_strided_slice %490 {offsets = [0, 24], sizes = [8, 8], strides = [1, 1]} : vector<8x32xf32> to vector<8x8xf32>
    %cst_244 = arith.constant dense<0.000000e+00> : vector<8x8xf32>
    %558 = tpu.matmul %556, %557, %cst_244 {dimension_numbers = #tpu.dot_dimension_numbers<[1], [0], [0], [1], [0, 0, 1, 1], [], []>} : vector<8x8xf32>, vector<8x8xf32>, vector<8x8xf32> -> vector<8x8xf32>
    %559 = tpu.concatenate %510, %526, %542, %558 in 1 : vector<8x8xf32>, vector<8x8xf32>, vector<8x8xf32>, vector<8x8xf32> -> vector<8x32xf32>
    %cst_245 = arith.constant dense<0.000000e+00> : vector<8x32xf32>
    %560 = tpu.matmul %559, %492, %cst_245 {dimension_numbers = #tpu.dot_dimension_numbers<[1], [0], [0], [1], [0, 0, 1, 1], [], []>} : vector<8x32xf32>, vector<32x32xf32>, vector<8x32xf32> -> vector<8x32xf32>
    %561 = vector.broadcast %494 : vector<1x32xf32> to vector<8x32xf32>
    %562 = arith.addf %560, %561 : vector<8x32xf32>
    %563 = arith.addf %450, %562 : vector<8x32xf32>
    %564 = vector.extract_strided_slice %341 {offsets = [2, 0], sizes = [1, 32], strides = [1, 1]} : vector<3x32xf32> to vector<1x32xf32>
    %565 = vector.extract_strided_slice %343 {offsets = [2, 0], sizes = [1, 32], strides = [1, 1]} : vector<3x32xf32> to vector<1x32xf32>
    %cst_246 = arith.constant dense<0.000000e+00> : vector<8xf32>
    %566 = vector.multi_reduction <add>, %563, %cst_246 [1] : vector<8x32xf32> to vector<8xf32>
    %567 = vector.shape_cast %566 : vector<8xf32> to vector<8x1xf32>
    %cst_247 = arith.constant 3.200000e+01 : f32
    %568 = vector.broadcast %cst_247 : f32 to vector<8x1xf32>
    %569 = arith.divf %567, %568 : vector<8x1xf32>
    %570 = vector.broadcast %569 : vector<8x1xf32> to vector<8x32xf32>
    %571 = arith.subf %563, %570 : vector<8x32xf32>
    %572 = arith.mulf %571, %571 : vector<8x32xf32>
    %cst_248 = arith.constant dense<0.000000e+00> : vector<8xf32>
    %573 = vector.multi_reduction <add>, %572, %cst_248 [1] : vector<8x32xf32> to vector<8xf32>
    %574 = vector.shape_cast %573 : vector<8xf32> to vector<8x1xf32>
    %cst_249 = arith.constant 0.0322580636 : f32
    %575 = vector.broadcast %cst_249 : f32 to vector<8x1xf32>
    %576 = arith.mulf %574, %575 : vector<8x1xf32>
    %577 = math.sqrt %576 : vector<8x1xf32>
    %cst_250 = arith.constant 9.99999997E-7 : f32
    %578 = vector.broadcast %cst_250 : f32 to vector<8x1xf32>
    %579 = arith.addf %577, %578 : vector<8x1xf32>
    %580 = vector.broadcast %579 : vector<8x1xf32> to vector<8x32xf32>
    %581 = arith.divf %571, %580 : vector<8x32xf32>
    %582 = vector.broadcast %564 : vector<1x32xf32> to vector<8x32xf32>
    %583 = arith.mulf %582, %581 : vector<8x32xf32>
    %584 = vector.broadcast %565 : vector<1x32xf32> to vector<8x32xf32>
    %585 = arith.addf %583, %584 : vector<8x32xf32>
    %c0_251 = arith.constant 0 : index
    %c0_252 = arith.constant 0 : index
    %c0_253 = arith.constant 0 : index
    %586 = vector.load %arg27[%c0_251, %c0_252, %c0_253] : memref<2x32x64xf32, #tpu.memory_space<vmem>>, vector<1x32x64xf32>
    %587 = vector.shape_cast %586 : vector<1x32x64xf32> to vector<32x64xf32>
    %c0_254 = arith.constant 0 : index
    %c0_255 = arith.constant 0 : index
    %c0_256 = arith.constant 0 : index
    %588 = vector.load %arg28[%c0_254, %c0_255, %c0_256] : memref<2x1x64xf32, #tpu.memory_space<vmem>>, vector<1x1x64xf32>
    %589 = vector.shape_cast %588 : vector<1x1x64xf32> to vector<1x64xf32>
    %c0_257 = arith.constant 0 : index
    %c0_258 = arith.constant 0 : index
    %c0_259 = arith.constant 0 : index
    %590 = vector.load %arg29[%c0_257, %c0_258, %c0_259] : memref<2x64x32xf32, #tpu.memory_space<vmem>>, vector<1x64x32xf32>
    %591 = vector.shape_cast %590 : vector<1x64x32xf32> to vector<64x32xf32>
    %c0_260 = arith.constant 0 : index
    %c0_261 = arith.constant 0 : index
    %c0_262 = arith.constant 0 : index
    %592 = vector.load %arg30[%c0_260, %c0_261, %c0_262] : memref<2x1x32xf32, #tpu.memory_space<vmem>>, vector<1x1x32xf32>
    %593 = vector.shape_cast %592 : vector<1x1x32xf32> to vector<1x32xf32>
    %cst_263 = arith.constant dense<0.000000e+00> : vector<8x64xf32>
    %594 = tpu.matmul %585, %587, %cst_263 {dimension_numbers = #tpu.dot_dimension_numbers<[1], [0], [0], [1], [0, 0, 1, 1], [], []>} : vector<8x32xf32>, vector<32x64xf32>, vector<8x64xf32> -> vector<8x64xf32>
    %595 = vector.broadcast %589 : vector<1x64xf32> to vector<8x64xf32>
    %596 = arith.addf %594, %595 : vector<8x64xf32>
    %cst_264 = arith.constant 0.000000e+00 : f32
    %597 = vector.broadcast %cst_264 : f32 to vector<8x64xf32>
    %598 = arith.maximumf %596, %597 : vector<8x64xf32>
    %cst_265 = arith.constant dense<0.000000e+00> : vector<8x32xf32>
    %599 = tpu.matmul %598, %591, %cst_265 {dimension_numbers = #tpu.dot_dimension_numbers<[1], [0], [0], [1], [0, 0, 1, 1], [], []>} : vector<8x64xf32>, vector<64x32xf32>, vector<8x32xf32> -> vector<8x32xf32>
    %600 = vector.broadcast %593 : vector<1x32xf32> to vector<8x32xf32>
    %601 = arith.addf %599, %600 : vector<8x32xf32>
    %602 = arith.addf %563, %601 : vector<8x32xf32>
    %c1_266 = arith.constant 1 : index
    %c0_267 = arith.constant 0 : index
    %c0_268 = arith.constant 0 : index
    %603 = vector.load %arg31[%c1_266, %c0_267, %c0_268] : memref<2x3x32xf32, #tpu.memory_space<vmem>>, vector<1x3x32xf32>
    %604 = vector.shape_cast %603 : vector<1x3x32xf32> to vector<3x32xf32>
    %c1_269 = arith.constant 1 : index
    %c0_270 = arith.constant 0 : index
    %c0_271 = arith.constant 0 : index
    %605 = vector.load %arg32[%c1_269, %c0_270, %c0_271] : memref<2x3x32xf32, #tpu.memory_space<vmem>>, vector<1x3x32xf32>
    %606 = vector.shape_cast %605 : vector<1x3x32xf32> to vector<3x32xf32>
    %607 = vector.extract_strided_slice %604 {offsets = [0, 0], sizes = [1, 32], strides = [1, 1]} : vector<3x32xf32> to vector<1x32xf32>
    %608 = vector.extract_strided_slice %606 {offsets = [0, 0], sizes = [1, 32], strides = [1, 1]} : vector<3x32xf32> to vector<1x32xf32>
    %cst_272 = arith.constant dense<0.000000e+00> : vector<8xf32>
    %609 = vector.multi_reduction <add>, %602, %cst_272 [1] : vector<8x32xf32> to vector<8xf32>
    %610 = vector.shape_cast %609 : vector<8xf32> to vector<8x1xf32>
    %cst_273 = arith.constant 3.200000e+01 : f32
    %611 = vector.broadcast %cst_273 : f32 to vector<8x1xf32>
    %612 = arith.divf %610, %611 : vector<8x1xf32>
    %613 = vector.broadcast %612 : vector<8x1xf32> to vector<8x32xf32>
    %614 = arith.subf %602, %613 : vector<8x32xf32>
    %615 = arith.mulf %614, %614 : vector<8x32xf32>
    %cst_274 = arith.constant dense<0.000000e+00> : vector<8xf32>
    %616 = vector.multi_reduction <add>, %615, %cst_274 [1] : vector<8x32xf32> to vector<8xf32>
    %617 = vector.shape_cast %616 : vector<8xf32> to vector<8x1xf32>
    %cst_275 = arith.constant 0.0322580636 : f32
    %618 = vector.broadcast %cst_275 : f32 to vector<8x1xf32>
    %619 = arith.mulf %617, %618 : vector<8x1xf32>
    %620 = math.sqrt %619 : vector<8x1xf32>
    %cst_276 = arith.constant 9.99999997E-7 : f32
    %621 = vector.broadcast %cst_276 : f32 to vector<8x1xf32>
    %622 = arith.addf %620, %621 : vector<8x1xf32>
    %623 = vector.broadcast %622 : vector<8x1xf32> to vector<8x32xf32>
    %624 = arith.divf %614, %623 : vector<8x32xf32>
    %625 = vector.broadcast %607 : vector<1x32xf32> to vector<8x32xf32>
    %626 = arith.mulf %625, %624 : vector<8x32xf32>
    %627 = vector.broadcast %608 : vector<1x32xf32> to vector<8x32xf32>
    %628 = arith.addf %626, %627 : vector<8x32xf32>
    %c1_277 = arith.constant 1 : index
    %c0_278 = arith.constant 0 : index
    %c0_279 = arith.constant 0 : index
    %629 = vector.load %arg17[%c1_277, %c0_278, %c0_279] : memref<2x32x96xf32, #tpu.memory_space<vmem>>, vector<1x32x96xf32>
    %630 = vector.shape_cast %629 : vector<1x32x96xf32> to vector<32x96xf32>
    %cst_280 = arith.constant dense<0.000000e+00> : vector<8x96xf32>
    %631 = tpu.matmul %628, %630, %cst_280 {dimension_numbers = #tpu.dot_dimension_numbers<[1], [0], [0], [1], [0, 0, 1, 1], [], []>} : vector<8x32xf32>, vector<32x96xf32>, vector<8x96xf32> -> vector<8x96xf32>
    %c1_281 = arith.constant 1 : index
    %c0_282 = arith.constant 0 : index
    %c0_283 = arith.constant 0 : index
    %632 = vector.load %arg18[%c1_281, %c0_282, %c0_283] : memref<2x1x96xf32, #tpu.memory_space<vmem>>, vector<1x1x96xf32>
    %633 = vector.shape_cast %632 : vector<1x1x96xf32> to vector<1x96xf32>
    %634 = vector.broadcast %633 : vector<1x96xf32> to vector<8x96xf32>
    %635 = arith.addf %631, %634 : vector<8x96xf32>
    %636 = vector.extract_strided_slice %635 {offsets = [0, 0], sizes = [8, 32], strides = [1, 1]} : vector<8x96xf32> to vector<8x32xf32>
    %cst_284 = arith.constant 0.353553385 : f32
    %637 = vector.broadcast %cst_284 : f32 to vector<8x32xf32>
    %638 = arith.mulf %636, %637 : vector<8x32xf32>
    %639 = vector.extract_strided_slice %635 {offsets = [0, 32], sizes = [8, 32], strides = [1, 1]} : vector<8x96xf32> to vector<8x32xf32>
    %640 = vector.extract_strided_slice %635 {offsets = [0, 64], sizes = [8, 32], strides = [1, 1]} : vector<8x96xf32> to vector<8x32xf32>
    %c1_285 = arith.constant 1 : index
    %c0_286 = arith.constant 0 : index
    %c0_287 = arith.constant 0 : index
    %641 = vector.load %arg19[%c1_285, %c0_286, %c0_287] : memref<2x32x32xf32, #tpu.memory_space<vmem>>, vector<1x32x32xf32>
    %642 = vector.shape_cast %641 : vector<1x32x32xf32> to vector<32x32xf32>
    %c1_288 = arith.constant 1 : index
    %c0_289 = arith.constant 0 : index
    %c0_290 = arith.constant 0 : index
    %643 = vector.load %arg20[%c1_288, %c0_289, %c0_290] : memref<2x1x32xf32, #tpu.memory_space<vmem>>, vector<1x1x32xf32>
    %644 = vector.shape_cast %643 : vector<1x1x32xf32> to vector<1x32xf32>
    %645 = vector.extract_strided_slice %638 {offsets = [0, 0], sizes = [8, 8], strides = [1, 1]} : vector<8x32xf32> to vector<8x8xf32>
    %646 = vector.extract_strided_slice %639 {offsets = [0, 0], sizes = [8, 8], strides = [1, 1]} : vector<8x32xf32> to vector<8x8xf32>
    %cst_291 = arith.constant dense<0.000000e+00> : vector<8x8xf32>
    %647 = tpu.matmul %645, %646, %cst_291 {dimension_numbers = #tpu.dot_dimension_numbers<[1], [1], [0], [0], [0, 0, 1, 0], [], []>} : vector<8x8xf32>, vector<8x8xf32>, vector<8x8xf32> -> vector<8x8xf32>
    %cst_292 = arith.constant -1.000000e+09 : f32
    %648 = vector.broadcast %cst_292 : f32 to vector<8x8xf32>
    %649 = arith.select %13, %648, %647 : vector<8x8xi1>, vector<8x8xf32>
    %cst_293 = arith.constant dense<0xFF800000> : vector<8xf32>
    %650 = vector.multi_reduction <maximumf>, %649, %cst_293 [1] : vector<8x8xf32> to vector<8xf32>
    %651 = vector.shape_cast %650 : vector<8xf32> to vector<8x1xf32>
    %652 = vector.broadcast %651 : vector<8x1xf32> to vector<8x8xf32>
    %653 = arith.subf %649, %652 : vector<8x8xf32>
    %654 = math.exp %653 : vector<8x8xf32>
    %cst_294 = arith.constant dense<0.000000e+00> : vector<8xf32>
    %655 = vector.multi_reduction <add>, %654, %cst_294 [1] : vector<8x8xf32> to vector<8xf32>
    %656 = vector.shape_cast %655 : vector<8xf32> to vector<8x1xf32>
    %657 = vector.broadcast %656 : vector<8x1xf32> to vector<8x8xf32>
    %658 = arith.divf %654, %657 : vector<8x8xf32>
    %659 = vector.extract_strided_slice %640 {offsets = [0, 0], sizes = [8, 8], strides = [1, 1]} : vector<8x32xf32> to vector<8x8xf32>
    %cst_295 = arith.constant dense<0.000000e+00> : vector<8x8xf32>
    %660 = tpu.matmul %658, %659, %cst_295 {dimension_numbers = #tpu.dot_dimension_numbers<[1], [0], [0], [1], [0, 0, 1, 1], [], []>} : vector<8x8xf32>, vector<8x8xf32>, vector<8x8xf32> -> vector<8x8xf32>
    %661 = vector.extract_strided_slice %638 {offsets = [0, 8], sizes = [8, 8], strides = [1, 1]} : vector<8x32xf32> to vector<8x8xf32>
    %662 = vector.extract_strided_slice %639 {offsets = [0, 8], sizes = [8, 8], strides = [1, 1]} : vector<8x32xf32> to vector<8x8xf32>
    %cst_296 = arith.constant dense<0.000000e+00> : vector<8x8xf32>
    %663 = tpu.matmul %661, %662, %cst_296 {dimension_numbers = #tpu.dot_dimension_numbers<[1], [1], [0], [0], [0, 0, 1, 0], [], []>} : vector<8x8xf32>, vector<8x8xf32>, vector<8x8xf32> -> vector<8x8xf32>
    %cst_297 = arith.constant -1.000000e+09 : f32
    %664 = vector.broadcast %cst_297 : f32 to vector<8x8xf32>
    %665 = arith.select %13, %664, %663 : vector<8x8xi1>, vector<8x8xf32>
    %cst_298 = arith.constant dense<0xFF800000> : vector<8xf32>
    %666 = vector.multi_reduction <maximumf>, %665, %cst_298 [1] : vector<8x8xf32> to vector<8xf32>
    %667 = vector.shape_cast %666 : vector<8xf32> to vector<8x1xf32>
    %668 = vector.broadcast %667 : vector<8x1xf32> to vector<8x8xf32>
    %669 = arith.subf %665, %668 : vector<8x8xf32>
    %670 = math.exp %669 : vector<8x8xf32>
    %cst_299 = arith.constant dense<0.000000e+00> : vector<8xf32>
    %671 = vector.multi_reduction <add>, %670, %cst_299 [1] : vector<8x8xf32> to vector<8xf32>
    %672 = vector.shape_cast %671 : vector<8xf32> to vector<8x1xf32>
    %673 = vector.broadcast %672 : vector<8x1xf32> to vector<8x8xf32>
    %674 = arith.divf %670, %673 : vector<8x8xf32>
    %675 = vector.extract_strided_slice %640 {offsets = [0, 8], sizes = [8, 8], strides = [1, 1]} : vector<8x32xf32> to vector<8x8xf32>
    %cst_300 = arith.constant dense<0.000000e+00> : vector<8x8xf32>
    %676 = tpu.matmul %674, %675, %cst_300 {dimension_numbers = #tpu.dot_dimension_numbers<[1], [0], [0], [1], [0, 0, 1, 1], [], []>} : vector<8x8xf32>, vector<8x8xf32>, vector<8x8xf32> -> vector<8x8xf32>
    %677 = vector.extract_strided_slice %638 {offsets = [0, 16], sizes = [8, 8], strides = [1, 1]} : vector<8x32xf32> to vector<8x8xf32>
    %678 = vector.extract_strided_slice %639 {offsets = [0, 16], sizes = [8, 8], strides = [1, 1]} : vector<8x32xf32> to vector<8x8xf32>
    %cst_301 = arith.constant dense<0.000000e+00> : vector<8x8xf32>
    %679 = tpu.matmul %677, %678, %cst_301 {dimension_numbers = #tpu.dot_dimension_numbers<[1], [1], [0], [0], [0, 0, 1, 0], [], []>} : vector<8x8xf32>, vector<8x8xf32>, vector<8x8xf32> -> vector<8x8xf32>
    %cst_302 = arith.constant -1.000000e+09 : f32
    %680 = vector.broadcast %cst_302 : f32 to vector<8x8xf32>
    %681 = arith.select %13, %680, %679 : vector<8x8xi1>, vector<8x8xf32>
    %cst_303 = arith.constant dense<0xFF800000> : vector<8xf32>
    %682 = vector.multi_reduction <maximumf>, %681, %cst_303 [1] : vector<8x8xf32> to vector<8xf32>
    %683 = vector.shape_cast %682 : vector<8xf32> to vector<8x1xf32>
    %684 = vector.broadcast %683 : vector<8x1xf32> to vector<8x8xf32>
    %685 = arith.subf %681, %684 : vector<8x8xf32>
    %686 = math.exp %685 : vector<8x8xf32>
    %cst_304 = arith.constant dense<0.000000e+00> : vector<8xf32>
    %687 = vector.multi_reduction <add>, %686, %cst_304 [1] : vector<8x8xf32> to vector<8xf32>
    %688 = vector.shape_cast %687 : vector<8xf32> to vector<8x1xf32>
    %689 = vector.broadcast %688 : vector<8x1xf32> to vector<8x8xf32>
    %690 = arith.divf %686, %689 : vector<8x8xf32>
    %691 = vector.extract_strided_slice %640 {offsets = [0, 16], sizes = [8, 8], strides = [1, 1]} : vector<8x32xf32> to vector<8x8xf32>
    %cst_305 = arith.constant dense<0.000000e+00> : vector<8x8xf32>
    %692 = tpu.matmul %690, %691, %cst_305 {dimension_numbers = #tpu.dot_dimension_numbers<[1], [0], [0], [1], [0, 0, 1, 1], [], []>} : vector<8x8xf32>, vector<8x8xf32>, vector<8x8xf32> -> vector<8x8xf32>
    %693 = vector.extract_strided_slice %638 {offsets = [0, 24], sizes = [8, 8], strides = [1, 1]} : vector<8x32xf32> to vector<8x8xf32>
    %694 = vector.extract_strided_slice %639 {offsets = [0, 24], sizes = [8, 8], strides = [1, 1]} : vector<8x32xf32> to vector<8x8xf32>
    %cst_306 = arith.constant dense<0.000000e+00> : vector<8x8xf32>
    %695 = tpu.matmul %693, %694, %cst_306 {dimension_numbers = #tpu.dot_dimension_numbers<[1], [1], [0], [0], [0, 0, 1, 0], [], []>} : vector<8x8xf32>, vector<8x8xf32>, vector<8x8xf32> -> vector<8x8xf32>
    %cst_307 = arith.constant -1.000000e+09 : f32
    %696 = vector.broadcast %cst_307 : f32 to vector<8x8xf32>
    %697 = arith.select %13, %696, %695 : vector<8x8xi1>, vector<8x8xf32>
    %cst_308 = arith.constant dense<0xFF800000> : vector<8xf32>
    %698 = vector.multi_reduction <maximumf>, %697, %cst_308 [1] : vector<8x8xf32> to vector<8xf32>
    %699 = vector.shape_cast %698 : vector<8xf32> to vector<8x1xf32>
    %700 = vector.broadcast %699 : vector<8x1xf32> to vector<8x8xf32>
    %701 = arith.subf %697, %700 : vector<8x8xf32>
    %702 = math.exp %701 : vector<8x8xf32>
    %cst_309 = arith.constant dense<0.000000e+00> : vector<8xf32>
    %703 = vector.multi_reduction <add>, %702, %cst_309 [1] : vector<8x8xf32> to vector<8xf32>
    %704 = vector.shape_cast %703 : vector<8xf32> to vector<8x1xf32>
    %705 = vector.broadcast %704 : vector<8x1xf32> to vector<8x8xf32>
    %706 = arith.divf %702, %705 : vector<8x8xf32>
    %707 = vector.extract_strided_slice %640 {offsets = [0, 24], sizes = [8, 8], strides = [1, 1]} : vector<8x32xf32> to vector<8x8xf32>
    %cst_310 = arith.constant dense<0.000000e+00> : vector<8x8xf32>
    %708 = tpu.matmul %706, %707, %cst_310 {dimension_numbers = #tpu.dot_dimension_numbers<[1], [0], [0], [1], [0, 0, 1, 1], [], []>} : vector<8x8xf32>, vector<8x8xf32>, vector<8x8xf32> -> vector<8x8xf32>
    %709 = tpu.concatenate %660, %676, %692, %708 in 1 : vector<8x8xf32>, vector<8x8xf32>, vector<8x8xf32>, vector<8x8xf32> -> vector<8x32xf32>
    %cst_311 = arith.constant dense<0.000000e+00> : vector<8x32xf32>
    %710 = tpu.matmul %709, %642, %cst_311 {dimension_numbers = #tpu.dot_dimension_numbers<[1], [0], [0], [1], [0, 0, 1, 1], [], []>} : vector<8x32xf32>, vector<32x32xf32>, vector<8x32xf32> -> vector<8x32xf32>
    %711 = vector.broadcast %644 : vector<1x32xf32> to vector<8x32xf32>
    %712 = arith.addf %710, %711 : vector<8x32xf32>
    %713 = arith.addf %602, %712 : vector<8x32xf32>
    %714 = vector.extract_strided_slice %604 {offsets = [1, 0], sizes = [1, 32], strides = [1, 1]} : vector<3x32xf32> to vector<1x32xf32>
    %715 = vector.extract_strided_slice %606 {offsets = [1, 0], sizes = [1, 32], strides = [1, 1]} : vector<3x32xf32> to vector<1x32xf32>
    %cst_312 = arith.constant dense<0.000000e+00> : vector<8xf32>
    %716 = vector.multi_reduction <add>, %713, %cst_312 [1] : vector<8x32xf32> to vector<8xf32>
    %717 = vector.shape_cast %716 : vector<8xf32> to vector<8x1xf32>
    %cst_313 = arith.constant 3.200000e+01 : f32
    %718 = vector.broadcast %cst_313 : f32 to vector<8x1xf32>
    %719 = arith.divf %717, %718 : vector<8x1xf32>
    %720 = vector.broadcast %719 : vector<8x1xf32> to vector<8x32xf32>
    %721 = arith.subf %713, %720 : vector<8x32xf32>
    %722 = arith.mulf %721, %721 : vector<8x32xf32>
    %cst_314 = arith.constant dense<0.000000e+00> : vector<8xf32>
    %723 = vector.multi_reduction <add>, %722, %cst_314 [1] : vector<8x32xf32> to vector<8xf32>
    %724 = vector.shape_cast %723 : vector<8xf32> to vector<8x1xf32>
    %cst_315 = arith.constant 0.0322580636 : f32
    %725 = vector.broadcast %cst_315 : f32 to vector<8x1xf32>
    %726 = arith.mulf %724, %725 : vector<8x1xf32>
    %727 = math.sqrt %726 : vector<8x1xf32>
    %cst_316 = arith.constant 9.99999997E-7 : f32
    %728 = vector.broadcast %cst_316 : f32 to vector<8x1xf32>
    %729 = arith.addf %727, %728 : vector<8x1xf32>
    %730 = vector.broadcast %729 : vector<8x1xf32> to vector<8x32xf32>
    %731 = arith.divf %721, %730 : vector<8x32xf32>
    %732 = vector.broadcast %714 : vector<1x32xf32> to vector<8x32xf32>
    %733 = arith.mulf %732, %731 : vector<8x32xf32>
    %734 = vector.broadcast %715 : vector<1x32xf32> to vector<8x32xf32>
    %735 = arith.addf %733, %734 : vector<8x32xf32>
    %c1_317 = arith.constant 1 : index
    %c0_318 = arith.constant 0 : index
    %c0_319 = arith.constant 0 : index
    %736 = vector.load %arg21[%c1_317, %c0_318, %c0_319] : memref<2x32x32xf32, #tpu.memory_space<vmem>>, vector<1x32x32xf32>
    %737 = vector.shape_cast %736 : vector<1x32x32xf32> to vector<32x32xf32>
    %cst_320 = arith.constant dense<0.000000e+00> : vector<8x32xf32>
    %738 = tpu.matmul %735, %737, %cst_320 {dimension_numbers = #tpu.dot_dimension_numbers<[1], [0], [0], [1], [0, 0, 1, 1], [], []>} : vector<8x32xf32>, vector<32x32xf32>, vector<8x32xf32> -> vector<8x32xf32>
    %c1_321 = arith.constant 1 : index
    %c0_322 = arith.constant 0 : index
    %c0_323 = arith.constant 0 : index
    %739 = vector.load %arg22[%c1_321, %c0_322, %c0_323] : memref<2x1x32xf32, #tpu.memory_space<vmem>>, vector<1x1x32xf32>
    %740 = vector.shape_cast %739 : vector<1x1x32xf32> to vector<1x32xf32>
    %741 = vector.broadcast %740 : vector<1x32xf32> to vector<8x32xf32>
    %742 = arith.addf %738, %741 : vector<8x32xf32>
    %cst_324 = arith.constant 0.353553385 : f32
    %743 = vector.broadcast %cst_324 : f32 to vector<8x32xf32>
    %744 = arith.mulf %742, %743 : vector<8x32xf32>
    %c1_325 = arith.constant 1 : index
    %c0_326 = arith.constant 0 : index
    %c0_327 = arith.constant 0 : index
    %745 = vector.load %arg23[%c1_325, %c0_326, %c0_327] : memref<2x32x64xf32, #tpu.memory_space<vmem>>, vector<1x32x64xf32>
    %746 = vector.shape_cast %745 : vector<1x32x64xf32> to vector<32x64xf32>
    %cst_328 = arith.constant dense<0.000000e+00> : vector<8x64xf32>
    %747 = tpu.matmul %339, %746, %cst_328 {dimension_numbers = #tpu.dot_dimension_numbers<[1], [0], [0], [1], [0, 0, 1, 1], [], []>} : vector<8x32xf32>, vector<32x64xf32>, vector<8x64xf32> -> vector<8x64xf32>
    %c1_329 = arith.constant 1 : index
    %c0_330 = arith.constant 0 : index
    %c0_331 = arith.constant 0 : index
    %748 = vector.load %arg24[%c1_329, %c0_330, %c0_331] : memref<2x1x64xf32, #tpu.memory_space<vmem>>, vector<1x1x64xf32>
    %749 = vector.shape_cast %748 : vector<1x1x64xf32> to vector<1x64xf32>
    %750 = vector.broadcast %749 : vector<1x64xf32> to vector<8x64xf32>
    %751 = arith.addf %747, %750 : vector<8x64xf32>
    %752 = vector.extract_strided_slice %751 {offsets = [0, 0], sizes = [8, 32], strides = [1, 1]} : vector<8x64xf32> to vector<8x32xf32>
    %753 = vector.extract_strided_slice %751 {offsets = [0, 32], sizes = [8, 32], strides = [1, 1]} : vector<8x64xf32> to vector<8x32xf32>
    %c1_332 = arith.constant 1 : index
    %c0_333 = arith.constant 0 : index
    %c0_334 = arith.constant 0 : index
    %754 = vector.load %arg25[%c1_332, %c0_333, %c0_334] : memref<2x32x32xf32, #tpu.memory_space<vmem>>, vector<1x32x32xf32>
    %755 = vector.shape_cast %754 : vector<1x32x32xf32> to vector<32x32xf32>
    %c1_335 = arith.constant 1 : index
    %c0_336 = arith.constant 0 : index
    %c0_337 = arith.constant 0 : index
    %756 = vector.load %arg26[%c1_335, %c0_336, %c0_337] : memref<2x1x32xf32, #tpu.memory_space<vmem>>, vector<1x1x32xf32>
    %757 = vector.shape_cast %756 : vector<1x1x32xf32> to vector<1x32xf32>
    %758 = vector.extract_strided_slice %744 {offsets = [0, 0], sizes = [8, 8], strides = [1, 1]} : vector<8x32xf32> to vector<8x8xf32>
    %759 = vector.extract_strided_slice %752 {offsets = [0, 0], sizes = [8, 8], strides = [1, 1]} : vector<8x32xf32> to vector<8x8xf32>
    %cst_338 = arith.constant dense<0.000000e+00> : vector<8x8xf32>
    %760 = tpu.matmul %758, %759, %cst_338 {dimension_numbers = #tpu.dot_dimension_numbers<[1], [1], [0], [0], [0, 0, 1, 0], [], []>} : vector<8x8xf32>, vector<8x8xf32>, vector<8x8xf32> -> vector<8x8xf32>
    %cst_339 = arith.constant -1.000000e+09 : f32
    %761 = vector.broadcast %cst_339 : f32 to vector<8x8xf32>
    %762 = arith.select %17, %761, %760 : vector<8x8xi1>, vector<8x8xf32>
    %cst_340 = arith.constant dense<0xFF800000> : vector<8xf32>
    %763 = vector.multi_reduction <maximumf>, %762, %cst_340 [1] : vector<8x8xf32> to vector<8xf32>
    %764 = vector.shape_cast %763 : vector<8xf32> to vector<8x1xf32>
    %765 = vector.broadcast %764 : vector<8x1xf32> to vector<8x8xf32>
    %766 = arith.subf %762, %765 : vector<8x8xf32>
    %767 = math.exp %766 : vector<8x8xf32>
    %cst_341 = arith.constant dense<0.000000e+00> : vector<8xf32>
    %768 = vector.multi_reduction <add>, %767, %cst_341 [1] : vector<8x8xf32> to vector<8xf32>
    %769 = vector.shape_cast %768 : vector<8xf32> to vector<8x1xf32>
    %770 = vector.broadcast %769 : vector<8x1xf32> to vector<8x8xf32>
    %771 = arith.divf %767, %770 : vector<8x8xf32>
    %772 = vector.extract_strided_slice %753 {offsets = [0, 0], sizes = [8, 8], strides = [1, 1]} : vector<8x32xf32> to vector<8x8xf32>
    %cst_342 = arith.constant dense<0.000000e+00> : vector<8x8xf32>
    %773 = tpu.matmul %771, %772, %cst_342 {dimension_numbers = #tpu.dot_dimension_numbers<[1], [0], [0], [1], [0, 0, 1, 1], [], []>} : vector<8x8xf32>, vector<8x8xf32>, vector<8x8xf32> -> vector<8x8xf32>
    %774 = vector.extract_strided_slice %744 {offsets = [0, 8], sizes = [8, 8], strides = [1, 1]} : vector<8x32xf32> to vector<8x8xf32>
    %775 = vector.extract_strided_slice %752 {offsets = [0, 8], sizes = [8, 8], strides = [1, 1]} : vector<8x32xf32> to vector<8x8xf32>
    %cst_343 = arith.constant dense<0.000000e+00> : vector<8x8xf32>
    %776 = tpu.matmul %774, %775, %cst_343 {dimension_numbers = #tpu.dot_dimension_numbers<[1], [1], [0], [0], [0, 0, 1, 0], [], []>} : vector<8x8xf32>, vector<8x8xf32>, vector<8x8xf32> -> vector<8x8xf32>
    %cst_344 = arith.constant -1.000000e+09 : f32
    %777 = vector.broadcast %cst_344 : f32 to vector<8x8xf32>
    %778 = arith.select %17, %777, %776 : vector<8x8xi1>, vector<8x8xf32>
    %cst_345 = arith.constant dense<0xFF800000> : vector<8xf32>
    %779 = vector.multi_reduction <maximumf>, %778, %cst_345 [1] : vector<8x8xf32> to vector<8xf32>
    %780 = vector.shape_cast %779 : vector<8xf32> to vector<8x1xf32>
    %781 = vector.broadcast %780 : vector<8x1xf32> to vector<8x8xf32>
    %782 = arith.subf %778, %781 : vector<8x8xf32>
    %783 = math.exp %782 : vector<8x8xf32>
    %cst_346 = arith.constant dense<0.000000e+00> : vector<8xf32>
    %784 = vector.multi_reduction <add>, %783, %cst_346 [1] : vector<8x8xf32> to vector<8xf32>
    %785 = vector.shape_cast %784 : vector<8xf32> to vector<8x1xf32>
    %786 = vector.broadcast %785 : vector<8x1xf32> to vector<8x8xf32>
    %787 = arith.divf %783, %786 : vector<8x8xf32>
    %788 = vector.extract_strided_slice %753 {offsets = [0, 8], sizes = [8, 8], strides = [1, 1]} : vector<8x32xf32> to vector<8x8xf32>
    %cst_347 = arith.constant dense<0.000000e+00> : vector<8x8xf32>
    %789 = tpu.matmul %787, %788, %cst_347 {dimension_numbers = #tpu.dot_dimension_numbers<[1], [0], [0], [1], [0, 0, 1, 1], [], []>} : vector<8x8xf32>, vector<8x8xf32>, vector<8x8xf32> -> vector<8x8xf32>
    %790 = vector.extract_strided_slice %744 {offsets = [0, 16], sizes = [8, 8], strides = [1, 1]} : vector<8x32xf32> to vector<8x8xf32>
    %791 = vector.extract_strided_slice %752 {offsets = [0, 16], sizes = [8, 8], strides = [1, 1]} : vector<8x32xf32> to vector<8x8xf32>
    %cst_348 = arith.constant dense<0.000000e+00> : vector<8x8xf32>
    %792 = tpu.matmul %790, %791, %cst_348 {dimension_numbers = #tpu.dot_dimension_numbers<[1], [1], [0], [0], [0, 0, 1, 0], [], []>} : vector<8x8xf32>, vector<8x8xf32>, vector<8x8xf32> -> vector<8x8xf32>
    %cst_349 = arith.constant -1.000000e+09 : f32
    %793 = vector.broadcast %cst_349 : f32 to vector<8x8xf32>
    %794 = arith.select %17, %793, %792 : vector<8x8xi1>, vector<8x8xf32>
    %cst_350 = arith.constant dense<0xFF800000> : vector<8xf32>
    %795 = vector.multi_reduction <maximumf>, %794, %cst_350 [1] : vector<8x8xf32> to vector<8xf32>
    %796 = vector.shape_cast %795 : vector<8xf32> to vector<8x1xf32>
    %797 = vector.broadcast %796 : vector<8x1xf32> to vector<8x8xf32>
    %798 = arith.subf %794, %797 : vector<8x8xf32>
    %799 = math.exp %798 : vector<8x8xf32>
    %cst_351 = arith.constant dense<0.000000e+00> : vector<8xf32>
    %800 = vector.multi_reduction <add>, %799, %cst_351 [1] : vector<8x8xf32> to vector<8xf32>
    %801 = vector.shape_cast %800 : vector<8xf32> to vector<8x1xf32>
    %802 = vector.broadcast %801 : vector<8x1xf32> to vector<8x8xf32>
    %803 = arith.divf %799, %802 : vector<8x8xf32>
    %804 = vector.extract_strided_slice %753 {offsets = [0, 16], sizes = [8, 8], strides = [1, 1]} : vector<8x32xf32> to vector<8x8xf32>
    %cst_352 = arith.constant dense<0.000000e+00> : vector<8x8xf32>
    %805 = tpu.matmul %803, %804, %cst_352 {dimension_numbers = #tpu.dot_dimension_numbers<[1], [0], [0], [1], [0, 0, 1, 1], [], []>} : vector<8x8xf32>, vector<8x8xf32>, vector<8x8xf32> -> vector<8x8xf32>
    %806 = vector.extract_strided_slice %744 {offsets = [0, 24], sizes = [8, 8], strides = [1, 1]} : vector<8x32xf32> to vector<8x8xf32>
    %807 = vector.extract_strided_slice %752 {offsets = [0, 24], sizes = [8, 8], strides = [1, 1]} : vector<8x32xf32> to vector<8x8xf32>
    %cst_353 = arith.constant dense<0.000000e+00> : vector<8x8xf32>
    %808 = tpu.matmul %806, %807, %cst_353 {dimension_numbers = #tpu.dot_dimension_numbers<[1], [1], [0], [0], [0, 0, 1, 0], [], []>} : vector<8x8xf32>, vector<8x8xf32>, vector<8x8xf32> -> vector<8x8xf32>
    %cst_354 = arith.constant -1.000000e+09 : f32
    %809 = vector.broadcast %cst_354 : f32 to vector<8x8xf32>
    %810 = arith.select %17, %809, %808 : vector<8x8xi1>, vector<8x8xf32>
    %cst_355 = arith.constant dense<0xFF800000> : vector<8xf32>
    %811 = vector.multi_reduction <maximumf>, %810, %cst_355 [1] : vector<8x8xf32> to vector<8xf32>
    %812 = vector.shape_cast %811 : vector<8xf32> to vector<8x1xf32>
    %813 = vector.broadcast %812 : vector<8x1xf32> to vector<8x8xf32>
    %814 = arith.subf %810, %813 : vector<8x8xf32>
    %815 = math.exp %814 : vector<8x8xf32>
    %cst_356 = arith.constant dense<0.000000e+00> : vector<8xf32>
    %816 = vector.multi_reduction <add>, %815, %cst_356 [1] : vector<8x8xf32> to vector<8xf32>
    %817 = vector.shape_cast %816 : vector<8xf32> to vector<8x1xf32>
    %818 = vector.broadcast %817 : vector<8x1xf32> to vector<8x8xf32>
    %819 = arith.divf %815, %818 : vector<8x8xf32>
    %820 = vector.extract_strided_slice %753 {offsets = [0, 24], sizes = [8, 8], strides = [1, 1]} : vector<8x32xf32> to vector<8x8xf32>
    %cst_357 = arith.constant dense<0.000000e+00> : vector<8x8xf32>
    %821 = tpu.matmul %819, %820, %cst_357 {dimension_numbers = #tpu.dot_dimension_numbers<[1], [0], [0], [1], [0, 0, 1, 1], [], []>} : vector<8x8xf32>, vector<8x8xf32>, vector<8x8xf32> -> vector<8x8xf32>
    %822 = tpu.concatenate %773, %789, %805, %821 in 1 : vector<8x8xf32>, vector<8x8xf32>, vector<8x8xf32>, vector<8x8xf32> -> vector<8x32xf32>
    %cst_358 = arith.constant dense<0.000000e+00> : vector<8x32xf32>
    %823 = tpu.matmul %822, %755, %cst_358 {dimension_numbers = #tpu.dot_dimension_numbers<[1], [0], [0], [1], [0, 0, 1, 1], [], []>} : vector<8x32xf32>, vector<32x32xf32>, vector<8x32xf32> -> vector<8x32xf32>
    %824 = vector.broadcast %757 : vector<1x32xf32> to vector<8x32xf32>
    %825 = arith.addf %823, %824 : vector<8x32xf32>
    %826 = arith.addf %713, %825 : vector<8x32xf32>
    %827 = vector.extract_strided_slice %604 {offsets = [2, 0], sizes = [1, 32], strides = [1, 1]} : vector<3x32xf32> to vector<1x32xf32>
    %828 = vector.extract_strided_slice %606 {offsets = [2, 0], sizes = [1, 32], strides = [1, 1]} : vector<3x32xf32> to vector<1x32xf32>
    %cst_359 = arith.constant dense<0.000000e+00> : vector<8xf32>
    %829 = vector.multi_reduction <add>, %826, %cst_359 [1] : vector<8x32xf32> to vector<8xf32>
    %830 = vector.shape_cast %829 : vector<8xf32> to vector<8x1xf32>
    %cst_360 = arith.constant 3.200000e+01 : f32
    %831 = vector.broadcast %cst_360 : f32 to vector<8x1xf32>
    %832 = arith.divf %830, %831 : vector<8x1xf32>
    %833 = vector.broadcast %832 : vector<8x1xf32> to vector<8x32xf32>
    %834 = arith.subf %826, %833 : vector<8x32xf32>
    %835 = arith.mulf %834, %834 : vector<8x32xf32>
    %cst_361 = arith.constant dense<0.000000e+00> : vector<8xf32>
    %836 = vector.multi_reduction <add>, %835, %cst_361 [1] : vector<8x32xf32> to vector<8xf32>
    %837 = vector.shape_cast %836 : vector<8xf32> to vector<8x1xf32>
    %cst_362 = arith.constant 0.0322580636 : f32
    %838 = vector.broadcast %cst_362 : f32 to vector<8x1xf32>
    %839 = arith.mulf %837, %838 : vector<8x1xf32>
    %840 = math.sqrt %839 : vector<8x1xf32>
    %cst_363 = arith.constant 9.99999997E-7 : f32
    %841 = vector.broadcast %cst_363 : f32 to vector<8x1xf32>
    %842 = arith.addf %840, %841 : vector<8x1xf32>
    %843 = vector.broadcast %842 : vector<8x1xf32> to vector<8x32xf32>
    %844 = arith.divf %834, %843 : vector<8x32xf32>
    %845 = vector.broadcast %827 : vector<1x32xf32> to vector<8x32xf32>
    %846 = arith.mulf %845, %844 : vector<8x32xf32>
    %847 = vector.broadcast %828 : vector<1x32xf32> to vector<8x32xf32>
    %848 = arith.addf %846, %847 : vector<8x32xf32>
    %c1_364 = arith.constant 1 : index
    %c0_365 = arith.constant 0 : index
    %c0_366 = arith.constant 0 : index
    %849 = vector.load %arg27[%c1_364, %c0_365, %c0_366] : memref<2x32x64xf32, #tpu.memory_space<vmem>>, vector<1x32x64xf32>
    %850 = vector.shape_cast %849 : vector<1x32x64xf32> to vector<32x64xf32>
    %c1_367 = arith.constant 1 : index
    %c0_368 = arith.constant 0 : index
    %c0_369 = arith.constant 0 : index
    %851 = vector.load %arg28[%c1_367, %c0_368, %c0_369] : memref<2x1x64xf32, #tpu.memory_space<vmem>>, vector<1x1x64xf32>
    %852 = vector.shape_cast %851 : vector<1x1x64xf32> to vector<1x64xf32>
    %c1_370 = arith.constant 1 : index
    %c0_371 = arith.constant 0 : index
    %c0_372 = arith.constant 0 : index
    %853 = vector.load %arg29[%c1_370, %c0_371, %c0_372] : memref<2x64x32xf32, #tpu.memory_space<vmem>>, vector<1x64x32xf32>
    %854 = vector.shape_cast %853 : vector<1x64x32xf32> to vector<64x32xf32>
    %c1_373 = arith.constant 1 : index
    %c0_374 = arith.constant 0 : index
    %c0_375 = arith.constant 0 : index
    %855 = vector.load %arg30[%c1_373, %c0_374, %c0_375] : memref<2x1x32xf32, #tpu.memory_space<vmem>>, vector<1x1x32xf32>
    %856 = vector.shape_cast %855 : vector<1x1x32xf32> to vector<1x32xf32>
    %cst_376 = arith.constant dense<0.000000e+00> : vector<8x64xf32>
    %857 = tpu.matmul %848, %850, %cst_376 {dimension_numbers = #tpu.dot_dimension_numbers<[1], [0], [0], [1], [0, 0, 1, 1], [], []>} : vector<8x32xf32>, vector<32x64xf32>, vector<8x64xf32> -> vector<8x64xf32>
    %858 = vector.broadcast %852 : vector<1x64xf32> to vector<8x64xf32>
    %859 = arith.addf %857, %858 : vector<8x64xf32>
    %cst_377 = arith.constant 0.000000e+00 : f32
    %860 = vector.broadcast %cst_377 : f32 to vector<8x64xf32>
    %861 = arith.maximumf %859, %860 : vector<8x64xf32>
    %cst_378 = arith.constant dense<0.000000e+00> : vector<8x32xf32>
    %862 = tpu.matmul %861, %854, %cst_378 {dimension_numbers = #tpu.dot_dimension_numbers<[1], [0], [0], [1], [0, 0, 1, 1], [], []>} : vector<8x64xf32>, vector<64x32xf32>, vector<8x32xf32> -> vector<8x32xf32>
    %863 = vector.broadcast %856 : vector<1x32xf32> to vector<8x32xf32>
    %864 = arith.addf %862, %863 : vector<8x32xf32>
    %865 = arith.addf %826, %864 : vector<8x32xf32>
    %c0_379 = arith.constant 0 : index
    %c0_380 = arith.constant 0 : index
    %866 = vector.load %arg33[%c0_379, %c0_380] : memref<1x32xf32, #tpu.memory_space<vmem>>, vector<1x32xf32>
    %c0_381 = arith.constant 0 : index
    %c0_382 = arith.constant 0 : index
    %867 = vector.load %arg34[%c0_381, %c0_382] : memref<1x32xf32, #tpu.memory_space<vmem>>, vector<1x32xf32>
    %cst_383 = arith.constant dense<0.000000e+00> : vector<8xf32>
    %868 = vector.multi_reduction <add>, %865, %cst_383 [1] : vector<8x32xf32> to vector<8xf32>
    %869 = vector.shape_cast %868 : vector<8xf32> to vector<8x1xf32>
    %cst_384 = arith.constant 3.200000e+01 : f32
    %870 = vector.broadcast %cst_384 : f32 to vector<8x1xf32>
    %871 = arith.divf %869, %870 : vector<8x1xf32>
    %872 = vector.broadcast %871 : vector<8x1xf32> to vector<8x32xf32>
    %873 = arith.subf %865, %872 : vector<8x32xf32>
    %874 = arith.mulf %873, %873 : vector<8x32xf32>
    %cst_385 = arith.constant dense<0.000000e+00> : vector<8xf32>
    %875 = vector.multi_reduction <add>, %874, %cst_385 [1] : vector<8x32xf32> to vector<8xf32>
    %876 = vector.shape_cast %875 : vector<8xf32> to vector<8x1xf32>
    %cst_386 = arith.constant 0.0322580636 : f32
    %877 = vector.broadcast %cst_386 : f32 to vector<8x1xf32>
    %878 = arith.mulf %876, %877 : vector<8x1xf32>
    %879 = math.sqrt %878 : vector<8x1xf32>
    %cst_387 = arith.constant 9.99999997E-7 : f32
    %880 = vector.broadcast %cst_387 : f32 to vector<8x1xf32>
    %881 = arith.addf %879, %880 : vector<8x1xf32>
    %882 = vector.broadcast %881 : vector<8x1xf32> to vector<8x32xf32>
    %883 = arith.divf %873, %882 : vector<8x32xf32>
    %884 = vector.broadcast %866 : vector<1x32xf32> to vector<8x32xf32>
    %885 = arith.mulf %884, %883 : vector<8x32xf32>
    %886 = vector.broadcast %867 : vector<1x32xf32> to vector<8x32xf32>
    %887 = arith.addf %885, %886 : vector<8x32xf32>
    %c0_388 = arith.constant 0 : index
    %c0_389 = arith.constant 0 : index
    %c0_390 = arith.constant 0 : index
    %888 = vector.load %arg35[%c0_388, %c0_389, %c0_390] : memref<1x8x32xf32, #tpu.memory_space<vmem>>, vector<1x8x32xf32>
    %889 = vector.shape_cast %888 : vector<1x8x32xf32> to vector<8x32xf32>
    %890 = vector.shape_cast %887 : vector<8x32xf32> to vector<1x8x32xf32>
    tpu.vector_store %arg35[%c0_388, %c0_389, %c0_390], %890 {strides = array<i32>} : memref<1x8x32xf32, #tpu.memory_space<vmem>>, vector<1x8x32xf32>,
    return
  }
  func.func @transform_0(%arg0: i32) -> (i32, i32, i32) {
    %c0_i32 = arith.constant 0 : i32
    %c0_i32_0 = arith.constant 0 : i32
    %c0_i32_1 = arith.constant 0 : i32
    return %arg0, %c0_i32, %c0_i32_0 : i32, i32, i32
  }
  func.func @transform_1(%arg0: i32) -> (i32, i32, i32) {
    %c0_i32 = arith.constant 0 : i32
    %c0_i32_0 = arith.constant 0 : i32
    %c0_i32_1 = arith.constant 0 : i32
    return %arg0, %c0_i32, %c0_i32_0 : i32, i32, i32
  }
  func.func @transform_2(%arg0: i32) -> (i32, i32, i32) {
    %c0_i32 = arith.constant 0 : i32
    %c0_i32_0 = arith.constant 0 : i32
    %c0_i32_1 = arith.constant 0 : i32
    return %arg0, %c0_i32, %c0_i32_0 : i32, i32, i32
  }
  func.func @transform_3(%arg0: i32) -> (i32, i32, i32) {
    %c0_i32 = arith.constant 0 : i32
    %c0_i32_0 = arith.constant 0 : i32
    %c0_i32_1 = arith.constant 0 : i32
    return %arg0, %c0_i32, %c0_i32_0 : i32, i32, i32
  }
  func.func @transform_4(%arg0: i32) -> (i32, i32, i32) {
    %c0_i32 = arith.constant 0 : i32
    %c0_i32_0 = arith.constant 0 : i32
    %c0_i32_1 = arith.constant 0 : i32
    %c0_i32_2 = arith.constant 0 : i32
    return %c0_i32, %c0_i32_0, %c0_i32_1 : i32, i32, i32
  }
  func.func @transform_5(%arg0: i32) -> (i32, i32, i32) {
    %c0_i32 = arith.constant 0 : i32
    %c0_i32_0 = arith.constant 0 : i32
    %c0_i32_1 = arith.constant 0 : i32
    %c0_i32_2 = arith.constant 0 : i32
    return %c0_i32, %c0_i32_0, %c0_i32_1 : i32, i32, i32
  }
  func.func @transform_6(%arg0: i32) -> (i32, i32, i32) {
    %c0_i32 = arith.constant 0 : i32
    %c0_i32_0 = arith.constant 0 : i32
    %c0_i32_1 = arith.constant 0 : i32
    %c0_i32_2 = arith.constant 0 : i32
    return %c0_i32, %c0_i32_0, %c0_i32_1 : i32, i32, i32
  }
  func.func @transform_7(%arg0: i32) -> (i32, i32, i32) {
    %c0_i32 = arith.constant 0 : i32
    %c0_i32_0 = arith.constant 0 : i32
    %c0_i32_1 = arith.constant 0 : i32
    %c0_i32_2 = arith.constant 0 : i32
    return %c0_i32, %c0_i32_0, %c0_i32_1 : i32, i32, i32
  }
  func.func @transform_8(%arg0: i32) -> (i32, i32, i32) {
    %c0_i32 = arith.constant 0 : i32
    %c0_i32_0 = arith.constant 0 : i32
    %c0_i32_1 = arith.constant 0 : i32
    %c0_i32_2 = arith.constant 0 : i32
    return %c0_i32, %c0_i32_0, %c0_i32_1 : i32, i32, i32
  }
  func.func @transform_9(%arg0: i32) -> (i32, i32, i32) {
    %c0_i32 = arith.constant 0 : i32
    %c0_i32_0 = arith.constant 0 : i32
    %c0_i32_1 = arith.constant 0 : i32
    %c0_i32_2 = arith.constant 0 : i32
    return %c0_i32, %c0_i32_0, %c0_i32_1 : i32, i32, i32
  }
  func.func @transform_10(%arg0: i32) -> (i32, i32, i32) {
    %c0_i32 = arith.constant 0 : i32
    %c0_i32_0 = arith.constant 0 : i32
    %c0_i32_1 = arith.constant 0 : i32
    %c0_i32_2 = arith.constant 0 : i32
    return %c0_i32, %c0_i32_0, %c0_i32_1 : i32, i32, i32
  }
  func.func @transform_11(%arg0: i32) -> (i32, i32, i32) {
    %c0_i32 = arith.constant 0 : i32
    %c0_i32_0 = arith.constant 0 : i32
    %c0_i32_1 = arith.constant 0 : i32
    %c0_i32_2 = arith.constant 0 : i32
    return %c0_i32, %c0_i32_0, %c0_i32_1 : i32, i32, i32
  }
  func.func @transform_12(%arg0: i32) -> (i32, i32, i32) {
    %c0_i32 = arith.constant 0 : i32
    %c0_i32_0 = arith.constant 0 : i32
    %c0_i32_1 = arith.constant 0 : i32
    %c0_i32_2 = arith.constant 0 : i32
    return %c0_i32, %c0_i32_0, %c0_i32_1 : i32, i32, i32
  }
  func.func @transform_13(%arg0: i32) -> (i32, i32, i32) {
    %c0_i32 = arith.constant 0 : i32
    %c0_i32_0 = arith.constant 0 : i32
    %c0_i32_1 = arith.constant 0 : i32
    %c0_i32_2 = arith.constant 0 : i32
    return %c0_i32, %c0_i32_0, %c0_i32_1 : i32, i32, i32
  }
  func.func @transform_14(%arg0: i32) -> (i32, i32) {
    %c0_i32 = arith.constant 0 : i32
    %c0_i32_0 = arith.constant 0 : i32
    %c0_i32_1 = arith.constant 0 : i32
    return %c0_i32, %c0_i32_0 : i32, i32
  }
  func.func @transform_15(%arg0: i32) -> (i32, i32) {
    %c0_i32 = arith.constant 0 : i32
    %c0_i32_0 = arith.constant 0 : i32
    %c0_i32_1 = arith.constant 0 : i32
    return %c0_i32, %c0_i32_0 : i32, i32
  }
  func.func @transform_16(%arg0: i32) -> (i32, i32, i32) {
    %c0_i32 = arith.constant 0 : i32
    %c0_i32_0 = arith.constant 0 : i32
    %c0_i32_1 = arith.constant 0 : i32
    %c0_i32_2 = arith.constant 0 : i32
    return %c0_i32, %c0_i32_0, %c0_i32_1 : i32, i32, i32
  }
  func.func @transform_17(%arg0: i32) -> (i32, i32, i32) {
    %c0_i32 = arith.constant 0 : i32
    %c0_i32_0 = arith.constant 0 : i32
    %c0_i32_1 = arith.constant 0 : i32
    %c0_i32_2 = arith.constant 0 : i32
    return %c0_i32, %c0_i32_0, %c0_i32_1 : i32, i32, i32
  }
  func.func @transform_18(%arg0: i32) -> (i32, i32, i32) {
    %c0_i32 = arith.constant 0 : i32
    %c0_i32_0 = arith.constant 0 : i32
    %c0_i32_1 = arith.constant 0 : i32
    %c0_i32_2 = arith.constant 0 : i32
    return %c0_i32, %c0_i32_0, %c0_i32_1 : i32, i32, i32
  }
  func.func @transform_19(%arg0: i32) -> (i32, i32, i32) {
    %c0_i32 = arith.constant 0 : i32
    %c0_i32_0 = arith.constant 0 : i32
    %c0_i32_1 = arith.constant 0 : i32
    %c0_i32_2 = arith.constant 0 : i32
    return %c0_i32, %c0_i32_0, %c0_i32_1 : i32, i32, i32
  }
  func.func @transform_20(%arg0: i32) -> (i32, i32, i32) {
    %c0_i32 = arith.constant 0 : i32
    %c0_i32_0 = arith.constant 0 : i32
    %c0_i32_1 = arith.constant 0 : i32
    %c0_i32_2 = arith.constant 0 : i32
    return %c0_i32, %c0_i32_0, %c0_i32_1 : i32, i32, i32
  }
  func.func @transform_21(%arg0: i32) -> (i32, i32, i32) {
    %c0_i32 = arith.constant 0 : i32
    %c0_i32_0 = arith.constant 0 : i32
    %c0_i32_1 = arith.constant 0 : i32
    %c0_i32_2 = arith.constant 0 : i32
    return %c0_i32, %c0_i32_0, %c0_i32_1 : i32, i32, i32
  }
  func.func @transform_22(%arg0: i32) -> (i32, i32, i32) {
    %c0_i32 = arith.constant 0 : i32
    %c0_i32_0 = arith.constant 0 : i32
    %c0_i32_1 = arith.constant 0 : i32
    %c0_i32_2 = arith.constant 0 : i32
    return %c0_i32, %c0_i32_0, %c0_i32_1 : i32, i32, i32
  }
  func.func @transform_23(%arg0: i32) -> (i32, i32, i32) {
    %c0_i32 = arith.constant 0 : i32
    %c0_i32_0 = arith.constant 0 : i32
    %c0_i32_1 = arith.constant 0 : i32
    %c0_i32_2 = arith.constant 0 : i32
    return %c0_i32, %c0_i32_0, %c0_i32_1 : i32, i32, i32
  }
  func.func @transform_24(%arg0: i32) -> (i32, i32, i32) {
    %c0_i32 = arith.constant 0 : i32
    %c0_i32_0 = arith.constant 0 : i32
    %c0_i32_1 = arith.constant 0 : i32
    %c0_i32_2 = arith.constant 0 : i32
    return %c0_i32, %c0_i32_0, %c0_i32_1 : i32, i32, i32
  }
  func.func @transform_25(%arg0: i32) -> (i32, i32, i32) {
    %c0_i32 = arith.constant 0 : i32
    %c0_i32_0 = arith.constant 0 : i32
    %c0_i32_1 = arith.constant 0 : i32
    %c0_i32_2 = arith.constant 0 : i32
    return %c0_i32, %c0_i32_0, %c0_i32_1 : i32, i32, i32
  }
  func.func @transform_26(%arg0: i32) -> (i32, i32, i32) {
    %c0_i32 = arith.constant 0 : i32
    %c0_i32_0 = arith.constant 0 : i32
    %c0_i32_1 = arith.constant 0 : i32
    %c0_i32_2 = arith.constant 0 : i32
    return %c0_i32, %c0_i32_0, %c0_i32_1 : i32, i32, i32
  }
  func.func @transform_27(%arg0: i32) -> (i32, i32, i32) {
    %c0_i32 = arith.constant 0 : i32
    %c0_i32_0 = arith.constant 0 : i32
    %c0_i32_1 = arith.constant 0 : i32
    %c0_i32_2 = arith.constant 0 : i32
    return %c0_i32, %c0_i32_0, %c0_i32_1 : i32, i32, i32
  }
  func.func @transform_28(%arg0: i32) -> (i32, i32, i32) {
    %c0_i32 = arith.constant 0 : i32
    %c0_i32_0 = arith.constant 0 : i32
    %c0_i32_1 = arith.constant 0 : i32
    %c0_i32_2 = arith.constant 0 : i32
    return %c0_i32, %c0_i32_0, %c0_i32_1 : i32, i32, i32
  }
  func.func @transform_29(%arg0: i32) -> (i32, i32, i32) {
    %c0_i32 = arith.constant 0 : i32
    %c0_i32_0 = arith.constant 0 : i32
    %c0_i32_1 = arith.constant 0 : i32
    %c0_i32_2 = arith.constant 0 : i32
    return %c0_i32, %c0_i32_0, %c0_i32_1 : i32, i32, i32
  }
  func.func @transform_30(%arg0: i32) -> (i32, i32, i32) {
    %c0_i32 = arith.constant 0 : i32
    %c0_i32_0 = arith.constant 0 : i32
    %c0_i32_1 = arith.constant 0 : i32
    %c0_i32_2 = arith.constant 0 : i32
    return %c0_i32, %c0_i32_0, %c0_i32_1 : i32, i32, i32
  }
  func.func @transform_31(%arg0: i32) -> (i32, i32, i32) {
    %c0_i32 = arith.constant 0 : i32
    %c0_i32_0 = arith.constant 0 : i32
    %c0_i32_1 = arith.constant 0 : i32
    %c0_i32_2 = arith.constant 0 : i32
    return %c0_i32, %c0_i32_0, %c0_i32_1 : i32, i32, i32
  }
  func.func @transform_32(%arg0: i32) -> (i32, i32) {
    %c0_i32 = arith.constant 0 : i32
    %c0_i32_0 = arith.constant 0 : i32
    %c0_i32_1 = arith.constant 0 : i32
    return %c0_i32, %c0_i32_0 : i32, i32
  }
  func.func @transform_33(%arg0: i32) -> (i32, i32) {
    %c0_i32 = arith.constant 0 : i32
    %c0_i32_0 = arith.constant 0 : i32
    %c0_i32_1 = arith.constant 0 : i32
    return %c0_i32, %c0_i32_0 : i32, i32
  }
  func.func @transform_34(%arg0: i32) -> (i32, i32, i32) {
    %c0_i32 = arith.constant 0 : i32
    %c0_i32_0 = arith.constant 0 : i32
    %c0_i32_1 = arith.constant 0 : i32
    return %arg0, %c0_i32, %c0_i32_0 : i32, i32, i32
  }
}

</mosaic_0001>

<bundles_post_ra>
// kernel: encoder_decoder_forward.1
= control target key start
LH: loop header
LB: loop body
LE: loop exit
PB: predicated region body
PF: predicated region fallthrough
CT: control target
= control target key end

     0   :  { %s8992_s6 = smov 1   ;;  %s8993_s10 = smov 2   ;;  %s10220_s0 = inlined_call_operand.smem [shape: u32[35], index: -1, kind: input, shape index: {}] }
   0x1   :  { %s9052_s5 = sld [smem:[%s10220_s0]]   ;;  %s8994_s14 = smov 3  }
   0x2   :  { %s9057_s9 = sld [smem:[%s10220_s0 + %s8992_s6]]   ;;  %s8995_s18 = smov 4  }
   0x3   :  { %s9062_s13 = sld [smem:[%s10220_s0 + %s8993_s10]]   ;;  %s8996_s22 = smov 5  }
   0x4   :  { %s9067_s17 = sld [smem:[%s10220_s0 + %s8994_s14]]   ;;  %s8997_s26 = smov 6  }
   0x5   :  { %s9072_s21 = sld [smem:[%s10220_s0 + %s8995_s18]]   ;;  %s8998_s30 = smov 7  }
   0x6   :  { %s9077_s25 = sld [smem:[%s10220_s0 + %s8996_s22]]   ;;  %s8999_s4 = smov 8  }
   0x7   :  { %10284 = sst [smem:[#allocation5_spill]] %s9052_s5  ;;  %s9000_s10 = smov 9  }
   0x8   :  { %10285 = sst [smem:[#allocation6_spill]] %s9057_s9  ;;  %s9001_s15 = smov 10  }
   0x9   :  { %10286 = sst [smem:[#allocation7_spill]] %s9062_s13  ;;  %s9002_s20 = smov 11  }
   0xa   :  { %10287 = sst [smem:[#allocation8_spill]] %s9067_s17  ;;  %s9004_s1 = smov 13  }
   0xb   :  { %10288 = sst [smem:[#allocation9_spill]] %s9072_s21  ;;  %s9005_s7 = smov 14  }
   0xc   :  { %10289 = sst [smem:[#allocation10_spill]] %s9077_s25  ;;  %s9007_s22 = smov 16  }
   0xd   :  { %s9082_s29 = sld [smem:[%s10220_s0 + %s8997_s26]]   ;;  %s9003_s26 = smov 12  }
   0xe   :  { %s9087_s3 = sld [smem:[%s10220_s0 + %s8998_s30]]   ;;  %s9008_s28 = smov 17  }
   0xf   :  { %s9092_s8 = sld [smem:[%s10220_s0 + %s8999_s4]]  }
  0x10   :  { %s9097_s14 = sld [smem:[%s10220_s0 + %s9000_s10]]  }
  0x11   :  { %s9102_s19 = sld [smem:[%s10220_s0 + %s9001_s15]]   ;;  %s9006_s15 = smov 15  }
  0x12   :  { %s9107_s24 = sld [smem:[%s10220_s0 + %s9002_s20]]  }
  0x13   :  { %10290 = sst [smem:[#allocation11_spill]] %s9082_s29 }
  0x14   :  { %10291 = sst [smem:[#allocation12_spill]] %s9087_s3 }
  0x15   :  { %10292 = sst [smem:[#allocation13_spill]] %s9092_s8 }
  0x16   :  { %10293 = sst [smem:[#allocation14_spill]] %s9097_s14 }
  0x17   :  { %10294 = sst [smem:[#allocation15_spill]] %s9102_s19 }
  0x18   :  { %10295 = sst [smem:[#allocation16_spill]] %s9107_s24 }
  0x19   :  { %s9112_s30 = sld [smem:[%s10220_s0 + %s9003_s26]]  }
  0x1a   :  { %s9117_s6 = sld [smem:[%s10220_s0 + %s9004_s1]]  }
  0x1b   :  { %s9122_s12 = sld [smem:[%s10220_s0 + %s9005_s7]]   ;;  %s9009_s7 = smov 18  }
  0x1c   :  { %s9127_s20 = sld [smem:[%s10220_s0 + %s9006_s15]]   ;;  %s9010_s15 = smov 19  }
  0x1d   :  { %s9132_s27 = sld [smem:[%s10220_s0 + %s9007_s22]]   ;;  %s9011_s22 = smov 20  }
  0x1e   :  { %s9137_s4 = sld [smem:[%s10220_s0 + %s9008_s28]]   ;;  %s9012_s28 = smov 21  }
  0x1f   :  { %10296 = sst [smem:[#allocation17_spill]] %s9112_s30 }
  0x20   :  { %10297 = sst [smem:[#allocation18_spill]] %s9117_s6 }
  0x21   :  { %10298 = sst [smem:[#allocation19_spill]] %s9122_s12 }
  0x22   :  { %10299 = sst [smem:[#allocation20_spill]] %s9127_s20 }
  0x23   :  { %s9142_s12 = sld [smem:[%s10220_s0 + %s9009_s7]]   ;;  %s9013_s7 = smov 22  }
  0x24   :  { %10300 = sst [smem:[#allocation21_spill]] %s9137_s4 }
  0x25   :  { %s9147_s20 = sld [smem:[%s10220_s0 + %s9010_s15]]   ;;  %s9014_s15 = smov 23  }
  0x26   :  { %s9152_s17 = sld [smem:[%s10220_s0 + %s9011_s22]]   ;;  %s9015_s22 = smov 24  }
  0x27   :  { %s9157_s4 = sld [smem:[%s10220_s0 + %s9012_s28]]   ;;  %s9016_s28 = smov 25  }
  0x29   :  { %10301 = sst [smem:[#allocation22_spill]] %s9142_s12 }
  0x2a   :  { %s9162_s12 = sld [smem:[%s10220_s0 + %s9013_s7]]   ;;  %s9017_s7 = smov 26  }
  0x2b   :  { %10302 = sst [smem:[#allocation23_spill]] %s9147_s20 }
  0x2c   :  { %10303 = sst [smem:[#allocation24_spill]] %s9152_s17 }
  0x2d   :  { %10304 = sst [smem:[#allocation25_spill]] %s9157_s4 }
  0x2e   :  { %s9167_s20 = sld [smem:[%s10220_s0 + %s9014_s15]]   ;;  %s9018_s15 = smov 27  }
  0x2f   :  { %s9172_s17 = sld [smem:[%s10220_s0 + %s9015_s22]]   ;;  %s9019_s22 = smov 28  }
  0x30   :  { %10305 = sst [smem:[#allocation26_spill]] %s9162_s12 }
  0x31   :  { %s9177_s4 = sld [smem:[%s10220_s0 + %s9016_s28]]   ;;  %s9020_s28 = smov 29  }
  0x32   :  { %s9182_s12 = sld [smem:[%s10220_s0 + %s9017_s7]]   ;;  %s9021_s7 = smov 30  }
  0x34   :  { %10306 = sst [smem:[#allocation27_spill]] %s9167_s20 }
  0x35   :  { %10307 = sst [smem:[#allocation28_spill]] %s9172_s17 }
  0x36   :  { %s9187_s20 = sld [smem:[%s10220_s0 + %s9018_s15]]   ;;  %s9022_s15 = smov 31  }
  0x37   :  { %10308 = sst [smem:[#allocation29_spill]] %s9177_s4 }
  0x38   :  { %10309 = sst [smem:[#allocation30_spill]] %s9182_s12 }
  0x39   :  { %s9192_s17 = sld [smem:[%s10220_s0 + %s9019_s22]]   ;;  %s9023_s22 = smov 32  }
  0x3a   :  { %s9197_s4 = sld [smem:[%s10220_s0 + %s9020_s28]]   ;;  %s9024_s28 = smov 33  }
  0x3b   :  { %s9202_s12 = sld [smem:[%s10220_s0 + %s9021_s7]]   ;;  %s9025_s7 = smov 34  }
  0x3c   :  { %10310 = sst [smem:[#allocation31_spill]] %s9187_s20 }
  0x3d   :  { %s9207_s20 = sld [smem:[%s10220_s0 + %s9022_s15]]  }
  0x3f   :  { %10311 = sst [smem:[#allocation32_spill]] %s9192_s17 }
  0x40   :  { %10312 = sst [smem:[#allocation33_spill]] %s9197_s4 }
  0x41   :  { %10313 = sst [smem:[#allocation34_spill]] %s9202_s12 }
  0x42   :  { %s9212_s17 = sld [smem:[%s10220_s0 + %s9023_s22]]  }
  0x43   :  { %s9217_s4 = sld [smem:[%s10220_s0 + %s9024_s28]]  }
  0x44   :  { %s9222_s12 = sld [smem:[%s10220_s0 + %s9025_s7]]  }
  0x48   :  { %10314 = sst [smem:[#allocation35_spill]] %s9212_s17 }
  0x49   :  { %10315 = sst [smem:[#allocation36_spill]] %s9217_s4 }
  0x4a   :  { %10316 = sst [smem:[#allocation37_spill]] %s9222_s12 }
  0x4b   :  { %74 = vsyncpa [#allocation3], 0 }
  0x4c   :  { %76 = vsyncpa [#allocation3 + $0x1], 0  ;;  %s9224_s15 = smov 0   ;;  %s9226_s16 = smov 0  }
  0x4d   :  { %s9228_s18 = smov 0   ;;  %s9230_s22 = smov 0  }
  0x4e LB: > { %s10317_s24 = sld [smem:[#allocation16_spill]]  ;;  %s10318_s30 = sld [smem:[#allocation17_spill]]  ;;  %s8982_s16 = sphi %s9226_s16, %s10391_s16   ;;  %s8978_s15 = sphi %s9224_s15, %s10390_s15   ;;  %s8990_s22 = sphi %s9230_s22, %s10387_s22   ;;  %s8986_s18 = sphi %s9228_s18, %s10389_s18  }
  0x4f   : > { %s10319_s29 = sld [smem:[#allocation11_spill]]  ;;  %s10320_s19 = sld [smem:[#allocation15_spill]] }
  0x50   : > { %s10321_s14 = sld [smem:[#allocation14_spill]]  ;;  %s10322_s8 = sld [smem:[#allocation13_spill]] }
  0x51   : > { %s10323_s3 = sld [smem:[#allocation12_spill]]  ;;  %s10324_s25 = sld [smem:[#allocation10_spill]] }
  0x52   : > { %s10325_s21 = sld [smem:[#allocation9_spill]]  ;;  %s10326_s6 = sld [smem:[#allocation18_spill]] }
  0x53   : > { %10327 = sst [smem:[#allocation38_spill]] %s8978_s15  ;;  %s9245_s0 = sadd.s32 4294967295, %s8990_s22  }
  0x54   : > { %10328 = sst [smem:[#allocation39_spill]] %s8986_s18  ;;  %s7602_s23 = sadd.s32 4294967294, %s8990_s22  }
  0x55   : > { %10329 = sst [smem:[#allocation40_spill]] %s8990_s22  ;;  %s9249_s26 = sadd.s32 1, %s8990_s22  }
  0x56   : > { %10330 = sst [smem:[#allocation41_spill]] %s9245_s0  ;;  %s823_s28 = sadd.s32 1, %s8986_s18 }
  0x57   : > { %10331 = sst [smem:[#allocation42_spill]] %s9249_s26  ;;  %s820_s1 = ssub.s32 %s8990_s22, %s9249_s26 }
  0x58   : > { %p833_p0 = scmp.ne.s32.totalorder %s8986_s18, %s8982_s16  ;;  %p821_p1 = scmp.eq.s32.totalorder %s820_s1, 0 }
  0x59   : > { %p834_p2 = scmp.eq.s32.totalorder %s9245_s0, 1  ;;  %p839_p3 = scmp.ne.s32.totalorder %s8982_s16, %s8978_s15 }
  0x5a   : > { %p840_p4 = scmp.eq.s32.totalorder %s7602_s23, 1  ;;  %p7605_p7 = scmp.ge.s32.totalorder %s8990_s22, 1 }
  0x5b   : > { %s9260_s2 = scalar_select %p821_p1, %s8986_s18, %s823_s28  }
  0x5c   : > { %p9262_p5 = por %p834_p2, %p833_p0  ;;  %p9266_p6 = por %p840_p4, %p839_p3 }
  0x5d   : > { %10332 = sst [smem:[#allocation43_spill]] %s9260_s2  ;;  %p975_p8 = scmp.lt.s32.totalorder %s8990_s22, 3 }
  0x5e   : > { %s10333_s7 = scalar_select %p9262_p5, 1, 0 }
  0x5f   : > { %s10335_s10 = scalar_select %p9266_p6, 1, 0 }
  0x60   : > { %10334 = sst [smem:[#allocation44_spill]] %s10333_s7  ;;  %p976_p9 = pnand %p7605_p7, %p975_p8 }
  0x61   : > { %10336 = sst [smem:[#allocation45_spill]] %s10335_s10  ;;  %p1071_p10 = scmp.lt.s32.totalorder (!%p976_p9), %s9245_s0, 1  ;;  %vm1100_vm0 = vcmask (!%p976_p9), 261120   ;;  %v1132_v7 = vld [vmem:[%s10325_s21] sm:$0xff] (!%p976_p9)  ;;  %v1133_v8 = vld [vmem:[%s10325_s21 + $0x8] sm:$0xff] (!%p976_p9)  ;;  %v1134_v9 = vld [vmem:[%s10325_s21 + $0x10] sm:$0xff] (!%p976_p9)  ;;  %v1122_v22 = vlaneseq (!%p976_p9) }
  0x62   : > { %979 = sbr.rel (%p976_p9) target bundleno = 13241 (0x33b9), region = 156  ;;  %s10337_s5 = sld [smem:[#allocation5_spill]] (!%p976_p9)  ;;  %v9026_v10 = vmov (!%p976_p9), 0.0|0.0   ;;  %v8539_v11 = vpack.c.bf16 (!%p976_p9), %v1133_v8, %v1132_v7  ;;  %v1135_v12 = vld [vmem:[%s10325_s21 + $0x18] sm:$0xff] (!%p976_p9)  ;;  %vm9027_vm1 = vmmov (!%p976_p9), 0   ;;  %v9028_v13 = vmov (!%p976_p9), 0.0  }
  0x63   : > { %8538 = vmatprep.subr.bf16.mxu1 (!%p976_p9), %v9026_v10  ;;  %8032 = vmatprep.mubr.msk.f32.mxu1 (!%p976_p9), %vm9027_vm1, %v9028_v13  ;;  %v8542_v14 = vpack.c.bf16 (!%p976_p9), %v1135_v12, %v1134_v9  ;;  %v9299_v24 = vshrl.u32 (!%p976_p9), %v1122_v22, 7  ;;  %v9305_v26 = vld [vmem:[%s10318_s30] sm:$0x3] (!%p976_p9)  ;;  %s10238_s1 = smov (!%p976_p9), 96   ;;  %s10262_s2 = smov (!%p976_p9), 80   ;;  %vm1225_vm4 = vcmask (!%p976_p9), 64512  }
  0x64   : > { %8045 = vmatprep.subr.mxu0 (!%p976_p9), %v9028_v13  ;;  %8047 = vmatprep.mubr.msk.f32.mxu0 (!%p976_p9), %vm9027_vm1, %v9028_v13  ;;  %v9308_v27 = vld [vmem:[%s10326_s6] sm:$0x3] (!%p976_p9)  ;;  %s10258_s18 = smov (!%p976_p9), 72   ;;  %s10244_s26 = smov (!%p976_p9), 112   ;;  %vm1900_vm6 = vcmask (!%p976_p9), 130048   ;;  %vm1902_vm7 = vcmask (!%p976_p9), 195584  }
  0x65   : > { %8540 = vmatpush3.bf16.msra.mxu1 (!%p976_p9), %v8539_v11  ;;  %v9302_v25 = vsub.s32 (!%p976_p9), 0, %v9299_v24  ;;  %v7611_v34 = vld [vmem:[%s10324_s25] ss:$0 sm:$0xff] (!%p976_p9)  ;;  %s10338_s13 = sld [smem:[#allocation7_spill]] (!%p976_p9)  ;;  %vm2114_vm10 = vcmask (!%p976_p9), 523264   ;;  %s10346_s9 = sld [smem:[#allocation6_spill]] (!%p976_p9) }
  0x66   : > { %8541 = vmatprep.subr.bf16.mxu1 (!%p976_p9), %v9026_v10  ;;  %s10361_s10 = sld [smem:[#allocation20_spill]] (!%p976_p9)  ;;  %s10362_s15 = sld [smem:[#allocation24_spill]] (!%p976_p9) }
  0x67   : > { %v1125_v28 = vrot.slane (!%p976_p9), %v9305_v26, %v9302_v25  ;;  %v1130_v31 = vrot.slane (!%p976_p9), %v9308_v27, %v9302_v25  ;;  %s10369_s22 = sld [smem:[#allocation29_spill]] (!%p976_p9)  ;;  %s10372_s17 = sld [smem:[#allocation32_spill]] (!%p976_p9) }
  0x69   : > { %s9274_s11 = scalar_select %p1071_p10, %s9245_s0, 1  ;;  %8543 = vmatpush3.bf16.msra.mxu1 %v8542_v14 }
  0x6a   : > { %8035 = vmatprep.subr.mxu1 %v9028_v13 }
  0x6b   : > { %s9277_s23 = sshll.u32 %s9274_s11, 3 }
  0x6c   : > { %s1074_s28 = scalar_lea.vmem %s10337_s5, %s9277_s23  ;;  %s10264_s5 = smov 88  }
  0x6d   : > { %v9281_v0 = vld [vmem:[%s1074_s28] sm:$0xff]  ;;  %s10260_s28 = smov 120   ;;  %s10363_s7 = smov %s10362_s15 }
  0x6e   : > { %v1101_v1 = vsel %vm1100_vm0, %v9281_v0, 0.0 }
  0x6f   : > { %1102 = vadd.xlane.f32.xlu0 %v1101_v1 }
  0xfc   : > { %v1103_v2 = vpop.xlane.xlu0 %1102 }
  0xfd   : > { %v1105_v3 = vmul.f32 0.03125, %v1103_v2 }
  0xff   : > { %v1106_v4 = vsub.f32 %v9281_v0, %v1105_v3 }
 0x101   : > { %v1107_v5 = vmul.f32 %v1106_v4, %v1106_v4 }
 0x103   : > { %v1108_v6 = vsel %vm1100_vm0, %v1107_v5, 0.0 }
 0x104   : > { %1109 = vadd.xlane.f32.xlu0 %v1108_v6 }
 0x191   : > { %v1110_v15 = vpop.xlane.xlu0 %1109 }
 0x192   : > { %v1111_v16 = vmul.f32 0.032258064, %v1110_v15 }
 0x194   : > { %8784 = vrsqrt.f32 %v1111_v16  ;;  %vm1114_vm2 = vcmp.eq.f32.partialorder %v1111_v16, inf  ;;  %v1117_v19 = vand.u32 2147483648, %v1111_v16  ;;  %vm1116_vm3 = vcmp.eq.f32.partialorder %v1111_v16, 0.0 }
 0x19e   : > { %v8785_v17 = vpop.eup %8784 }
 0x19f   : > { %v1113_v18 = vmul.f32 %v8785_v17, %v1111_v16 }
 0x1a1   : > { %v1115_v20 = vsel %vm1114_vm2, %v1111_v16, %v1113_v18 }
 0x1a2   : > { %v1118_v21 = vsel %vm1116_vm3, %v1117_v19, %v1115_v20 }
 0x1a3   : > { %v1119_v23 = vadd.f32 1e-06, %v1118_v21 }
 0x1a5   : > { %8786 = vrcp.f32 %v1119_v23 }
 0x1af   : > { %v8787_v29 = vpop.eup %8786 }
 0x1b0   : > { %v1121_v30 = vmul.f32 %v8787_v29, %v1106_v4 }
 0x1b2   : > { %v1126_v32 = vmul.f32 %v1125_v28, %v1121_v30 }
 0x1b4   : > { %v1131_v33 = vadd.f32 %v1130_v31, %v1126_v32 }
 0x1b6   : > { %8033 = vmatmul.mubr.msk.f32.vlgmr.msra.gmra.mrb[0].mxu1 %vm1100_vm0, %v1131_v33 }
 0x1b7   : > { %8037 = vmatprep.mubr.msk.f32.mxu1 %vm9027_vm1, %v9028_v13 }
 0x289   : > { %v1212_v35 = vpop.f32.mrb[0].mxu1 }
 0x28a   : > { %v9318_v36 = vadd.f32 %v7611_v34, %v1212_v35  ;;  %v8034_v37 = vpop.f32.mrb[1].mxu1 }
 0x28c   : > { %1223 = vrot.lane.b32.xlu1 %v9318_v36, %s10238_s1  ;;  %v1216_v38 = vmul.f32 0.35355338, %v9318_v36  ;;  %s10240_s1 = smov 104  }
 0x28e   : > { %1389 = vrot.lane.b32.xlu0 %v1216_v38, %s10260_s28 }
 0x290   : > { %1391 = vrot.lane.b32.xlu1 %v9318_v36, %s10264_s5 }
 0x294   : > { %1557 = vrot.lane.b32.xlu1 %v9318_v36, %s10262_s2 }
 0x298   : > { %1723 = vrot.lane.b32.xlu1 %v9318_v36, %s10258_s18 }
 0x29c   : > { %1555 = vrot.lane.b32.xlu1 %v1216_v38, %s10244_s26  ;;  %s10246_s26 = smov 56  }
 0x2a0   : > { %1721 = vrot.lane.b32.xlu1 %v1216_v38, %s10240_s1  ;;  %s1081_s1 = scalar_lea.vmem %s10338_s13, %s9274_s11  ;;  %s10242_s11 = smov 64  }
 0x2a1   : > { %v9354_v46 = vld [vmem:[%s1081_s1] ss:$0 sm:$0xff]  ;;  %s10250_s1 = smov 48   ;;  %s10348_s13 = smov 16  }
 0x2a2   : > { %vm1096_vm5 = vcmp.eq.f32.partialorder %v9354_v46, 0.0 }
 0x2fe   : > { %v1224_v39 = vpop.permute.xlu1 %1223 }
 0x2ff   : > { %8036 = vmatpush3.xpose.msk.msra.mxu1 %vm1225_vm4, %v1224_v39 }
 0x300   : > { %8040 = vmatprep.subr.mxu1 %v9028_v13  ;;  %v1390_v41 = vpop.permute.xlu0 %1389 }
 0x302   : > { %v1392_v40 = vpop.permute.xlu1 %1391  ;;  %8038 = vmatmul.mubr.msk.f32.vlgmr.msra.gmra.mrb[2].mxu1 %vm1225_vm4, %v1216_v38 }
 0x303   : > { %8046 = vmatpush3.xpose.msk.msra.mxu0 %vm1225_vm4, %v1392_v40  ;;  %8042 = vmatprep.mubr.msk.f32.mxu1 %vm9027_vm1, %v9028_v13 }
 0x304   : > { %8055 = vmatprep.subr.mxu0 %v9028_v13 }
 0x306   : > { %v1558_v42 = vpop.permute.xlu1 %1557  ;;  %8048 = vmatmul.mubr.msk.f32.vlgmr.msra.gmra.mrb[0].mxu0 %vm1225_vm4, %v1390_v41 }
 0x307   : > { %8056 = vmatpush3.xpose.msk.msra.mxu0 %vm1225_vm4, %v1558_v42  ;;  %8057 = vmatprep.mubr.msk.f32.mxu0 %vm9027_vm1, %v9028_v13  ;;  %v1217_v42 = vld [vmem:[%s10319_s29] sm:$0xff] }
 0x308   : > { %8065 = vmatprep.subr.mxu0 %v9028_v13 }
 0x30a   : > { %v1724_v43 = vpop.permute.xlu1 %1723 }
 0x30e   : > { %v1556_v44 = vpop.permute.xlu1 %1555 }
 0x30f   : > { %8058 = vmatmul.mubr.msk.f32.vlgmr.msra.gmra.mrb[2].mxu0 %vm1225_vm4, %v1556_v44 }
 0x310   : > { %8066 = vmatpush3.xpose.msk.msra.mxu0 %vm1225_vm4, %v1724_v43  ;;  %8067 = vmatprep.mubr.msk.f32.mxu0 %vm9027_vm1, %v9028_v13  ;;  %v1218_v43 = vld [vmem:[%s10319_s29 + $0x8] sm:$0xff] }
 0x311   : > { %8544 = vmatprep.subr.bf16.mxu0 %v9026_v10  ;;  %v8545_v44 = vpack.c.bf16 %v1218_v43, %v1217_v42 }
 0x312   : > { %v1722_v45 = vpop.permute.xlu1 %1721 }
 0x313   : > { %8068 = vmatmul.mubr.msk.f32.vlgmr.msra.gmra.mrb[4].mxu0 %vm1225_vm4, %v1722_v45 }
 0x314   : > { %8083 = vmatprep.mubr.msk.f32.mxu0 %vm9027_vm1, %v9028_v13  ;;  %8546 = vmatpush3.bf16.msra.mxu0 %v8545_v44 }
 0x315   : > { %8547 = vmatprep.subr.bf16.mxu0 %v9026_v10 }
 0x3d5   : > { %v1297_v47 = vpop.f32.mrb[2].mxu1 }
 0x3d6   : > { %v1301_v48 = vsel %vm1096_vm5, -1e+09, %v1297_v47  ;;  %v8039_v49 = vpop.f32.mrb[3].mxu1 }
 0x3d7   : > { %v1302_v50 = vsel %vm1225_vm4, %v1301_v48, -inf  ;;  %v1220_v49 = vld [vmem:[%s10319_s29 + $0x18] sm:$0xff] }
 0x3d8   : > { %1303 = vmax.xlane.f32.xlu1 %v1302_v50 }
 0x3d9   : > { %v1463_v51 = vpop.f32.mrb[0].mxu0 }
 0x3da   : > { %v1467_v52 = vsel %vm1096_vm5, -1e+09, %v1463_v51  ;;  %v8049_v53 = vpop.f32.mrb[1].mxu0 }
 0x3db   : > { %v1468_v54 = vsel %vm1225_vm4, %v1467_v52, -inf }
 0x3dc   : > { %1469 = vmax.xlane.f32.xlu0 %v1468_v54 }
 0x3e2   : > { %v1629_v55 = vpop.f32.mrb[2].mxu0 }
 0x3e3   : > { %v1633_v56 = vsel %vm1096_vm5, -1e+09, %v1629_v55  ;;  %v8059_v57 = vpop.f32.mrb[3].mxu0 }
 0x3e4   : > { %v1634_v58 = vsel %vm1225_vm4, %v1633_v56, -inf }
 0x3e5   : > { %1635 = vmax.xlane.f32.xlu1 %v1634_v58 }
 0x3e6   : > { %v1795_v59 = vpop.f32.mrb[4].mxu0 }
 0x3e7   : > { %v1799_v60 = vsel %vm1096_vm5, -1e+09, %v1795_v59  ;;  %v8069_v61 = vpop.f32.mrb[5].mxu0 }
 0x3e8   : > { %v1800_v62 = vsel %vm1225_vm4, %v1799_v60, -inf }
 0x3e9   : > { %1801 = vmax.xlane.f32.xlu0 %v1800_v62 }
 0x3f6   : > { %1313 = vrot.lane.b32.xlu1 %v9318_v36, %s10242_s11  ;;  %s10248_s11 = smov 40  }
 0x465   : > { %v1304_v63 = vpop.xlane.xlu1 %1303 }
 0x466   : > { %v1305_v1 = vsub.f32 %v1301_v48, %v1304_v63  ;;  %v1219_v48 = vld [vmem:[%s10319_s29 + $0x10] sm:$0xff]  ;;  %v7625_v63 = vld [vmem:[%s10323_s3] ss:$0 sm:$0xff] }
 0x467   : > { %v8548_v50 = vpack.c.bf16 %v1220_v49, %v1219_v48  ;;  %v2026_v48 = vld [vmem:[%s10320_s19 + $0x38] sm:$0xff] }
 0x468   : > { %v1306_v2 = vmul.f32 1.442695, %v1305_v1 }
 0x469   : > { %v1470_v3 = vpop.xlane.xlu0 %1469  ;;  %8549 = vmatpush3.bf16.msra.mxu0 %v8548_v50 }
 0x46a   : > { %8788 = vpow2.f32 %v1306_v2  ;;  %v1471_v4 = vsub.f32 %v1467_v52, %v1470_v3  ;;  %8556 = vmatprep.subr.bf16.mxu0 %v9026_v10 }
 0x46c   : > { %v1472_v5 = vmul.f32 1.442695, %v1471_v4 }
 0x46e   : > { %8790 = vpow2.f32 %v1472_v5 }
 0x472   : > { %v1636_v6 = vpop.xlane.xlu1 %1635 }
 0x473   : > { %v1637_v7 = vsub.f32 %v1633_v56, %v1636_v6 }
 0x474   : > { %v8789_v8 = vpop.eup %8788 }
 0x475   : > { %v1638_v9 = vmul.f32 1.442695, %v1637_v7  ;;  %v1308_v11 = vsel %vm1225_vm4, %v8789_v8, 0.0 }
 0x476   : > { %v1802_v12 = vpop.xlane.xlu0 %1801  ;;  %1309 = vadd.xlane.f32.xlu1 %v1308_v11  ;;  %v1314_v14 = vpop.permute.xlu1 %1313 }
 0x477   : > { %8792 = vpow2.f32 %v1638_v9  ;;  %v1803_v15 = vsub.f32 %v1799_v60, %v1802_v12  ;;  %8041 = vmatpush3.msra.mxu1 %v1314_v14  ;;  %v2014_v12 = vld [vmem:[%s10322_s8] sm:$0xff]  ;;  %v2015_v14 = vld [vmem:[%s10322_s8 + $0x8] sm:$0xff] }
 0x478   : > { %v8791_v16 = vpop.eup %8790  ;;  %8050 = vmatprep.subr.mxu1 %v9028_v13 }
 0x479   : > { %v1804_v17 = vmul.f32 1.442695, %v1803_v15  ;;  %v1474_v18 = vsel %vm1225_vm4, %v8791_v16, 0.0  ;;  %v8551_v15 = vpack.c.bf16 %v2015_v14, %v2014_v12 }
 0x47a   : > { %1475 = vadd.xlane.f32.xlu0 %v1474_v18  ;;  %v2019_v18 = vld [vmem:[%s10320_s19] sm:$0xff] }
 0x47b   : > { %8794 = vpow2.f32 %v1804_v17 }
 0x481   : > { %v8793_v19 = vpop.eup %8792 }
 0x482   : > { %v1640_v20 = vsel %vm1225_vm4, %v8793_v19, 0.0 }
 0x483   : > { %1641 = vadd.xlane.f32.xlu1 %v1640_v20  ;;  %v2021_v20 = vld [vmem:[%s10320_s19 + $0x10] sm:$0xff] }
 0x485   : > { %v8795_v21 = vpop.eup %8794 }
 0x486   : > { %v1806_v22 = vsel %vm1225_vm4, %v8795_v21, 0.0 }
 0x487   : > { %1807 = vadd.xlane.f32.xlu0 %v1806_v22  ;;  %v2022_v22 = vld [vmem:[%s10320_s19 + $0x18] sm:$0xff] }
 0x494   : > { %1645 = vrot.lane.b32.xlu1 %v9318_v36, %s10250_s1  ;;  %s10252_s1 = smov 24  }
 0x498   : > { %1811 = vrot.lane.b32.xlu1 %v9318_v36, %s10248_s11  ;;  %s10254_s11 = smov 16  }
 0x49d   : > { %1479 = vrot.lane.b32.xlu0 %v9318_v36, %s10246_s26  ;;  %s10256_s26 = smov 8  }
 0x503   : > { %v1310_v23 = vpop.xlane.xlu1 %1309 }
 0x504   : > { %8796 = vrcp.f32 %v1310_v23  ;;  %v8560_v23 = vpack.c.bf16 %v2022_v22, %v2021_v20 }
 0x507   : > { %v1476_v28 = vpop.xlane.xlu0 %1475 }
 0x508   : > { %8798 = vrcp.f32 %v1476_v28  ;;  %v2023_v28 = vld [vmem:[%s10320_s19 + $0x20] sm:$0xff] }
 0x50e   : > { %v8797_v29 = vpop.eup %8796 }
 0x50f   : > { %v1312_v30 = vmul.f32 %v8797_v29, %v8789_v8  ;;  %v2024_v29 = vld [vmem:[%s10320_s19 + $0x28] sm:$0xff] }
 0x510   : > { %v1642_v31 = vpop.xlane.xlu1 %1641 }
 0x511   : > { %8800 = vrcp.f32 %v1642_v31  ;;  %8043 = vmatmul.mubr.msk.f32.vlgmr.msra.gmra.mrb[4].mxu1 %vm1225_vm4, %v1312_v30  ;;  %v8563_v30 = vpack.c.bf16 %v2024_v29, %v2023_v28  ;;  %v7638_v28 = vld [vmem:[%s10324_s25 + $0x1] ss:$0 sm:$0xff]  ;;  %s1078_s25 = scalar_lea.vmem %s10346_s9, %s9277_s23  ;;  %s10353_s9 = smov 80  }
 0x512   : > { %8052 = vmatprep.mubr.msk.f32.mxu1 %vm9027_vm1, %v9028_v13  ;;  %v8799_v33 = vpop.eup %8798 }
 0x513   : > { %v1478_v37 = vmul.f32 %v8799_v33, %v8791_v16  ;;  %v2017_v16 = vld [vmem:[%s10322_s8 + $0x18] sm:$0xff] }
 0x514   : > { %v1808_v32 = vpop.xlane.xlu0 %1807  ;;  %v1646_v34 = vpop.permute.xlu1 %1645 }
 0x515   : > { %8802 = vrcp.f32 %v1808_v32 }
 0x518   : > { %v1480_v35 = vpop.permute.xlu0 %1479  ;;  %v1812_v39 = vpop.permute.xlu1 %1811 }
 0x519   : > { %8051 = vmatpush3.msra.mxu1 %v1480_v35 }
 0x51a   : > { %8053 = vmatmul.mubr.msk.f32.vlgmr.msra.gmra.mrb[6].mxu1 %vm1225_vm4, %v1478_v37  ;;  %8060 = vmatprep.subr.mxu1 %v9028_v13 }
 0x51b   : > { %v8801_v36 = vpop.eup %8800  ;;  %8061 = vmatpush3.msra.mxu1 %v1646_v34  ;;  %8062 = vmatprep.mubr.msk.f32.mxu1 %vm9027_vm1, %v9028_v13 }
 0x51c   : > { %8070 = vmatprep.subr.mxu1 %v9028_v13  ;;  %v1644_v38 = vmul.f32 %v8801_v36, %v8793_v19  ;;  %v2020_v19 = vld [vmem:[%s10320_s19 + $0x8] sm:$0xff] }
 0x51e   : > { %8063 = vmatmul.mubr.msk.f32.vlgmr.msra.gmra.mrb[8].mxu1 %vm1225_vm4, %v1644_v38 }
 0x51f   : > { %v8803_v40 = vpop.eup %8802  ;;  %8071 = vmatpush3.msra.mxu1 %v1812_v39  ;;  %8072 = vmatprep.mubr.msk.f32.mxu1 %vm9027_vm1, %v9028_v13  ;;  %v9436_v39 = vsub.s32 1, %v9299_v24 }
 0x520   : > { %v1810_v41 = vmul.f32 %v8803_v40, %v8795_v21  ;;  %8550 = vmatprep.subr.bf16.mxu1 %v9026_v10  ;;  %v8557_v21 = vpack.c.bf16 %v2020_v19, %v2019_v18 }
 0x521   : > { %v2007_v40 = vrot.slane %v9305_v26, %v9436_v39  ;;  %v2012_v42 = vrot.slane %v9308_v27, %v9436_v39  ;;  %v7627_v26 = vld [vmem:[%s10321_s14] ss:$0 sm:$0xff] }
 0x522   : > { %8073 = vmatmul.mubr.msk.f32.vlgmr.msra.gmra.mrb[10].mxu1 %vm1225_vm4, %v1810_v41 }
 0x523   : > { %8094 = vmatprep.mubr.msk.f32.mxu1 %vm9027_vm1, %v9028_v13  ;;  %8552 = vmatpush3.bf16.msra.mxu1 %v8551_v15 }
 0x524   : > { %8553 = vmatprep.subr.bf16.mxu1 %v9026_v10 }
 0x5e4   : > { %v1385_v45 = vpop.f32.mrb[4].mxu1 }
 0x5e5   : > { %v8044_v47 = vpop.f32.mrb[5].mxu1 }
 0x5e6   : > { %v2025_v47 = vld [vmem:[%s10320_s19 + $0x30] sm:$0xff] }
 0x5e7   : > { %v8566_v49 = vpack.c.bf16 %v2026_v48, %v2025_v47 }
 0x5ed   : > { %v1551_v51 = vpop.f32.mrb[6].mxu1 }
 0x5ee   : > { %1888 = vrot.lane.b32.xlu0 %v1551_v51, %s10256_s26  ;;  %v8054_v52 = vpop.f32.mrb[7].mxu1  ;;  %s10341_s26 = smov 104  }
 0x5f1   : > { %v1717_v53 = vpop.f32.mrb[8].mxu1 }
 0x5f2   : > { %1892 = vrot.lane.b32.xlu1 %v1717_v53, %s10254_s11  ;;  %v8064_v54 = vpop.f32.mrb[9].mxu1  ;;  %v7629_v53 = vld [vmem:[%s10317_s24] ss:$0 sm:$0xff]  ;;  %s10340_s11 = smov 112  }
 0x5f5   : > { %v1883_v55 = vpop.f32.mrb[10].mxu1 }
 0x5f6   : > { %1896 = vrot.lane.b32.xlu0 %v1883_v55, %s10252_s1  ;;  %v8074_v56 = vpop.f32.mrb[11].mxu1  ;;  %s10339_s1 = smov 96  }
 0x660   : > { %v1889_v57 = vpop.permute.xlu0 %1888 }
 0x661   : > { %v1899_v59 = vsel %vm1225_vm4, %v1385_v45, %v1889_v57 }
 0x664   : > { %v1893_v58 = vpop.permute.xlu1 %1892 }
 0x665   : > { %v1901_v60 = vsel %vm1900_vm6, %v1899_v59, %v1893_v58 }
 0x668   : > { %v1897_v61 = vpop.permute.xlu0 %1896 }
 0x669   : > { %v1903_v62 = vsel %vm1902_vm7, %v1901_v60, %v1897_v61 }
 0x66a   : > { %8084 = vmatmul.mubr.msk.f32.vlgmr.msra.gmra.mrb[6].mxu0 %vm1100_vm0, %v1903_v62 }
 0x66b   : > { %8113 = vmatprep.mubr.msk.f32.mxu0 %vm9027_vm1, %v9028_v13  ;;  %8558 = vmatpush3.bf16.msra.mxu0 %v8557_v21 }
 0x66c   : > { %8559 = vmatprep.subr.bf16.mxu0 %v9026_v10 }
 0x66f   : > { %8561 = vmatpush3.bf16.msra.mxu0 %v8560_v23 }
 0x670   : > { %8562 = vmatprep.subr.bf16.mxu0 %v9026_v10 }
 0x673   : > { %8564 = vmatpush3.bf16.msra.mxu0 %v8563_v30 }
 0x674   : > { %8565 = vmatprep.subr.bf16.mxu0 %v9026_v10 }
 0x677   : > { %8567 = vmatpush3.bf16.msra.mxu0 %v8566_v49 }
 0x678   : > { %8137 = vmatprep.subr.mxu0 %v9028_v13 }
 0x73d   : > { %v1979_v1 = vpop.f32.mrb[6].mxu0 }
 0x73e   : > { %v1980_v2 = vadd.f32 %v7625_v63, %v1979_v1  ;;  %v8085_v3 = vpop.f32.mrb[7].mxu0  ;;  %v7633_v1 = vld [vmem:[%s10325_s21 + $0x20] sm:$0xff] }
 0x73f   : > { %v7635_v3 = vld [vmem:[%s10325_s21 + $0x30] sm:$0xff] }
 0x740   : > { %v9414_v4 = vadd.f32 %v1980_v2, %v9281_v0  ;;  %v2016_v0 = vld [vmem:[%s10322_s8 + $0x10] sm:$0xff]  ;;  %v7634_v2 = vld [vmem:[%s10325_s21 + $0x28] sm:$0xff] }
 0x741   : > { %v8554_v17 = vpack.c.bf16 %v2017_v16, %v2016_v0  ;;  %v9467_v16 = vld [vmem:[%s10318_s30 + $0x2] sm:$0x3] }
 0x742   : > { %v1984_v5 = vsel %vm1100_vm0, %v9414_v4, 0.0  ;;  %v2216_v18 = vrot.slane %v9467_v16, %v9302_v25 }
 0x743   : > { %1985 = vadd.xlane.f32.xlu1 %v1984_v5  ;;  %8555 = vmatpush3.bf16.msra.mxu1 %v8554_v17  ;;  %v8569_v5 = vpack.c.bf16 %v7634_v2, %v7633_v1  ;;  %v9470_v17 = vld [vmem:[%s10326_s6 + $0x2] sm:$0x3]  ;;  %s10347_s6 = smov 8  }
 0x744   : > { %8568 = vmatprep.subr.bf16.mxu1 %v9026_v10  ;;  %v2221_v21 = vrot.slane %v9470_v17, %v9302_v25 }
 0x7d0   : > { %v1986_v6 = vpop.xlane.xlu1 %1985 }
 0x7d1   : > { %v1987_v7 = vmul.f32 0.03125, %v1986_v6  ;;  %v7636_v6 = vld [vmem:[%s10325_s21 + $0x38] sm:$0xff]  ;;  %s10349_s21 = smov 24  }
 0x7d3   : > { %v1988_v8 = vsub.f32 %v9414_v4, %v1987_v7 }
 0x7d5   : > { %v1989_v9 = vmul.f32 %v1988_v8, %v1988_v8 }
 0x7d7   : > { %v1990_v11 = vsel %vm1100_vm0, %v1989_v9, 0.0 }
 0x7d8   : > { %1991 = vadd.xlane.f32.xlu0 %v1990_v11 }
 0x865   : > { %v1992_v31 = vpop.xlane.xlu0 %1991 }
 0x866   : > { %v1993_v32 = vmul.f32 0.032258064, %v1992_v31 }
 0x868   : > { %8804 = vrsqrt.f32 %v1993_v32  ;;  %vm1996_vm8 = vcmp.eq.f32.partialorder %v1993_v32, inf  ;;  %v1999_v35 = vand.u32 2147483648, %v1993_v32  ;;  %vm1998_vm9 = vcmp.eq.f32.partialorder %v1993_v32, 0.0 }
 0x872   : > { %v8805_v33 = vpop.eup %8804 }
 0x873   : > { %v1995_v34 = vmul.f32 %v8805_v33, %v1993_v32 }
 0x875   : > { %v1997_v37 = vsel %vm1996_vm8, %v1993_v32, %v1995_v34 }
 0x876   : > { %v2000_v36 = vsel %vm1998_vm9, %v1999_v35, %v1997_v37 }
 0x877   : > { %v2001_v38 = vadd.f32 1e-06, %v2000_v36 }
 0x879   : > { %8806 = vrcp.f32 %v2001_v38 }
 0x883   : > { %v8807_v41 = vpop.eup %8806 }
 0x884   : > { %v2003_v43 = vmul.f32 %v8807_v41, %v1988_v8 }
 0x886   : > { %v2008_v44 = vmul.f32 %v2007_v40, %v2003_v43 }
 0x888   : > { %v2013_v45 = vadd.f32 %v2012_v42, %v2008_v44 }
 0x88a   : > { %8095 = vmatmul.mubr.msk.f32.vlgmr.msra.gmra.mrb[12].mxu1 %vm1100_vm0, %v2013_v45 }
 0x88b   : > { %8124 = vmatprep.mubr.msk.f32.mxu1 %vm9027_vm1, %v9028_v13  ;;  %8570 = vmatpush3.bf16.msra.mxu1 %v8569_v5 }
 0x88c   : > { %8571 = vmatprep.subr.bf16.mxu1 %v9026_v10 }
 0x95d   : > { %v2103_v50 = vpop.f32.mrb[12].mxu1 }
 0x95e   : > { %v2104_v51 = vadd.f32 %v7627_v26, %v2103_v50  ;;  %v8096_v52 = vpop.f32.mrb[13].mxu1 }
 0x960   : > { %v2107_v27 = vmax.f32 %v2104_v51, 0.0 }
 0x962   : > { %8114 = vmatmul.mubr.msk.f32.vlgmr.msra.gmra.mrb[8].mxu0 %vm2114_vm10, %v2107_v27 }
 0x963   : > { %8139 = vmatprep.mubr.msk.f32.mxu0 %vm9027_vm1, %v9028_v13 }
 0xa35   : > { %v2184_v54 = vpop.f32.mrb[8].mxu0 }
 0xa36   : > { %v2185_v55 = vadd.f32 %v7629_v53, %v2184_v54  ;;  %v8115_v56 = vpop.f32.mrb[9].mxu0 }
 0xa38   : > { %v9454_v57 = vadd.f32 %v2185_v55, %v9414_v4  ;;  %v8572_v4 = vpack.c.bf16 %v7636_v6, %v7635_v3 }
 0xa3a   : > { %v2193_v58 = vsel %vm1100_vm0, %v9454_v57, 0.0  ;;  %8573 = vmatpush3.bf16.msra.mxu1 %v8572_v4 }
 0xa3b   : > { %2194 = vadd.xlane.f32.xlu0 %v2193_v58  ;;  %8127 = vmatprep.subr.mxu1 %v9028_v13 }
 0xac8   : > { %v2195_v59 = vpop.xlane.xlu0 %2194 }
 0xac9   : > { %v2196_v60 = vmul.f32 0.03125, %v2195_v59 }
 0xacb   : > { %v2197_v61 = vsub.f32 %v9454_v57, %v2196_v60 }
 0xacd   : > { %v2198_v62 = vmul.f32 %v2197_v61, %v2197_v61 }
 0xacf   : > { %v2199_v63 = vsel %vm1100_vm0, %v2198_v62, 0.0 }
 0xad0   : > { %2200 = vadd.xlane.f32.xlu1 %v2199_v63 }
 0xb5d   : > { %v2201_v7 = vpop.xlane.xlu1 %2200 }
 0xb5e   : > { %v2202_v8 = vmul.f32 0.032258064, %v2201_v7 }
 0xb60   : > { %8808 = vrsqrt.f32 %v2202_v8  ;;  %vm2205_vm11 = vcmp.eq.f32.partialorder %v2202_v8, inf  ;;  %v2208_v12 = vand.u32 2147483648, %v2202_v8  ;;  %vm2207_vm12 = vcmp.eq.f32.partialorder %v2202_v8, 0.0 }
 0xb6a   : > { %v8809_v9 = vpop.eup %8808 }
 0xb6b   : > { %v2204_v11 = vmul.f32 %v8809_v9, %v2202_v8 }
 0xb6d   : > { %v2206_v14 = vsel %vm2205_vm11, %v2202_v8, %v2204_v11 }
 0xb6e   : > { %v2209_v0 = vsel %vm2207_vm12, %v2208_v12, %v2206_v14 }
 0xb6f   : > { %v2210_v15 = vadd.f32 1e-06, %v2209_v0 }
 0xb71   : > { %8810 = vrcp.f32 %v2210_v15 }
 0xb7b   : > { %v8811_v19 = vpop.eup %8810 }
 0xb7c   : > { %v2212_v20 = vmul.f32 %v8811_v19, %v2197_v61 }
 0xb7e   : > { %v2217_v22 = vmul.f32 %v2216_v18, %v2212_v20 }
 0xb80   : > { %v2222_v23 = vadd.f32 %v2221_v21, %v2217_v22 }
 0xb82   : > { %8125 = vmatmul.mubr.msk.f32.vlgmr.msra.gmra.mrb[14].mxu1 %vm1100_vm0, %v2222_v23 }
 0xb83   : > { %8129 = vmatprep.mubr.msk.f32.mxu1 %vm9027_vm1, %v9028_v13 }
 0xc55   : > { %v2305_v29 = vpop.f32.mrb[14].mxu1 }
 0xc56   : > { %v9480_v30 = vadd.f32 %v7638_v28, %v2305_v29  ;;  %v8126_v31 = vpop.f32.mrb[15].mxu1 }
 0xc58   : > { %2485 = vrot.lane.b32.xlu1 %v9480_v30, %s10264_s5  ;;  %2318 = vrot.lane.b32.xlu0 %v9480_v30, %s10339_s1  ;;  %v2309_v32 = vmul.f32 0.35355338, %v9480_v30  ;;  %s10345_s5 = smov 56  }
 0xc5c   : > { %2651 = vrot.lane.b32.xlu0 %v9480_v30, %s10262_s2  ;;  %2483 = vrot.lane.b32.xlu1 %v2309_v32, %s10260_s28  ;;  %s10343_s28 = smov 48   ;;  %s10344_s2 = smov 40  }
 0xc60   : > { %2817 = vrot.lane.b32.xlu0 %v9480_v30, %s10258_s18  ;;  %2649 = vrot.lane.b32.xlu1 %v2309_v32, %s10340_s11  ;;  %s10342_s18 = smov 64  }
 0xc64   : > { %2815 = vrot.lane.b32.xlu1 %v2309_v32, %s10341_s26 }
 0xcca   : > { %v2486_v33 = vpop.permute.xlu1 %2485  ;;  %v2319_v34 = vpop.permute.xlu0 %2318 }
 0xccb   : > { %8128 = vmatpush3.xpose.msk.msra.mxu1 %vm1225_vm4, %v2319_v34  ;;  %8138 = vmatpush3.xpose.msk.msra.mxu0 %vm1225_vm4, %v2486_v33 }
 0xccc   : > { %8147 = vmatprep.subr.mxu0 %v9028_v13  ;;  %8132 = vmatprep.subr.mxu1 %v9028_v13 }
 0xcce   : > { %v2652_v35 = vpop.permute.xlu0 %2651  ;;  %v2484_v37 = vpop.permute.xlu1 %2483  ;;  %8130 = vmatmul.mubr.msk.f32.vlgmr.msra.gmra.mrb[16].mxu1 %vm1225_vm4, %v2309_v32 }
 0xccf   : > { %8140 = vmatmul.mubr.msk.f32.vlgmr.msra.gmra.mrb[10].mxu0 %vm1225_vm4, %v2484_v37  ;;  %8134 = vmatprep.mubr.msk.f32.mxu1 %vm9027_vm1, %v9028_v13 }
 0xcd0   : > { %8148 = vmatpush3.xpose.msk.msra.mxu0 %vm1225_vm4, %v2652_v35  ;;  %8149 = vmatprep.mubr.msk.f32.mxu0 %vm9027_vm1, %v9028_v13 }
 0xcd1   : > { %8157 = vmatprep.subr.mxu0 %v9028_v13 }
 0xcd2   : > { %v2818_v36 = vpop.permute.xlu0 %2817  ;;  %v2650_v38 = vpop.permute.xlu1 %2649 }
 0xcd3   : > { %8150 = vmatmul.mubr.msk.f32.vlgmr.msra.gmra.mrb[12].mxu0 %vm1225_vm4, %v2650_v38  ;;  %v7641_v38 = vld [vmem:[%s10319_s29 + $0x28] sm:$0xff] }
 0xcd4   : > { %8158 = vmatpush3.xpose.msk.msra.mxu0 %vm1225_vm4, %v2818_v36  ;;  %8159 = vmatprep.mubr.msk.f32.mxu0 %vm9027_vm1, %v9028_v13  ;;  %v7640_v36 = vld [vmem:[%s10319_s29 + $0x20] sm:$0xff] }
 0xcd5   : > { %8574 = vmatprep.subr.bf16.mxu0 %v9026_v10 }
 0xcd6   : > { %v2816_v40 = vpop.permute.xlu1 %2815 }
 0xcd7   : > { %8160 = vmatmul.mubr.msk.f32.vlgmr.msra.gmra.mrb[14].mxu0 %vm1225_vm4, %v2816_v40  ;;  %v8575_v40 = vpack.c.bf16 %v7641_v38, %v7640_v36 }
 0xcd8   : > { %8175 = vmatprep.mubr.msk.f32.mxu0 %vm9027_vm1, %v9028_v13 }
 0xcd9   : > { %8576 = vmatpush3.bf16.msra.mxu0 %v8575_v40 }
 0xcda   : > { %8577 = vmatprep.subr.bf16.mxu0 %v9026_v10 }
 0xda1   : > { %v2391_v41 = vpop.f32.mrb[16].mxu1 }
 0xda2   : > { %v2395_v42 = vsel %vm1096_vm5, -1e+09, %v2391_v41  ;;  %v8131_v43 = vpop.f32.mrb[17].mxu1  ;;  %v2557_v44 = vpop.f32.mrb[10].mxu0  ;;  %v7642_v41 = vld [vmem:[%s10319_s29 + $0x30] sm:$0xff] }
 0xda3   : > { %v2561_v45 = vsel %vm1096_vm5, -1e+09, %v2557_v44  ;;  %v8141_v47 = vpop.f32.mrb[11].mxu0  ;;  %v2396_v48 = vsel %vm1225_vm4, %v2395_v42, -inf }
 0xda4   : > { %2397 = vmax.xlane.f32.xlu0 %v2396_v48  ;;  %v2562_v49 = vsel %vm1225_vm4, %v2561_v45, -inf }
 0xda5   : > { %2563 = vmax.xlane.f32.xlu1 %v2562_v49 }
 0xda6   : > { %v2723_v26 = vpop.f32.mrb[12].mxu0 }
 0xda7   : > { %v2727_v50 = vsel %vm1096_vm5, -1e+09, %v2723_v26  ;;  %v8151_v51 = vpop.f32.mrb[13].mxu0 }
 0xda8   : > { %v2728_v52 = vsel %vm1225_vm4, %v2727_v50, -inf }
 0xda9   : > { %2729 = vmax.xlane.f32.xlu0 %v2728_v52  ;;  %v9565_v52 = vld [vmem:[%s1078_s25] sm:$0xff]  ;;  %s10350_s25 = sld [smem:[#allocation34_spill]] }
 0xdaa   : > { %v2889_v27 = vpop.f32.mrb[14].mxu0 }
 0xdab   : > { %v2893_v53 = vsel %vm1096_vm5, -1e+09, %v2889_v27  ;;  %v8161_v54 = vpop.f32.mrb[15].mxu0  ;;  %v3322_v27 = vsel %vm1100_vm0, %v9565_v52, 0.0 }
 0xdac   : > { %v2894_v55 = vsel %vm1225_vm4, %v2893_v53, -inf }
 0xdad   : > { %2895 = vmax.xlane.f32.xlu0 %v2894_v55 }
 0xdb6   : > { %2407 = vrot.lane.b32.xlu1 %v9480_v30, %s10342_s18 }
 0xe31   : > { %v2398_v56 = vpop.xlane.xlu0 %2397 }
 0xe32   : > { %v2399_v58 = vsub.f32 %v2395_v42, %v2398_v56  ;;  %v2564_v59 = vpop.xlane.xlu1 %2563  ;;  %v7643_v42 = vld [vmem:[%s10319_s29 + $0x38] sm:$0xff]  ;;  %s10356_s29 = sld [smem:[#allocation8_spill]] }
 0xe33   : > { %v2565_v60 = vsub.f32 %v2561_v45, %v2564_v59  ;;  %v8578_v43 = vpack.c.bf16 %v7643_v42, %v7642_v41 }
 0xe34   : > { %v2400_v61 = vmul.f32 1.442695, %v2399_v58 }
 0xe35   : > { %v2566_v62 = vmul.f32 1.442695, %v2565_v60  ;;  %8579 = vmatpush3.bf16.msra.mxu0 %v8578_v43 }
 0xe36   : > { %8812 = vpow2.f32 %v2400_v61  ;;  %v2408_v63 = vpop.permute.xlu1 %2407  ;;  %v2730_v1 = vpop.xlane.xlu0 %2729  ;;  %8586 = vmatprep.subr.bf16.mxu0 %v9026_v10 }
 0xe37   : > { %8814 = vpow2.f32 %v2566_v62  ;;  %v2731_v2 = vsub.f32 %v2727_v50, %v2730_v1  ;;  %8133 = vmatpush3.msra.mxu1 %v2408_v63  ;;  %v7657_v62 = vld [vmem:[%s10323_s3 + $0x1] ss:$0 sm:$0xff]  ;;  %s10351_s3 = sld [smem:[#allocation21_spill]] }
 0xe38   : > { %8142 = vmatprep.subr.mxu1 %v9028_v13  ;;  %s1085_s30 = scalar_lea.vmem %s10356_s29, %s9277_s23  ;;  %s10357_s29 = sld [smem:[#allocation22_spill]] }
 0xe39   : > { %v2732_v3 = vmul.f32 1.442695, %v2731_v2  ;;  %s10359_s23 = sld [smem:[#allocation26_spill]] }
 0xe3a   : > { %v2896_v5 = vpop.xlane.xlu0 %2895 }
 0xe3b   : > { %8816 = vpow2.f32 %v2732_v3  ;;  %v2897_v6 = vsub.f32 %v2893_v53, %v2896_v5 }
 0xe3d   : > { %v2898_v4 = vmul.f32 1.442695, %v2897_v6 }
 0xe3f   : > { %8818 = vpow2.f32 %v2898_v4 }
 0xe40   : > { %v8813_v7 = vpop.eup %8812 }
 0xe41   : > { %v8815_v8 = vpop.eup %8814  ;;  %v2402_v9 = vsel %vm1225_vm4, %v8813_v7, 0.0 }
 0xe42   : > { %2403 = vadd.xlane.f32.xlu1 %v2402_v9  ;;  %v2568_v11 = vsel %vm1225_vm4, %v8815_v8, 0.0 }
 0xe43   : > { %2569 = vadd.xlane.f32.xlu0 %v2568_v11 }
 0xe45   : > { %v8817_v12 = vpop.eup %8816 }
 0xe46   : > { %v2734_v14 = vsel %vm1225_vm4, %v8817_v12, 0.0 }
 0xe47   : > { %2735 = vadd.xlane.f32.xlu1 %v2734_v14  ;;  %v7659_v14 = vld [vmem:[%s10322_s8 + $0x20] sm:$0xff] }
 0xe49   : > { %v8819_v0 = vpop.eup %8818 }
 0xe4a   : > { %v2900_v15 = vsel %vm1225_vm4, %v8819_v0, 0.0 }
 0xe4b   : > { %2901 = vadd.xlane.f32.xlu0 %v2900_v15  ;;  %v7661_v15 = vld [vmem:[%s10322_s8 + $0x30] sm:$0xff] }
 0xe58   : > { %2739 = vrot.lane.b32.xlu1 %v9480_v30, %s10343_s28 }
 0xe5c   : > { %2905 = vrot.lane.b32.xlu1 %v9480_v30, %s10344_s2 }
 0xe61   : > { %2573 = vrot.lane.b32.xlu0 %v9480_v30, %s10345_s5 }
 0xecf   : > { %v2404_v18 = vpop.xlane.xlu1 %2403 }
 0xed0   : > { %8820 = vrcp.f32 %v2404_v18  ;;  %v2570_v19 = vpop.xlane.xlu0 %2569 }
 0xed1   : > { %8822 = vrcp.f32 %v2570_v19  ;;  %v7662_v19 = vld [vmem:[%s10322_s8 + $0x38] sm:$0xff] }
 0xed4   : > { %v2736_v20 = vpop.xlane.xlu1 %2735 }
 0xed5   : > { %8824 = vrcp.f32 %v2736_v20  ;;  %v8584_v20 = vpack.c.bf16 %v7662_v19, %v7661_v15 }
 0xed8   : > { %v2902_v21 = vpop.xlane.xlu0 %2901  ;;  %v2740_v31 = vpop.permute.xlu1 %2739 }
 0xed9   : > { %8826 = vrcp.f32 %v2902_v21  ;;  %v7664_v21 = vld [vmem:[%s10320_s19 + $0x40] sm:$0xff] }
 0xeda   : > { %v8821_v22 = vpop.eup %8820 }
 0xedb   : > { %v2406_v23 = vmul.f32 %v8821_v22, %v8813_v7  ;;  %v8823_v28 = vpop.eup %8822  ;;  %v7665_v22 = vld [vmem:[%s10320_s19 + $0x48] sm:$0xff] }
 0xedc   : > { %v2574_v29 = vpop.permute.xlu0 %2573  ;;  %v2572_v30 = vmul.f32 %v8823_v28, %v8815_v8  ;;  %v2906_v35 = vpop.permute.xlu1 %2905  ;;  %v8587_v28 = vpack.c.bf16 %v7665_v22, %v7664_v21 }
 0xedd   : > { %8135 = vmatmul.mubr.msk.f32.vlgmr.msra.gmra.mrb[18].mxu1 %vm1225_vm4, %v2406_v23  ;;  %v7666_v23 = vld [vmem:[%s10320_s19 + $0x50] sm:$0xff] }
 0xede   : > { %8143 = vmatpush3.msra.mxu1 %v2574_v29  ;;  %8144 = vmatprep.mubr.msk.f32.mxu1 %vm9027_vm1, %v9028_v13  ;;  %v7667_v29 = vld [vmem:[%s10320_s19 + $0x58] sm:$0xff] }
 0xedf   : > { %8152 = vmatprep.subr.mxu1 %v9028_v13  ;;  %v8825_v32 = vpop.eup %8824 }
 0xee0   : > { %v2738_v33 = vmul.f32 %v8825_v32, %v8817_v12  ;;  %v7669_v32 = vld [vmem:[%s10320_s19 + $0x68] sm:$0xff] }
 0xee1   : > { %8145 = vmatmul.mubr.msk.f32.vlgmr.msra.gmra.mrb[20].mxu1 %vm1225_vm4, %v2572_v30  ;;  %v7668_v30 = vld [vmem:[%s10320_s19 + $0x60] sm:$0xff] }
 0xee2   : > { %8153 = vmatpush3.msra.mxu1 %v2740_v31  ;;  %8154 = vmatprep.mubr.msk.f32.mxu1 %vm9027_vm1, %v9028_v13  ;;  %v8590_v31 = vpack.c.bf16 %v7667_v29, %v7666_v23 }
 0xee3   : > { %8162 = vmatprep.subr.mxu1 %v9028_v13  ;;  %v8827_v34 = vpop.eup %8826 }
 0xee4   : > { %v2904_v37 = vmul.f32 %v8827_v34, %v8819_v0  ;;  %v7660_v0 = vld [vmem:[%s10322_s8 + $0x28] sm:$0xff]  ;;  %s10352_s8 = smov 88  }
 0xee5   : > { %8155 = vmatmul.mubr.msk.f32.vlgmr.msra.gmra.mrb[22].mxu1 %vm1225_vm4, %v2738_v33  ;;  %v8581_v18 = vpack.c.bf16 %v7660_v0, %v7659_v14  ;;  %v8593_v33 = vpack.c.bf16 %v7669_v32, %v7668_v30 }
 0xee6   : > { %8163 = vmatpush3.msra.mxu1 %v2906_v35  ;;  %8164 = vmatprep.mubr.msk.f32.mxu1 %vm9027_vm1, %v9028_v13 }
 0xee7   : > { %8580 = vmatprep.subr.bf16.mxu1 %v9026_v10 }
 0xee9   : > { %8165 = vmatmul.mubr.msk.f32.vlgmr.msra.gmra.mrb[24].mxu1 %vm1225_vm4, %v2904_v37 }
 0xeea   : > { %8186 = vmatprep.mubr.msk.f32.mxu1 %vm9027_vm1, %v9028_v13  ;;  %8582 = vmatpush3.bf16.msra.mxu1 %v8581_v18  ;;  %v7679_v18 = vld [vmem:[%s10351_s3] ss:$0 sm:$0xff] }
 0xeeb   : > { %8583 = vmatprep.subr.bf16.mxu1 %v9026_v10 }
 0xeee   : > { %8585 = vmatpush3.bf16.msra.mxu1 %v8584_v20 }
 0xeef   : > { %8598 = vmatprep.subr.bf16.mxu1 %v9026_v10 }
 0xfb0   : > { %v2479_v44 = vpop.f32.mrb[18].mxu1 }
 0xfb1   : > { %v8136_v45 = vpop.f32.mrb[19].mxu1 }
 0xfb4   : > { %v2645_v47 = vpop.f32.mrb[20].mxu1 }
 0xfb5   : > { %2982 = vrot.lane.b32.xlu0 %v2645_v47, %s10347_s6  ;;  %v8146_v48 = vpop.f32.mrb[21].mxu1 }
 0xfb8   : > { %v2811_v49 = vpop.f32.mrb[22].mxu1 }
 0xfb9   : > { %2986 = vrot.lane.b32.xlu1 %v2811_v49, %s10348_s13  ;;  %v8156_v26 = vpop.f32.mrb[23].mxu1 }
 0xfbc   : > { %v2977_v50 = vpop.f32.mrb[24].mxu1 }
 0xfbd   : > { %2990 = vrot.lane.b32.xlu0 %v2977_v50, %s10349_s21  ;;  %v8166_v51 = vpop.f32.mrb[25].mxu1 }
 0xfbe   : > { %v3099_v51 = vrot.slane %v9467_v16, %v9436_v39 }
 0xfdc   : > { %3323 = vadd.xlane.f32.xlu0 %v3322_v27 }
0x1027   : > { %v2983_v53 = vpop.permute.xlu0 %2982 }
0x1028   : > { %v2993_v55 = vsel %vm1225_vm4, %v2479_v44, %v2983_v53 }
0x102b   : > { %v2987_v54 = vpop.permute.xlu1 %2986 }
0x102c   : > { %v2994_v56 = vsel %vm1900_vm6, %v2993_v55, %v2987_v54  ;;  %v3104_v54 = vrot.slane %v9470_v17, %v9436_v39  ;;  %v3352_v55 = vld [vmem:[%s9132_s27] sm:$0xff] }
0x102f   : > { %v2991_v58 = vpop.permute.xlu0 %2990 }
0x1030   : > { %v2995_v59 = vsel %vm1902_vm7, %v2994_v56, %v2991_v58  ;;  %v3353_v56 = vld [vmem:[%s9132_s27 + $0x8] sm:$0xff] }
0x1031   : > { %8176 = vmatmul.mubr.msk.f32.vlgmr.msra.gmra.mrb[16].mxu0 %vm1100_vm0, %v2995_v59  ;;  %v9611_v59 = vld [vmem:[%s10350_s25] sm:$0x7] }
0x1032   : > { %8205 = vmatprep.mubr.msk.f32.mxu0 %vm9027_vm1, %v9028_v13  ;;  %8588 = vmatpush3.bf16.msra.mxu0 %v8587_v28  ;;  %v3345_v16 = vrot.slane %v9611_v59, %v9302_v25 }
0x1033   : > { %8589 = vmatprep.subr.bf16.mxu0 %v9026_v10 }
0x1036   : > { %8591 = vmatpush3.bf16.msra.mxu0 %v8590_v31 }
0x1037   : > { %8592 = vmatprep.subr.bf16.mxu0 %v9026_v10 }
0x103a   : > { %8594 = vmatpush3.bf16.msra.mxu0 %v8593_v33 }
0x103b   : > { %8595 = vmatprep.subr.bf16.mxu0 %v9026_v10 }
0x1069   : > { %v3324_v60 = vpop.xlane.xlu0 %3323 }
0x106a   : > { %v3325_v61 = vmul.f32 0.03125, %v3324_v60 }
0x106c   : > { %v9577_v63 = vsub.f32 %v9565_v52, %v3325_v61  ;;  %v8599_v61 = vpack.c.bf16 %v3353_v56, %v3352_v55 }
0x106e   : > { %v3327_v6 = vmul.f32 %v9577_v63, %v9577_v63 }
0x1070   : > { %v3328_v7 = vsel %vm1100_vm0, %v3327_v6, 0.0  ;;  %v9619_v6 = vld [vmem:[%s9207_s20] sm:$0x7] }
0x1104   : > { %v3071_v1 = vpop.f32.mrb[16].mxu0 }
0x1105   : > { %v3072_v2 = vadd.f32 %v7657_v62, %v3071_v1  ;;  %v8177_v3 = vpop.f32.mrb[17].mxu0  ;;  %v3354_v1 = vld [vmem:[%s9132_s27 + $0x10] sm:$0xff] }
0x1107   : > { %v9580_v5 = vadd.f32 %v3072_v2, %v9454_v57  ;;  %v3355_v2 = vld [vmem:[%s9132_s27 + $0x18] sm:$0xff] }
0x1108   : > { %v8602_v17 = vpack.c.bf16 %v3355_v2, %v3354_v1 }
0x1109   : > { %v3076_v4 = vsel %vm1100_vm0, %v9580_v5, 0.0 }
0x110a   : > { %3077 = vadd.xlane.f32.xlu1 %v3076_v4 }
0x110e   : > { %3329 = vadd.xlane.f32.xlu1 %v3328_v7 }
0x1197   : > { %v3078_v8 = vpop.xlane.xlu1 %3077 }
0x1198   : > { %v3079_v9 = vmul.f32 0.03125, %v3078_v8  ;;  %v7670_v8 = vld [vmem:[%s10320_s19 + $0x70] sm:$0xff] }
0x119a   : > { %v3080_v11 = vsub.f32 %v9580_v5, %v3079_v9  ;;  %v7671_v9 = vld [vmem:[%s10320_s19 + $0x78] sm:$0xff]  ;;  %s10355_s19 = smov 72  }
0x119b   : > { %v3330_v34 = vpop.xlane.xlu1 %3329 }
0x119c   : > { %v3081_v57 = vmul.f32 %v3080_v11, %v3080_v11  ;;  %v3331_v35 = vmul.f32 0.032258064, %v3330_v34 }
0x119e   : > { %v3082_v12 = vsel %vm1100_vm0, %v3081_v57, 0.0  ;;  %8828 = vrsqrt.f32 %v3331_v35  ;;  %vm3334_vm13 = vcmp.eq.f32.partialorder %v3331_v35, inf  ;;  %v3337_v41 = vand.u32 2147483648, %v3331_v35  ;;  %v7673_v57 = vld [vmem:[%s10321_s14 + $0x1] ss:$0 sm:$0xff]  ;;  %s10354_s14 = smov 120  }
0x119f   : > { %3083 = vadd.xlane.f32.xlu0 %v3082_v12  ;;  %vm3336_vm14 = vcmp.eq.f32.partialorder %v3331_v35, 0.0 }
0x11a8   : > { %v8829_v38 = vpop.eup %8828 }
0x11a9   : > { %v3333_v40 = vmul.f32 %v8829_v38, %v3331_v35 }
0x11ab   : > { %v3335_v42 = vsel %vm3334_vm13, %v3331_v35, %v3333_v40 }
0x11ac   : > { %v3338_v45 = vsel %vm3336_vm14, %v3337_v41, %v3335_v42 }
0x11ad   : > { %v3339_v26 = vadd.f32 1e-06, %v3338_v45 }
0x122c   : > { %v3084_v37 = vpop.xlane.xlu0 %3083 }
0x122d   : > { %v3085_v36 = vmul.f32 0.032258064, %v3084_v37  ;;  %v9677_v37 = vld [vmem:[%s1085_s30] sm:$0xff]  ;;  %s10358_s30 = sld [smem:[#allocation23_spill]] }
0x122e   : > { %vm1097_vm3 = vcmp.eq.f32.partialorder %v9677_v37, 0.0 }
0x122f   : > { %8830 = vrsqrt.f32 %v3085_v36  ;;  %vm3088_vm15 = vcmp.eq.f32.partialorder %v3085_v36, inf  ;;  %v3091_v47 = vand.u32 2147483648, %v3085_v36  ;;  %vm3090_vm2 = vcmp.eq.f32.partialorder %v3085_v36, 0.0 }
0x1239   : > { %v8831_v43 = vpop.eup %8830 }
0x123a   : > { %v3087_v44 = vmul.f32 %v8831_v43, %v3085_v36 }
0x123c   : > { %v3089_v48 = vsel %vm3088_vm15, %v3085_v36, %v3087_v44 }
0x123d   : > { %v3092_v49 = vsel %vm3090_vm2, %v3091_v47, %v3089_v48 }
0x123e   : > { %v3093_v50 = vadd.f32 1e-06, %v3092_v49 }
0x1240   : > { %8832 = vrcp.f32 %v3093_v50 }
0x1241   : > { %8834 = vrcp.f32 %v3339_v26 }
0x124a   : > { %v8833_v27 = vpop.eup %8832 }
0x124b   : > { %v3095_v53 = vmul.f32 %v8833_v27, %v3080_v11  ;;  %v8835_v58 = vpop.eup %8834  ;;  %v8596_v11 = vpack.c.bf16 %v7671_v9, %v7670_v8 }
0x124c   : > { %v3341_v3 = vmul.f32 %v8835_v58, %v9577_v63  ;;  %v3350_v63 = vrot.slane %v9619_v6, %v9302_v25 }
0x124d   : > { %v3100_v60 = vmul.f32 %v3099_v51, %v3095_v53  ;;  %8597 = vmatpush3.bf16.msra.mxu0 %v8596_v11 }
0x124e   : > { %v3346_v4 = vmul.f32 %v3345_v16, %v3341_v3  ;;  %8229 = vmatprep.subr.mxu0 %v9028_v13 }
0x124f   : > { %v3105_v62 = vadd.f32 %v3104_v54, %v3100_v60 }
0x1250   : > { %v3351_v7 = vadd.f32 %v3350_v63, %v3346_v4 }
0x1251   : > { %8187 = vmatmul.mubr.msk.f32.vlgmr.msra.gmra.mrb[26].mxu1 %vm1100_vm0, %v3105_v62 }
0x1252   : > { %8600 = vmatpush3.bf16.msra.mxu1 %v8599_v61  ;;  %8216 = vmatprep.mubr.msk.f32.mxu1 %vm9027_vm1, %v9028_v13 }
0x1253   : > { %8601 = vmatprep.subr.bf16.mxu1 %v9026_v10 }
0x1256   : > { %8603 = vmatpush3.bf16.msra.mxu1 %v8602_v17 }
0x1257   : > { %8219 = vmatprep.subr.mxu1 %v9028_v13 }
0x1259   : > { %8217 = vmatmul.mubr.msk.f32.vlgmr.msra.gmra.mrb[28].mxu1 %vm1100_vm0, %v3351_v7 }
0x125a   : > { %8221 = vmatprep.mubr.msk.f32.mxu1 %vm9027_vm1, %v9028_v13 }
0x1324   : > { %v3199_v12 = vpop.f32.mrb[26].mxu1 }
0x1325   : > { %v3200_v14 = vadd.f32 %v7673_v57, %v3199_v12  ;;  %v8188_v0 = vpop.f32.mrb[27].mxu1 }
0x1327   : > { %v3203_v15 = vmax.f32 %v3200_v14, 0.0 }
0x1329   : > { %8206 = vmatmul.mubr.msk.f32.vlgmr.msra.gmra.mrb[18].mxu0 %vm2114_vm10, %v3203_v15 }
0x132a   : > { %8231 = vmatprep.mubr.msk.f32.mxu0 %vm9027_vm1, %v9028_v13 }
0x132c   : > { %v3432_v19 = vpop.f32.mrb[28].mxu1 }
0x132d   : > { %v9639_v20 = vadd.f32 %v7679_v18, %v3432_v19  ;;  %v8218_v21 = vpop.f32.mrb[29].mxu1 }
0x132f   : > { %3610 = vrot.lane.b32.xlu1 %v9639_v20, %s10352_s8  ;;  %3443 = vrot.lane.b32.xlu0 %v9639_v20, %s10339_s1  ;;  %v3436_v22 = vmul.f32 0.35355338, %v9639_v20 }
0x1333   : > { %3776 = vrot.lane.b32.xlu0 %v9639_v20, %s10353_s9  ;;  %3608 = vrot.lane.b32.xlu1 %v3436_v22, %s10354_s14 }
0x1337   : > { %3942 = vrot.lane.b32.xlu0 %v9639_v20, %s10355_s19  ;;  %3774 = vrot.lane.b32.xlu1 %v3436_v22, %s10340_s11 }
0x133b   : > { %3940 = vrot.lane.b32.xlu1 %v3436_v22, %s10341_s26 }
0x13a1   : > { %v3611_v23 = vpop.permute.xlu1 %3610  ;;  %v3444_v28 = vpop.permute.xlu0 %3443 }
0x13a2   : > { %8220 = vmatpush3.xpose.msk.msra.mxu1 %vm1225_vm4, %v3444_v28  ;;  %8230 = vmatpush3.xpose.msk.msra.mxu0 %vm1225_vm4, %v3611_v23 }
0x13a3   : > { %8239 = vmatprep.subr.mxu0 %v9028_v13  ;;  %8224 = vmatprep.subr.mxu1 %v9028_v13 }
0x13a5   : > { %v3777_v29 = vpop.permute.xlu0 %3776  ;;  %v3609_v31 = vpop.permute.xlu1 %3608  ;;  %8222 = vmatmul.mubr.msk.f32.vlgmr.msra.gmra.mrb[30].mxu1 %vm1225_vm4, %v3436_v22 }
0x13a6   : > { %8232 = vmatmul.mubr.msk.f32.vlgmr.msra.gmra.mrb[20].mxu0 %vm1225_vm4, %v3609_v31  ;;  %8226 = vmatprep.mubr.msk.f32.mxu1 %vm9027_vm1, %v9028_v13 }
0x13a7   : > { %8240 = vmatpush3.xpose.msk.msra.mxu0 %vm1225_vm4, %v3777_v29  ;;  %8241 = vmatprep.mubr.msk.f32.mxu0 %vm9027_vm1, %v9028_v13 }
0x13a8   : > { %8249 = vmatprep.subr.mxu0 %v9028_v13 }
0x13a9   : > { %v3943_v30 = vpop.permute.xlu0 %3942  ;;  %v3775_v32 = vpop.permute.xlu1 %3774 }
0x13aa   : > { %8242 = vmatmul.mubr.msk.f32.vlgmr.msra.gmra.mrb[22].mxu0 %vm1225_vm4, %v3775_v32 }
0x13ab   : > { %8250 = vmatpush3.xpose.msk.msra.mxu0 %vm1225_vm4, %v3943_v30  ;;  %8251 = vmatprep.mubr.msk.f32.mxu0 %vm9027_vm1, %v9028_v13 }
0x13ac   : > { %8604 = vmatprep.subr.bf16.mxu0 %v9026_v10 }
0x13ad   : > { %v3941_v33 = vpop.permute.xlu1 %3940 }
0x13ae   : > { %8252 = vmatmul.mubr.msk.f32.vlgmr.msra.gmra.mrb[24].mxu0 %vm1225_vm4, %v3941_v33 }
0x13af   : > { %8267 = vmatprep.mubr.msk.f32.mxu0 %vm9027_vm1, %v9028_v13 }
0x13fc   : > { %v9673_v34 = vpop.f32.mrb[18].mxu0 }
0x13fd   : > { %v8207_v35 = vpop.f32.mrb[19].mxu0 }
0x1478   : > { %v3516_v36 = vpop.f32.mrb[30].mxu1 }
0x1479   : > { %v3520_v38 = vsel %vm1097_vm3, -1e+09, %v3516_v36  ;;  %v8223_v40 = vpop.f32.mrb[31].mxu1  ;;  %v3682_v41 = vpop.f32.mrb[20].mxu0  ;;  %v3437_v36 = vld [vmem:[%s10357_s29] sm:$0xff] }
0x147a   : > { %v3686_v42 = vsel %vm1097_vm3, -1e+09, %v3682_v41  ;;  %v8233_v43 = vpop.f32.mrb[21].mxu0  ;;  %v3521_v44 = vsel %vm1225_vm4, %v3520_v38, -inf  ;;  %v3439_v41 = vld [vmem:[%s10357_s29 + $0x10] sm:$0xff] }
0x147b   : > { %3522 = vmax.xlane.f32.xlu0 %v3521_v44  ;;  %v3687_v45 = vsel %vm1225_vm4, %v3686_v42, -inf }
0x147c   : > { %3688 = vmax.xlane.f32.xlu1 %v3687_v45 }
0x147d   : > { %v3848_v47 = vpop.f32.mrb[22].mxu0 }
0x147e   : > { %v3852_v48 = vsel %vm1097_vm3, -1e+09, %v3848_v47  ;;  %v8243_v49 = vpop.f32.mrb[23].mxu0 }
0x147f   : > { %v3853_v26 = vsel %vm1225_vm4, %v3852_v48, -inf }
0x1480   : > { %3854 = vmax.xlane.f32.xlu0 %v3853_v26 }
0x1481   : > { %v4014_v50 = vpop.f32.mrb[24].mxu0 }
0x1482   : > { %v4018_v51 = vsel %vm1097_vm3, -1e+09, %v4014_v50  ;;  %v8253_v27 = vpop.f32.mrb[25].mxu0 }
0x1483   : > { %v4019_v53 = vsel %vm1225_vm4, %v4018_v51, -inf  ;;  %v7675_v27 = vld [vmem:[%s10317_s24 + $0x1] ss:$0 sm:$0xff]  ;;  %s10360_s24 = sld [smem:[#allocation19_spill]] }
0x1484   : > { %4020 = vmax.xlane.f32.xlu0 %v4019_v53  ;;  %v3280_v53 = vadd.f32 %v7675_v27, %v9673_v34 }
0x148d   : > { %3532 = vrot.lane.b32.xlu1 %v9639_v20, %s10342_s18 }
0x1508   : > { %v3523_v54 = vpop.xlane.xlu0 %3522 }
0x1509   : > { %v3524_v55 = vsub.f32 %v3520_v38, %v3523_v54  ;;  %v3689_v56 = vpop.xlane.xlu1 %3688  ;;  %v3438_v38 = vld [vmem:[%s10357_s29 + $0x8] sm:$0xff]  ;;  %v3283_v54 = vadd.f32 %v3280_v53, %v9580_v5 }
0x150a   : > { %v3690_v58 = vsub.f32 %v3686_v42, %v3689_v56  ;;  %v8605_v40 = vpack.c.bf16 %v3438_v38, %v3437_v36  ;;  %v3440_v42 = vld [vmem:[%s10357_s29 + $0x18] sm:$0xff]  ;;  %v7677_v36 = vld [vmem:[%s10360_s24] ss:$0 sm:$0xff]  ;;  %s10364_s24 = sld [smem:[#allocation27_spill]] }
0x150b   : > { %v3525_v60 = vmul.f32 1.442695, %v3524_v55  ;;  %v8608_v43 = vpack.c.bf16 %v3440_v42, %v3439_v41  ;;  %v3286_v55 = vsel %vm1100_vm0, %v3283_v54, 0.0 }
0x150c   : > { %v3691_v61 = vmul.f32 1.442695, %v3690_v58  ;;  %8606 = vmatpush3.bf16.msra.mxu0 %v8605_v40  ;;  %v7678_v40 = vld [vmem:[%s10361_s10] ss:$0 sm:$0xff] }
0x150d   : > { %8836 = vpow2.f32 %v3525_v60  ;;  %v3533_v62 = vpop.permute.xlu1 %3532  ;;  %v3855_v1 = vpop.xlane.xlu0 %3854  ;;  %8607 = vmatprep.subr.bf16.mxu0 %v9026_v10 }
0x150e   : > { %8838 = vpow2.f32 %v3691_v61  ;;  %v3856_v2 = vsub.f32 %v3852_v48, %v3855_v1  ;;  %8225 = vmatpush3.msra.mxu1 %v3533_v62 }
0x150f   : > { %8234 = vmatprep.subr.mxu1 %v9028_v13 }
0x1510   : > { %v3857_v3 = vmul.f32 1.442695, %v3856_v2  ;;  %8609 = vmatpush3.bf16.msra.mxu0 %v8608_v43  ;;  %v7693_v2 = vld [vmem:[%s10358_s30] ss:$0 sm:$0xff] }
0x1511   : > { %v4021_v16 = vpop.xlane.xlu0 %4020  ;;  %8616 = vmatprep.subr.bf16.mxu0 %v9026_v10  ;;  %v4231_v43 = vld [vmem:[%s10362_s15] sm:$0xff]  ;;  %s10365_s15 = sld [smem:[#allocation25_spill]] }
0x1512   : > { %8840 = vpow2.f32 %v3857_v3  ;;  %v4022_v17 = vsub.f32 %v4018_v51, %v4021_v16 }
0x1514   : > { %v4023_v4 = vmul.f32 1.442695, %v4022_v17 }
0x1516   : > { %8842 = vpow2.f32 %v4023_v4 }
0x1517   : > { %v8837_v63 = vpop.eup %8836  ;;  %s10366_s10 = smov %s10365_s15 }
0x1518   : > { %v8839_v7 = vpop.eup %8838  ;;  %v3527_v8 = vsel %vm1225_vm4, %v8837_v63, 0.0 }
0x1519   : > { %3528 = vadd.xlane.f32.xlu1 %v3527_v8  ;;  %v3693_v9 = vsel %vm1225_vm4, %v8839_v7, 0.0 }
0x151a   : > { %3694 = vadd.xlane.f32.xlu0 %v3693_v9 }
0x151c   : > { %v8841_v11 = vpop.eup %8840 }
0x151d   : > { %v3859_v57 = vsel %vm1225_vm4, %v8841_v11, 0.0 }
0x151e   : > { %3860 = vadd.xlane.f32.xlu1 %v3859_v57  ;;  %v4317_v57 = vld [vmem:[%s10359_s23 + $0x8] sm:$0xff] }
0x1520   : > { %v8843_v12 = vpop.eup %8842 }
0x1521   : > { %v4025_v14 = vsel %vm1225_vm4, %v8843_v12, 0.0 }
0x1522   : > { %4026 = vadd.xlane.f32.xlu0 %v4025_v14 }
0x152f   : > { %3864 = vrot.lane.b32.xlu1 %v9639_v20, %s10343_s28 }
0x1533   : > { %4030 = vrot.lane.b32.xlu1 %v9639_v20, %s10344_s2 }
0x1538   : > { %3698 = vrot.lane.b32.xlu0 %v9639_v20, %s10345_s5 }
0x15a6   : > { %v3529_v0 = vpop.xlane.xlu1 %3528 }
0x15a7   : > { %8844 = vrcp.f32 %v3529_v0  ;;  %v3695_v15 = vpop.xlane.xlu0 %3694  ;;  %v4319_v0 = vld [vmem:[%s10359_s23 + $0x18] sm:$0xff] }
0x15a8   : > { %8846 = vrcp.f32 %v3695_v15 }
0x15ab   : > { %v3861_v18 = vpop.xlane.xlu1 %3860 }
0x15ac   : > { %8848 = vrcp.f32 %v3861_v18 }
0x15af   : > { %v4027_v19 = vpop.xlane.xlu0 %4026  ;;  %v3865_v20 = vpop.permute.xlu1 %3864 }
0x15b0   : > { %8850 = vrcp.f32 %v4027_v19 }
0x15b1   : > { %v8845_v21 = vpop.eup %8844 }
0x15b2   : > { %v3531_v22 = vmul.f32 %v8845_v21, %v8837_v63  ;;  %v8847_v23 = vpop.eup %8846 }
0x15b3   : > { %v3699_v28 = vpop.permute.xlu0 %3698  ;;  %v3697_v29 = vmul.f32 %v8847_v23, %v8839_v7  ;;  %v4031_v33 = vpop.permute.xlu1 %4030 }
0x15b4   : > { %8227 = vmatmul.mubr.msk.f32.vlgmr.msra.gmra.mrb[32].mxu1 %vm1225_vm4, %v3531_v22 }
0x15b5   : > { %8235 = vmatpush3.msra.mxu1 %v3699_v28  ;;  %8236 = vmatprep.mubr.msk.f32.mxu1 %vm9027_vm1, %v9028_v13 }
0x15b6   : > { %8244 = vmatprep.subr.mxu1 %v9028_v13  ;;  %v8849_v31 = vpop.eup %8848 }
0x15b7   : > { %v3863_v30 = vmul.f32 %v8849_v31, %v8841_v11  ;;  %v4316_v11 = vld [vmem:[%s10359_s23] sm:$0xff] }
0x15b8   : > { %8237 = vmatmul.mubr.msk.f32.vlgmr.msra.gmra.mrb[34].mxu1 %vm1225_vm4, %v3697_v29  ;;  %v8617_v14 = vpack.c.bf16 %v4317_v57, %v4316_v11 }
0x15b9   : > { %8245 = vmatpush3.msra.mxu1 %v3865_v20  ;;  %8246 = vmatprep.mubr.msk.f32.mxu1 %vm9027_vm1, %v9028_v13 }
0x15ba   : > { %8254 = vmatprep.subr.mxu1 %v9028_v13  ;;  %v8851_v32 = vpop.eup %8850 }
0x15bb   : > { %v4029_v35 = vmul.f32 %v8851_v32, %v8843_v12  ;;  %v4318_v12 = vld [vmem:[%s10359_s23 + $0x10] sm:$0xff] }
0x15bc   : > { %8247 = vmatmul.mubr.msk.f32.vlgmr.msra.gmra.mrb[36].mxu1 %vm1225_vm4, %v3863_v30  ;;  %v8620_v15 = vpack.c.bf16 %v4319_v0, %v4318_v12 }
0x15bd   : > { %8255 = vmatpush3.msra.mxu1 %v4031_v33  ;;  %8256 = vmatprep.mubr.msk.f32.mxu1 %vm9027_vm1, %v9028_v13 }
0x15be   : > { %8610 = vmatprep.subr.bf16.mxu1 %v9026_v10 }
0x15c0   : > { %8257 = vmatmul.mubr.msk.f32.vlgmr.msra.gmra.mrb[38].mxu1 %vm1225_vm4, %v4029_v35 }
0x15c1   : > { %8278 = vmatprep.mubr.msk.f32.mxu1 %vm9027_vm1, %v9028_v13 }
0x1687   : > { %v3604_v44 = vpop.f32.mrb[32].mxu1 }
0x1688   : > { %v8228_v45 = vpop.f32.mrb[33].mxu1 }
0x1689   : > { %v4233_v45 = vld [vmem:[%s10363_s7 + $0x10] sm:$0xff] }
0x168b   : > { %v3770_v47 = vpop.f32.mrb[34].mxu1 }
0x168c   : > { %4107 = vrot.lane.b32.xlu0 %v3770_v47, %s10347_s6  ;;  %v8238_v48 = vpop.f32.mrb[35].mxu1 }
0x168d   : > { %v4234_v48 = vld [vmem:[%s10363_s7 + $0x18] sm:$0xff] }
0x168f   : > { %v3936_v49 = vpop.f32.mrb[36].mxu1 }
0x1690   : > { %4111 = vrot.lane.b32.xlu1 %v3936_v49, %s10348_s13  ;;  %v8248_v26 = vpop.f32.mrb[37].mxu1  ;;  %v8614_v49 = vpack.c.bf16 %v4234_v48, %v4233_v45 }
0x1693   : > { %v4102_v50 = vpop.f32.mrb[38].mxu1 }
0x1694   : > { %4115 = vrot.lane.b32.xlu0 %v4102_v50, %s10349_s21  ;;  %v8258_v51 = vpop.f32.mrb[39].mxu1 }
0x16b4   : > { %3287 = vadd.xlane.f32.xlu1 %v3286_v55 }
0x16fe   : > { %v4108_v56 = vpop.permute.xlu0 %4107 }
0x16ff   : > { %v4118_v60 = vsel %vm1225_vm4, %v3604_v44, %v4108_v56  ;;  %v4232_v44 = vld [vmem:[%s10363_s7 + $0x8] sm:$0xff] }
0x1700   : > { %v8611_v47 = vpack.c.bf16 %v4232_v44, %v4231_v43 }
0x1702   : > { %v4112_v58 = vpop.permute.xlu1 %4111  ;;  %8612 = vmatpush3.bf16.msra.mxu1 %v8611_v47 }
0x1703   : > { %v4119_v61 = vsel %vm1900_vm6, %v4118_v60, %v4112_v58  ;;  %8613 = vmatprep.subr.bf16.mxu1 %v9026_v10  ;;  %v4224_v58 = vrot.slane %v9611_v59, %v9436_v39 }
0x1706   : > { %v4116_v62 = vpop.permute.xlu0 %4115  ;;  %8615 = vmatpush3.bf16.msra.mxu1 %v8614_v49 }
0x1707   : > { %v4120_v1 = vsel %vm1902_vm7, %v4119_v61, %v4116_v62  ;;  %8292 = vmatprep.subr.mxu1 %v9028_v13  ;;  %v4229_v62 = vrot.slane %v9619_v6, %v9436_v39 }
0x1708   : > { %8268 = vmatmul.mubr.msk.f32.vlgmr.msra.gmra.mrb[26].mxu0 %vm1100_vm0, %v4120_v1 }
0x1709   : > { %8289 = vmatprep.mubr.msk.f32.mxu0 %vm9027_vm1, %v9028_v13  ;;  %8618 = vmatpush3.bf16.msra.mxu0 %v8617_v14 }
0x170a   : > { %8619 = vmatprep.subr.bf16.mxu0 %v9026_v10 }
0x170d   : > { %8621 = vmatpush3.bf16.msra.mxu0 %v8620_v15 }
0x170e   : > { %8302 = vmatprep.subr.mxu0 %v9028_v13 }
0x1741   : > { %v3288_v5 = vpop.xlane.xlu1 %3287 }
0x1742   : > { %v3289_v34 = vmul.f32 0.03125, %v3288_v5 }
0x1744   : > { %v3290_v16 = vsub.f32 %v3283_v54, %v3289_v34  ;;  %v7697_v34 = vld [vmem:[%s10364_s24] ss:$0 sm:$0xff] }
0x1746   : > { %v3291_v8 = vmul.f32 %v3290_v16, %v3290_v16 }
0x1748   : > { %v3292_v9 = vsel %vm1100_vm0, %v3291_v8, 0.0 }
0x17db   : > { %v4196_v3 = vpop.f32.mrb[26].mxu0 }
0x17dc   : > { %v4197_v17 = vadd.f32 %v7693_v2, %v4196_v3  ;;  %v8269_v4 = vpop.f32.mrb[27].mxu0 }
0x17dd   : > { %v7695_v4 = vld [vmem:[%s10365_s15] ss:$0 sm:$0xff]  ;;  %s10367_s15 = sld [smem:[#allocation28_spill]] }
0x17de   : > { %v9741_v63 = vadd.f32 %v4197_v17, %v9565_v52 }
0x17e0   : > { %v4201_v7 = vsel %vm1100_vm0, %v9741_v63, 0.0 }
0x17e1   : > { %4202 = vadd.xlane.f32.xlu0 %v4201_v7 }
0x17e3   : > { %s10368_s12 = smov %s10367_s15 }
0x17e5   : > { %3293 = vadd.xlane.f32.xlu0 %v3292_v9 }
0x186e   : > { %v4203_v52 = vpop.xlane.xlu0 %4202 }
0x186f   : > { %v4204_v18 = vmul.f32 0.03125, %v4203_v52 }
0x1871   : > { %v4205_v19 = vsub.f32 %v9741_v63, %v4204_v18 }
0x1872   : > { %v3294_v21 = vpop.xlane.xlu0 %3293 }
0x1873   : > { %v3295_v22 = vmul.f32 0.032258064, %v3294_v21  ;;  %v4206_v23 = vmul.f32 %v4205_v19, %v4205_v19 }
0x1875   : > { %8852 = vrsqrt.f32 %v3295_v22  ;;  %v4207_v28 = vsel %vm1100_vm0, %v4206_v23, 0.0  ;;  %vm3298_vm8 = vcmp.eq.f32.partialorder %v3295_v22, inf  ;;  %v3301_v31 = vand.u32 2147483648, %v3295_v22 }
0x1876   : > { %4208 = vadd.xlane.f32.xlu1 %v4207_v28  ;;  %vm3300_vm9 = vcmp.eq.f32.partialorder %v3295_v22, 0.0 }
0x187f   : > { %v8853_v29 = vpop.eup %8852 }
0x1880   : > { %v3297_v20 = vmul.f32 %v8853_v29, %v3295_v22 }
0x1882   : > { %v3299_v30 = vsel %vm3298_vm8, %v3295_v22, %v3297_v20 }
0x1883   : > { %v3302_v32 = vsel %vm3300_vm9, %v3301_v31, %v3299_v30 }
0x1884   : > { %v3303_v33 = vadd.f32 1e-06, %v3302_v32 }
0x1886   : > { %8854 = vrcp.f32 %v3303_v33 }
0x1890   : > { %v8855_v35 = vpop.eup %8854 }
0x1891   : > { %v3305_v38 = vmul.f32 %v8855_v35, %v3290_v16 }
0x1893   : > { %v3312_v41 = vmul.f32 %v7677_v36, %v3305_v38 }
0x1895   : > { %v9756_v42 = vadd.f32 %v7678_v40, %v3312_v41 }
0x1897   : > { %8290 = vmatmul.mubr.msk.f32.vlgmr.msra.gmra.mrb[28].mxu0 %vm1100_vm0, %v9756_v42 }
0x1898   : > { %8304 = vmatprep.mubr.msk.f32.mxu0 %vm9027_vm1, %v9028_v13 }
0x1903   : > { %v4209_v26 = vpop.xlane.xlu1 %4208 }
0x1904   : > { %v4210_v50 = vmul.f32 0.032258064, %v4209_v26 }
0x1906   : > { %8856 = vrsqrt.f32 %v4210_v50  ;;  %vm4213_vm11 = vcmp.eq.f32.partialorder %v4210_v50, inf  ;;  %v4216_v53 = vand.u32 2147483648, %v4210_v50  ;;  %vm4215_vm12 = vcmp.eq.f32.partialorder %v4210_v50, 0.0 }
0x1910   : > { %v8857_v51 = vpop.eup %8856 }
0x1911   : > { %v4212_v27 = vmul.f32 %v8857_v51, %v4210_v50 }
0x1913   : > { %v4214_v54 = vsel %vm4213_vm11, %v4210_v50, %v4212_v27 }
0x1914   : > { %v4217_v55 = vsel %vm4215_vm12, %v4216_v53, %v4214_v54 }
0x1915   : > { %v4218_v56 = vadd.f32 1e-06, %v4217_v55 }
0x1917   : > { %8858 = vrcp.f32 %v4218_v56 }
0x1921   : > { %v8859_v60 = vpop.eup %8858 }
0x1922   : > { %v4220_v61 = vmul.f32 %v8859_v60, %v4205_v19 }
0x1924   : > { %v4225_v1 = vmul.f32 %v4224_v58, %v4220_v61 }
0x1926   : > { %v4230_v5 = vadd.f32 %v4229_v62, %v4225_v1 }
0x1928   : > { %8279 = vmatmul.mubr.msk.f32.vlgmr.msra.gmra.mrb[40].mxu1 %vm1100_vm0, %v4230_v5 }
0x1929   : > { %8294 = vmatprep.mubr.msk.f32.mxu1 %vm9027_vm1, %v9028_v13 }
0x196a   : > { %v4396_v2 = vpop.f32.mrb[28].mxu0 }
0x196b   : > { %v9776_v3 = vadd.f32 %v7697_v34, %v4396_v2  ;;  %v8291_v16 = vpop.f32.mrb[29].mxu0 }
0x196d   : > { %4571 = vrot.lane.b32.xlu0 %v9776_v3, %s10354_s14  ;;  %8293 = vmatpush3.xpose.msk.msra.mxu1 %vm1225_vm4, %v9776_v3 }
0x196e   : > { %8297 = vmatprep.subr.mxu1 %v9028_v13 }
0x19df   : > { %v4572_v17 = vpop.permute.xlu0 %4571 }
0x19e0   : > { %8303 = vmatpush3.xpose.msk.msra.mxu0 %vm1225_vm4, %v4572_v17 }
0x19e1   : > { %8312 = vmatprep.subr.mxu0 %v9028_v13 }
0x19fb   : > { %v4311_v7 = vpop.f32.mrb[40].mxu1 }
0x19fc   : > { %v4312_v8 = vadd.f32 %v7695_v4, %v4311_v7  ;;  %v8280_v9 = vpop.f32.mrb[41].mxu1 }
0x19fe   : > { %v4315_v11 = vmul.f32 0.35355338, %v4312_v8 }
0x1a00   : > { %4735 = vrot.lane.b32.xlu0 %v4315_v11, %s10340_s11  ;;  %4569 = vrot.lane.b32.xlu1 %v4315_v11, %s10354_s14 }
0x1a01   : > { %8295 = vmatmul.mubr.msk.f32.vlgmr.msra.gmra.mrb[42].mxu1 %vm1225_vm4, %v4315_v11 }
0x1a02   : > { %8299 = vmatprep.mubr.msk.f32.mxu1 %vm9027_vm1, %v9028_v13 }
0x1a04   : > { %4901 = vrot.lane.b32.xlu0 %v4315_v11, %s10341_s26  ;;  %4737 = vrot.lane.b32.xlu1 %v9776_v3, %s10340_s11 }
0x1a08   : > { %4903 = vrot.lane.b32.xlu1 %v9776_v3, %s10341_s26 }
0x1a72   : > { %v4570_v57 = vpop.permute.xlu1 %4569  ;;  %v4736_v14 = vpop.permute.xlu0 %4735 }
0x1a73   : > { %8305 = vmatmul.mubr.msk.f32.vlgmr.msra.gmra.mrb[30].mxu0 %vm1225_vm4, %v4570_v57 }
0x1a74   : > { %8314 = vmatprep.mubr.msk.f32.mxu0 %vm9027_vm1, %v9028_v13 }
0x1a76   : > { %v4738_v12 = vpop.permute.xlu1 %4737  ;;  %v4902_v15 = vpop.permute.xlu0 %4901 }
0x1a77   : > { %8313 = vmatpush3.xpose.msk.msra.mxu0 %vm1225_vm4, %v4738_v12 }
0x1a78   : > { %8322 = vmatprep.subr.mxu0 %v9028_v13 }
0x1a7a   : > { %8315 = vmatmul.mubr.msk.f32.vlgmr.msra.gmra.mrb[32].mxu0 %vm1225_vm4, %v4736_v14  ;;  %v4904_v0 = vpop.permute.xlu1 %4903 }
0x1a7b   : > { %8323 = vmatpush3.xpose.msk.msra.mxu0 %vm1225_vm4, %v4904_v0  ;;  %8324 = vmatprep.mubr.msk.f32.mxu0 %vm9027_vm1, %v9028_v13 }
0x1a7c   : > { %8622 = vmatprep.subr.bf16.mxu0 %v9026_v10 }
0x1a7e   : > { %8325 = vmatmul.mubr.msk.f32.vlgmr.msra.gmra.mrb[34].mxu0 %vm1225_vm4, %v4902_v15 }
0x1a7f   : > { %8340 = vmatprep.mubr.msk.f32.mxu0 %vm9027_vm1, %v9028_v13 }
0x1ad4   : > { %v4477_v52 = vpop.f32.mrb[42].mxu1 }
0x1ad5   : > { %v4481_v18 = vsel %vm1096_vm5, -1e+09, %v4477_v52  ;;  %v8296_v19 = vpop.f32.mrb[43].mxu1 }
0x1ad6   : > { %v4482_v21 = vsel %vm1225_vm4, %v4481_v18, -inf  ;;  %v4401_v19 = vld [vmem:[%s10368_s12 + $0x8] sm:$0xff] }
0x1ad7   : > { %4483 = vmax.xlane.f32.xlu1 %v4482_v21 }
0x1b46   : > { %v4643_v22 = vpop.f32.mrb[30].mxu0 }
0x1b47   : > { %v4647_v23 = vsel %vm1096_vm5, -1e+09, %v4643_v22  ;;  %v8306_v28 = vpop.f32.mrb[31].mxu0  ;;  %v4402_v22 = vld [vmem:[%s10368_s12 + $0x10] sm:$0xff] }
0x1b48   : > { %v4648_v29 = vsel %vm1225_vm4, %v4647_v23, -inf }
0x1b49   : > { %4649 = vmax.xlane.f32.xlu0 %v4648_v29 }
0x1b4d   : > { %v4809_v20 = vpop.f32.mrb[32].mxu0 }
0x1b4e   : > { %v4813_v31 = vsel %vm1096_vm5, -1e+09, %v4809_v20  ;;  %v8316_v30 = vpop.f32.mrb[33].mxu0 }
0x1b4f   : > { %v4814_v32 = vsel %vm1225_vm4, %v4813_v31, -inf }
0x1b50   : > { %4815 = vmax.xlane.f32.xlu0 %v4814_v32 }
0x1b51   : > { %v4975_v33 = vpop.f32.mrb[34].mxu0 }
0x1b52   : > { %v4979_v35 = vsel %vm1096_vm5, -1e+09, %v4975_v33  ;;  %v8326_v36 = vpop.f32.mrb[35].mxu0 }
0x1b53   : > { %v4980_v38 = vsel %vm1225_vm4, %v4979_v35, -inf }
0x1b54   : > { %4981 = vmax.xlane.f32.xlu1 %v4980_v38 }
0x1b64   : > { %v4484_v40 = vpop.xlane.xlu1 %4483 }
0x1b65   : > { %v4485_v41 = vsub.f32 %v4481_v18, %v4484_v40  ;;  %4659 = vrot.lane.b32.xlu1 %v9776_v3, %s10352_s8  ;;  %v4400_v18 = vld [vmem:[%s10367_s15] sm:$0xff]  ;;  %s10370_s15 = sld [smem:[#allocation30_spill]] }
0x1b66   : > { %v8623_v21 = vpack.c.bf16 %v4401_v19, %v4400_v18 }
0x1b67   : > { %v4486_v43 = vmul.f32 1.442695, %v4485_v41 }
0x1b68   : > { %8624 = vmatpush3.bf16.msra.mxu0 %v8623_v21 }
0x1b69   : > { %8860 = vpow2.f32 %v4486_v43  ;;  %8625 = vmatprep.subr.bf16.mxu0 %v9026_v10 }
0x1b6b   : > { %s10371_s4 = smov %s10370_s15 }
0x1b73   : > { %v8861_v44 = vpop.eup %8860 }
0x1b74   : > { %v4488_v45 = vsel %vm1225_vm4, %v8861_v44, 0.0 }
0x1b75   : > { %4489 = vadd.xlane.f32.xlu0 %v4488_v45 }
0x1b8b   : > { %4493 = vrot.lane.b32.xlu0 %v9776_v3, %s10339_s1 }
0x1bd6   : > { %v4650_v47 = vpop.xlane.xlu0 %4649 }
0x1bd7   : > { %v4651_v48 = vsub.f32 %v4647_v23, %v4650_v47  ;;  %v4403_v23 = vld [vmem:[%s10368_s12 + $0x18] sm:$0xff] }
0x1bd8   : > { %v8626_v28 = vpack.c.bf16 %v4403_v23, %v4402_v22 }
0x1bd9   : > { %v4652_v49 = vmul.f32 1.442695, %v4651_v48 }
0x1bda   : > { %8627 = vmatpush3.bf16.msra.mxu0 %v8626_v28  ;;  %v5203_v28 = vld [vmem:[%s10372_s17 + $0x30] sm:$0xff] }
0x1bdb   : > { %8862 = vpow2.f32 %v4652_v49  ;;  %8634 = vmatprep.subr.bf16.mxu0 %v9026_v10 }
0x1bdd   : > { %v4816_v26 = vpop.xlane.xlu0 %4815 }
0x1bde   : > { %v4817_v50 = vsub.f32 %v4813_v31, %v4816_v26 }
0x1be0   : > { %v4818_v51 = vmul.f32 1.442695, %v4817_v50 }
0x1be1   : > { %v4982_v27 = vpop.xlane.xlu1 %4981 }
0x1be2   : > { %8864 = vpow2.f32 %v4818_v51  ;;  %v4983_v53 = vsub.f32 %v4979_v35, %v4982_v27 }
0x1be4   : > { %v4984_v54 = vmul.f32 1.442695, %v4983_v53 }
0x1be5   : > { %v8863_v55 = vpop.eup %8862  ;;  %v4660_v16 = vpop.permute.xlu1 %4659 }
0x1be6   : > { %8866 = vpow2.f32 %v4984_v54  ;;  %v4654_v56 = vsel %vm1225_vm4, %v8863_v55, 0.0 }
0x1be7   : > { %4655 = vadd.xlane.f32.xlu1 %v4654_v56  ;;  %v5193_v56 = vld [vmem:[%s10371_s4 + $0x8] sm:$0xff] }
0x1bec   : > { %v8865_v58 = vpop.eup %8864 }
0x1bed   : > { %v4820_v60 = vsel %vm1225_vm4, %v8865_v58, 0.0 }
0x1bee   : > { %4821 = vadd.xlane.f32.xlu0 %v4820_v60  ;;  %v5195_v60 = vld [vmem:[%s10371_s4 + $0x18] sm:$0xff] }
0x1bf0   : > { %v8867_v61 = vpop.eup %8866 }
0x1bf1   : > { %v4986_v62 = vsel %vm1225_vm4, %v8867_v61, 0.0 }
0x1bf2   : > { %4987 = vadd.xlane.f32.xlu1 %v4986_v62  ;;  %v5197_v62 = vld [vmem:[%s10372_s17] sm:$0xff] }
0x1c02   : > { %v4490_v1 = vpop.xlane.xlu0 %4489 }
0x1c03   : > { %8868 = vrcp.f32 %v4490_v1  ;;  %4825 = vrot.lane.b32.xlu1 %v9776_v3, %s10353_s9  ;;  %v5198_v1 = vld [vmem:[%s10372_s17 + $0x8] sm:$0xff] }
0x1c04   : > { %4991 = vrot.lane.b32.xlu0 %v9776_v3, %s10355_s19 }
0x1c06   : > { %v4494_v5 = vpop.permute.xlu0 %4493 }
0x1c07   : > { %8298 = vmatpush3.msra.mxu1 %v4494_v5  ;;  %v5199_v5 = vld [vmem:[%s10372_s17 + $0x10] sm:$0xff] }
0x1c08   : > { %8307 = vmatprep.subr.mxu1 %v9028_v13 }
0x1c0d   : > { %v8869_v34 = vpop.eup %8868 }
0x1c0e   : > { %v4492_v2 = vmul.f32 %v8869_v34, %v8861_v44  ;;  %v7711_v44 = vld [vmem:[%s10369_s22] ss:$0 sm:$0xff]  ;;  %v8635_v34 = vpack.c.bf16 %v5198_v1, %v5197_v62  ;;  %s10373_s22 = sld [smem:[#allocation31_spill]]  ;;  %v9919_v62 = vld [vmem:[%s10350_s25 + $0x4] sm:$0x7] }
0x1c0f   : > { %v9922_v1 = vld [vmem:[%s9207_s20 + $0x4] sm:$0x7] }
0x1c10   : > { %8300 = vmatmul.mubr.msk.f32.vlgmr.msra.gmra.mrb[44].mxu1 %vm1225_vm4, %v4492_v2  ;;  %v5200_v2 = vld [vmem:[%s10372_s17 + $0x18] sm:$0xff] }
0x1c11   : > { %8308 = vmatpush3.msra.mxu1 %v4660_v16  ;;  %8309 = vmatprep.mubr.msk.f32.mxu1 %vm9027_vm1, %v9028_v13  ;;  %v8638_v16 = vpack.c.bf16 %v5200_v2, %v5199_v5  ;;  %v5393_v5 = vrot.slane %v9919_v62, %v9302_v25 }
0x1c12   : > { %8317 = vmatprep.subr.mxu1 %v9028_v13 }
0x1c74   : > { %v4656_v17 = vpop.xlane.xlu1 %4655 }
0x1c75   : > { %8870 = vrcp.f32 %v4656_v17  ;;  %v5201_v17 = vld [vmem:[%s10372_s17 + $0x20] sm:$0xff] }
0x1c7b   : > { %v4822_v4 = vpop.xlane.xlu0 %4821 }
0x1c7c   : > { %8872 = vrcp.f32 %v4822_v4  ;;  %v5202_v4 = vld [vmem:[%s10372_s17 + $0x28] sm:$0xff] }
0x1c7f   : > { %v8871_v3 = vpop.eup %8870  ;;  %v4988_v7 = vpop.xlane.xlu1 %4987 }
0x1c80   : > { %v4658_v8 = vmul.f32 %v8871_v3, %v8863_v55  ;;  %8874 = vrcp.f32 %v4988_v7  ;;  %v4992_v12 = vpop.permute.xlu0 %4991  ;;  %v5192_v55 = vld [vmem:[%s10370_s15] sm:$0xff]  ;;  %v8641_v3 = vpack.c.bf16 %v5202_v4, %v5201_v17  ;;  %s10375_s15 = sld [smem:[#allocation33_spill]] }
0x1c82   : > { %8310 = vmatmul.mubr.msk.f32.vlgmr.msra.gmra.mrb[46].mxu1 %vm1225_vm4, %v4658_v8 }
0x1c83   : > { %v4826_v9 = vpop.permute.xlu1 %4825  ;;  %8319 = vmatprep.mubr.msk.f32.mxu1 %vm9027_vm1, %v9028_v13 }
0x1c84   : > { %8318 = vmatpush3.msra.mxu1 %v4826_v9 }
0x1c85   : > { %8327 = vmatprep.subr.mxu1 %v9028_v13 }
0x1c86   : > { %v8873_v11 = vpop.eup %8872  ;;  %s10376_s0 = smov %s10375_s15 }
0x1c87   : > { %v4824_v57 = vmul.f32 %v8873_v11, %v8865_v58  ;;  %v8629_v58 = vpack.c.bf16 %v5193_v56, %v5192_v55 }
0x1c89   : > { %8320 = vmatmul.mubr.msk.f32.vlgmr.msra.gmra.mrb[48].mxu1 %vm1225_vm4, %v4824_v57 }
0x1c8a   : > { %v8875_v14 = vpop.eup %8874  ;;  %8328 = vmatpush3.msra.mxu1 %v4992_v12  ;;  %8329 = vmatprep.mubr.msk.f32.mxu1 %vm9027_vm1, %v9028_v13 }
0x1c8b   : > { %v4990_v0 = vmul.f32 %v8875_v14, %v8867_v61  ;;  %8628 = vmatprep.subr.bf16.mxu1 %v9026_v10 }
0x1c8d   : > { %8330 = vmatmul.mubr.msk.f32.vlgmr.msra.gmra.mrb[50].mxu1 %vm1225_vm4, %v4990_v0 }
0x1c8e   : > { %8351 = vmatprep.mubr.msk.f32.mxu1 %vm9027_vm1, %v9028_v13  ;;  %8630 = vmatpush3.bf16.msra.mxu1 %v8629_v58 }
0x1c8f   : > { %8631 = vmatprep.subr.bf16.mxu1 %v9026_v10 }
0x1ce3   : > { %v4565_v15 = vpop.f32.mrb[44].mxu1 }
0x1ce4   : > { %v8301_v52 = vpop.f32.mrb[45].mxu1 }
0x1d55   : > { %v4731_v29 = vpop.f32.mrb[46].mxu1 }
0x1d56   : > { %5068 = vrot.lane.b32.xlu1 %v4731_v29, %s10347_s6  ;;  %v8311_v20 = vpop.f32.mrb[47].mxu1  ;;  %v5204_v29 = vld [vmem:[%s10372_s17 + $0x38] sm:$0xff] }
0x1d5c   : > { %v4897_v31 = vpop.f32.mrb[48].mxu1 }
0x1d5d   : > { %5072 = vrot.lane.b32.xlu0 %v4897_v31, %s10348_s13  ;;  %v8321_v30 = vpop.f32.mrb[49].mxu1 }
0x1d60   : > { %v5063_v32 = vpop.f32.mrb[50].mxu1 }
0x1d61   : > { %5076 = vrot.lane.b32.xlu1 %v5063_v32, %s10349_s21  ;;  %v8331_v33 = vpop.f32.mrb[51].mxu1 }
0x1dc8   : > { %v5069_v35 = vpop.permute.xlu1 %5068 }
0x1dc9   : > { %v5079_v38 = vsel %vm1225_vm4, %v4565_v15, %v5069_v35  ;;  %v9888_v15 = vsub.s32 2, %v9299_v24  ;;  %v8644_v24 = vpack.c.bf16 %v5204_v29, %v5203_v28 }
0x1dcb   : > { %v5185_v52 = vrot.slane %v9611_v59, %v9888_v15  ;;  %v5190_v21 = vrot.slane %v9619_v6, %v9888_v15  ;;  %v7713_v59 = vld [vmem:[%s10373_s22] ss:$0 sm:$0xff] }
0x1dcc   : > { %v7715_v6 = vld [vmem:[%s10375_s15] ss:$0 sm:$0xff]  ;;  %s9043_s15 = smov [#allocation2]  }
0x1dcf   : > { %v5073_v36 = vpop.permute.xlu0 %5072 }
0x1dd0   : > { %v5080_v40 = vsel %vm1900_vm6, %v5079_v38, %v5073_v36 }
0x1dd3   : > { %v5077_v41 = vpop.permute.xlu1 %5076 }
0x1dd4   : > { %v5081_v43 = vsel %vm1902_vm7, %v5080_v40, %v5077_v41 }
0x1dd5   : > { %8341 = vmatmul.mubr.msk.f32.vlgmr.msra.gmra.mrb[36].mxu0 %vm1100_vm0, %v5081_v43 }
0x1dd6   : > { %8370 = vmatprep.mubr.msk.f32.mxu0 %vm9027_vm1, %v9028_v13  ;;  %8636 = vmatpush3.bf16.msra.mxu0 %v8635_v34 }
0x1dd7   : > { %8637 = vmatprep.subr.bf16.mxu0 %v9026_v10 }
0x1dda   : > { %8639 = vmatpush3.bf16.msra.mxu0 %v8638_v16  ;;  %v5398_v16 = vrot.slane %v9922_v1, %v9302_v25 }
0x1ddb   : > { %8640 = vmatprep.subr.bf16.mxu0 %v9026_v10 }
0x1dde   : > { %8642 = vmatpush3.bf16.msra.mxu0 %v8641_v3  ;;  %v7724_v3 = vld [vmem:[%s10351_s3 + $0x1] ss:$0 sm:$0xff] }
0x1ddf   : > { %8643 = vmatprep.subr.bf16.mxu0 %v9026_v10 }
0x1de2   : > { %8645 = vmatpush3.bf16.msra.mxu0 %v8644_v24 }
0x1de3   : > { %8394 = vmatprep.subr.mxu0 %v9028_v13 }
0x1ea8   : > { %v5157_v45 = vpop.f32.mrb[36].mxu0 }
0x1ea9   : > { %v5158_v47 = vadd.f32 %v7711_v44, %v5157_v45  ;;  %v8342_v48 = vpop.f32.mrb[37].mxu0 }
0x1eaa   : > { %v7719_v48 = vld [vmem:[%s9132_s27 + $0x20] sm:$0xff] }
0x1eab   : > { %v9866_v49 = vadd.f32 %v5158_v47, %v9741_v63  ;;  %v5194_v63 = vld [vmem:[%s10371_s4 + $0x10] sm:$0xff]  ;;  %s10374_s4 = smov %s10373_s22 }
0x1eac   : > { %v8632_v61 = vpack.c.bf16 %v5195_v60, %v5194_v63 }
0x1ead   : > { %v5162_v26 = vsel %vm1100_vm0, %v9866_v49, 0.0 }
0x1eae   : > { %5163 = vadd.xlane.f32.xlu0 %v5162_v26  ;;  %8633 = vmatpush3.bf16.msra.mxu1 %v8632_v61  ;;  %v7720_v26 = vld [vmem:[%s9132_s27 + $0x28] sm:$0xff] }
0x1eaf   : > { %8646 = vmatprep.subr.bf16.mxu1 %v9026_v10 }
0x1f3b   : > { %v5164_v50 = vpop.xlane.xlu0 %5163 }
0x1f3c   : > { %v5165_v51 = vmul.f32 0.03125, %v5164_v50  ;;  %v7721_v50 = vld [vmem:[%s9132_s27 + $0x30] sm:$0xff] }
0x1f3e   : > { %v5166_v27 = vsub.f32 %v9866_v49, %v5165_v51  ;;  %v8647_v51 = vpack.c.bf16 %v7720_v26, %v7719_v48 }
0x1f40   : > { %v5167_v53 = vmul.f32 %v5166_v27, %v5166_v27 }
0x1f42   : > { %v5168_v54 = vsel %vm1100_vm0, %v5167_v53, 0.0 }
0x1f43   : > { %5169 = vadd.xlane.f32.xlu1 %v5168_v54 }
0x1fd0   : > { %v5170_v7 = vpop.xlane.xlu1 %5169 }
0x1fd1   : > { %v5171_v8 = vmul.f32 0.032258064, %v5170_v7 }
0x1fd3   : > { %8876 = vrsqrt.f32 %v5171_v8  ;;  %vm5174_vm13 = vcmp.eq.f32.partialorder %v5171_v8, inf  ;;  %v5177_v57 = vand.u32 2147483648, %v5171_v8  ;;  %vm5176_vm14 = vcmp.eq.f32.partialorder %v5171_v8, 0.0 }
0x1fdd   : > { %v8877_v9 = vpop.eup %8876 }
0x1fde   : > { %v5173_v11 = vmul.f32 %v8877_v9, %v5171_v8 }
0x1fe0   : > { %v5175_v12 = vsel %vm5174_vm13, %v5171_v8, %v5173_v11 }
0x1fe1   : > { %v5178_v14 = vsel %vm5176_vm14, %v5177_v57, %v5175_v12 }
0x1fe2   : > { %v5179_v0 = vadd.f32 1e-06, %v5178_v14 }
0x1fe4   : > { %8878 = vrcp.f32 %v5179_v0 }
0x1fee   : > { %v8879_v18 = vpop.eup %8878 }
0x1fef   : > { %v5181_v19 = vmul.f32 %v8879_v18, %v5166_v27  ;;  %v7722_v27 = vld [vmem:[%s9132_s27 + $0x38] sm:$0xff] }
0x1ff1   : > { %v5186_v22 = vmul.f32 %v5185_v52, %v5181_v19 }
0x1ff3   : > { %v5191_v23 = vadd.f32 %v5190_v21, %v5186_v22 }
0x1ff5   : > { %8352 = vmatmul.mubr.msk.f32.vlgmr.msra.gmra.mrb[52].mxu1 %vm1100_vm0, %v5191_v23 }
0x1ff6   : > { %8381 = vmatprep.mubr.msk.f32.mxu1 %vm9027_vm1, %v9028_v13  ;;  %8648 = vmatpush3.bf16.msra.mxu1 %v8647_v51 }
0x1ff7   : > { %8649 = vmatprep.subr.bf16.mxu1 %v9026_v10 }
0x20c8   : > { %v5281_v20 = vpop.f32.mrb[52].mxu1 }
0x20c9   : > { %v5282_v31 = vadd.f32 %v7713_v59, %v5281_v20  ;;  %v8353_v30 = vpop.f32.mrb[53].mxu1 }
0x20cb   : > { %v5285_v32 = vmax.f32 %v5282_v31, 0.0 }
0x20cd   : > { %8371 = vmatmul.mubr.msk.f32.vlgmr.msra.gmra.mrb[38].mxu0 %vm2114_vm10, %v5285_v32 }
0x20ce   : > { %8396 = vmatprep.mubr.msk.f32.mxu0 %vm9027_vm1, %v9028_v13 }
0x21a0   : > { %v5361_v33 = vpop.f32.mrb[38].mxu0 }
0x21a1   : > { %v5362_v35 = vadd.f32 %v7715_v6, %v5361_v33  ;;  %v8372_v36 = vpop.f32.mrb[39].mxu0 }
0x21a3   : > { %v9906_v38 = vadd.f32 %v5362_v35, %v9866_v49  ;;  %v8650_v49 = vpack.c.bf16 %v7722_v27, %v7721_v50 }
0x21a5   : > { %v5370_v40 = vsel %vm1100_vm0, %v9906_v38, 0.0  ;;  %8651 = vmatpush3.bf16.msra.mxu1 %v8650_v49 }
0x21a6   : > { %5371 = vadd.xlane.f32.xlu0 %v5370_v40  ;;  %8384 = vmatprep.subr.mxu1 %v9028_v13 }
0x2233   : > { %v5372_v41 = vpop.xlane.xlu0 %5371 }
0x2234   : > { %v5373_v43 = vmul.f32 0.03125, %v5372_v41 }
0x2236   : > { %v5374_v44 = vsub.f32 %v9906_v38, %v5373_v43 }
0x2238   : > { %v5375_v45 = vmul.f32 %v5374_v44, %v5374_v44 }
0x223a   : > { %v5376_v47 = vsel %vm1100_vm0, %v5375_v45, 0.0 }
0x223b   : > { %5377 = vadd.xlane.f32.xlu0 %v5376_v47 }
0x22c8   : > { %v5378_v53 = vpop.xlane.xlu0 %5377 }
0x22c9   : > { %v5379_v54 = vmul.f32 0.032258064, %v5378_v53 }
0x22cb   : > { %8880 = vrsqrt.f32 %v5379_v54  ;;  %vm5382_vm15 = vcmp.eq.f32.partialorder %v5379_v54, inf  ;;  %v5385_v63 = vand.u32 2147483648, %v5379_v54  ;;  %vm5384_vm2 = vcmp.eq.f32.partialorder %v5379_v54, 0.0 }
0x22d5   : > { %v8881_v55 = vpop.eup %8880 }
0x22d6   : > { %v5381_v56 = vmul.f32 %v8881_v55, %v5379_v54 }
0x22d8   : > { %v5383_v58 = vsel %vm5382_vm15, %v5379_v54, %v5381_v56 }
0x22d9   : > { %v5386_v60 = vsel %vm5384_vm2, %v5385_v63, %v5383_v58 }
0x22da   : > { %v5387_v61 = vadd.f32 1e-06, %v5386_v60 }
0x22dc   : > { %8882 = vrcp.f32 %v5387_v61 }
0x22e6   : > { %v8883_v34 = vpop.eup %8882 }
0x22e7   : > { %v5389_v2 = vmul.f32 %v8883_v34, %v5374_v44 }
0x22e9   : > { %v5394_v17 = vmul.f32 %v5393_v5, %v5389_v2 }
0x22eb   : > { %v5399_v4 = vadd.f32 %v5398_v16, %v5394_v17 }
0x22ed   : > { %8382 = vmatmul.mubr.msk.f32.vlgmr.msra.gmra.mrb[54].mxu1 %vm1100_vm0, %v5399_v4 }
0x22ee   : > { %8386 = vmatprep.mubr.msk.f32.mxu1 %vm9027_vm1, %v9028_v13 }
0x23c0   : > { %v5482_v7 = vpop.f32.mrb[54].mxu1 }
0x23c1   : > { %v9932_v8 = vadd.f32 %v7724_v3, %v5482_v7  ;;  %v8383_v9 = vpop.f32.mrb[55].mxu1 }
0x23c3   : > { %5662 = vrot.lane.b32.xlu0 %v9932_v8, %s10352_s8  ;;  %5495 = vrot.lane.b32.xlu1 %v9932_v8, %s10339_s1  ;;  %v5486_v25 = vmul.f32 0.35355338, %v9932_v8 }
0x23c7   : > { %5826 = vrot.lane.b32.xlu0 %v5486_v25, %s10340_s11  ;;  %5660 = vrot.lane.b32.xlu1 %v5486_v25, %s10354_s14 }
0x23cb   : > { %5992 = vrot.lane.b32.xlu0 %v5486_v25, %s10341_s26  ;;  %5828 = vrot.lane.b32.xlu1 %v9932_v8, %s10353_s9 }
0x23cf   : > { %5994 = vrot.lane.b32.xlu1 %v9932_v8, %s10355_s19 }
0x2435   : > { %v5663_v11 = vpop.permute.xlu0 %5662  ;;  %v5496_v57 = vpop.permute.xlu1 %5495 }
0x2436   : > { %8385 = vmatpush3.xpose.msk.msra.mxu1 %vm1225_vm4, %v5496_v57  ;;  %8395 = vmatpush3.xpose.msk.msra.mxu0 %vm1225_vm4, %v5663_v11 }
0x2437   : > { %8404 = vmatprep.subr.mxu0 %v9028_v13  ;;  %8389 = vmatprep.subr.mxu1 %v9028_v13 }
0x2439   : > { %v5661_v12 = vpop.permute.xlu1 %5660  ;;  %8387 = vmatmul.mubr.msk.f32.vlgmr.msra.gmra.mrb[56].mxu1 %vm1225_vm4, %v5486_v25  ;;  %v5827_v0 = vpop.permute.xlu0 %5826 }
0x243a   : > { %8397 = vmatmul.mubr.msk.f32.vlgmr.msra.gmra.mrb[40].mxu0 %vm1225_vm4, %v5661_v12  ;;  %8391 = vmatprep.mubr.msk.f32.mxu1 %vm9027_vm1, %v9028_v13 }
0x243b   : > { %8406 = vmatprep.mubr.msk.f32.mxu0 %vm9027_vm1, %v9028_v13 }
0x243d   : > { %v5829_v14 = vpop.permute.xlu1 %5828  ;;  %v5993_v18 = vpop.permute.xlu0 %5992 }
0x243e   : > { %8405 = vmatpush3.xpose.msk.msra.mxu0 %vm1225_vm4, %v5829_v14 }
0x243f   : > { %8414 = vmatprep.subr.mxu0 %v9028_v13 }
0x2441   : > { %8407 = vmatmul.mubr.msk.f32.vlgmr.msra.gmra.mrb[42].mxu0 %vm1225_vm4, %v5827_v0  ;;  %v5995_v52 = vpop.permute.xlu1 %5994  ;;  %v7726_v0 = vld [vmem:[%s10357_s29 + $0x20] sm:$0xff] }
0x2442   : > { %8415 = vmatpush3.xpose.msk.msra.mxu0 %vm1225_vm4, %v5995_v52  ;;  %8416 = vmatprep.mubr.msk.f32.mxu0 %vm9027_vm1, %v9028_v13  ;;  %v7727_v52 = vld [vmem:[%s10357_s29 + $0x28] sm:$0xff] }
0x2443   : > { %8652 = vmatprep.subr.bf16.mxu0 %v9026_v10 }
0x2445   : > { %8417 = vmatmul.mubr.msk.f32.vlgmr.msra.gmra.mrb[44].mxu0 %vm1225_vm4, %v5993_v18  ;;  %v8653_v18 = vpack.c.bf16 %v7727_v52, %v7726_v0 }
0x2446   : > { %8432 = vmatprep.mubr.msk.f32.mxu0 %vm9027_vm1, %v9028_v13 }
0x2447   : > { %8654 = vmatpush3.bf16.msra.mxu0 %v8653_v18  ;;  %v6281_v18 = vrot.slane %v9922_v1, %v9436_v39 }
0x2448   : > { %8655 = vmatprep.subr.bf16.mxu0 %v9026_v10 }
0x250c   : > { %v5568_v19 = vpop.f32.mrb[56].mxu1 }
0x250d   : > { %v5572_v21 = vsel %vm1097_vm3, -1e+09, %v5568_v19  ;;  %v8388_v22 = vpop.f32.mrb[57].mxu1  ;;  %v5734_v23 = vpop.f32.mrb[40].mxu0 }
0x250e   : > { %v5573_v28 = vsel %vm1225_vm4, %v5572_v21, -inf  ;;  %v5738_v29 = vsel %vm1097_vm3, -1e+09, %v5734_v23  ;;  %v8398_v24 = vpop.f32.mrb[41].mxu0 }
0x250f   : > { %v5739_v59 = vsel %vm1225_vm4, %v5738_v29, -inf  ;;  %5574 = vmax.xlane.f32.xlu1 %v5573_v28  ;;  %v7728_v28 = vld [vmem:[%s10357_s29 + $0x30] sm:$0xff] }
0x2510   : > { %5740 = vmax.xlane.f32.xlu0 %v5739_v59 }
0x2514   : > { %v5900_v20 = vpop.f32.mrb[42].mxu0 }
0x2515   : > { %v5904_v31 = vsel %vm1097_vm3, -1e+09, %v5900_v20  ;;  %v8408_v30 = vpop.f32.mrb[43].mxu0 }
0x2516   : > { %v5905_v32 = vsel %vm1225_vm4, %v5904_v31, -inf }
0x2517   : > { %5906 = vmax.xlane.f32.xlu0 %v5905_v32 }
0x2518   : > { %v6066_v6 = vpop.f32.mrb[44].mxu0 }
0x2519   : > { %v6070_v33 = vsel %vm1097_vm3, -1e+09, %v6066_v6  ;;  %v8418_v35 = vpop.f32.mrb[45].mxu0  ;;  %v7752_v6 = vld [vmem:[%s10359_s23 + $0x20] sm:$0xff] }
0x251a   : > { %v6071_v36 = vsel %vm1225_vm4, %v6070_v33, -inf }
0x251b   : > { %6072 = vmax.xlane.f32.xlu1 %v6071_v36 }
0x252c   : > { %5750 = vrot.lane.b32.xlu1 %v9932_v8, %s10345_s5  ;;  %s10377_s5 = sld [smem:[#allocation29_spill]] }
0x259c   : > { %v5575_v40 = vpop.xlane.xlu1 %5574 }
0x259d   : > { %v5576_v41 = vsub.f32 %v5572_v21, %v5575_v40  ;;  %v5741_v43 = vpop.xlane.xlu0 %5740 }
0x259e   : > { %v5742_v44 = vsub.f32 %v5738_v29, %v5741_v43  ;;  %v7729_v29 = vld [vmem:[%s10357_s29 + $0x38] sm:$0xff] }
0x259f   : > { %v5577_v45 = vmul.f32 1.442695, %v5576_v41  ;;  %v8656_v24 = vpack.c.bf16 %v7729_v29, %v7728_v28 }
0x25a0   : > { %v5743_v47 = vmul.f32 1.442695, %v5742_v44  ;;  %v7754_v44 = vld [vmem:[%s10359_s23 + $0x30] sm:$0xff] }
0x25a1   : > { %8884 = vpow2.f32 %v5577_v45  ;;  %8657 = vmatpush3.bf16.msra.mxu0 %v8656_v24  ;;  %v7755_v45 = vld [vmem:[%s10359_s23 + $0x38] sm:$0xff] }
0x25a2   : > { %8886 = vpow2.f32 %v5743_v47  ;;  %8664 = vmatprep.subr.bf16.mxu0 %v9026_v10 }
0x25a4   : > { %v5907_v55 = vpop.xlane.xlu0 %5906 }
0x25a5   : > { %v5908_v56 = vsub.f32 %v5904_v31, %v5907_v55  ;;  %v7757_v55 = vld [vmem:[%s10364_s24 + $0x1] ss:$0 sm:$0xff] }
0x25a7   : > { %v5909_v63 = vmul.f32 1.442695, %v5908_v56 }
0x25a8   : > { %v6073_v48 = vpop.xlane.xlu1 %6072 }
0x25a9   : > { %v6074_v26 = vsub.f32 %v6070_v33, %v6073_v48  ;;  %v7753_v33 = vld [vmem:[%s10359_s23 + $0x28] sm:$0xff]  ;;  %v8668_v48 = vpack.c.bf16 %v7755_v45, %v7754_v44 }
0x25aa   : > { %v8665_v40 = vpack.c.bf16 %v7753_v33, %v7752_v6 }
0x25ab   : > { %v8885_v50 = vpop.eup %8884  ;;  %v6075_v37 = vmul.f32 1.442695, %v6074_v26  ;;  %v7743_v26 = vld [vmem:[%s10358_s30 + $0x1] ss:$0 sm:$0xff] }
0x25ac   : > { %v8887_v51 = vpop.eup %8886  ;;  %v5579_v27 = vsel %vm1225_vm4, %v8885_v50, 0.0  ;;  %v5751_v61 = vpop.permute.xlu1 %5750 }
0x25ad   : > { %8888 = vpow2.f32 %v6075_v37  ;;  %5580 = vadd.xlane.f32.xlu0 %v5579_v27  ;;  %v5745_v49 = vsel %vm1225_vm4, %v8887_v51, 0.0 }
0x25ae   : > { %5746 = vadd.xlane.f32.xlu1 %v5745_v49  ;;  %8890 = vpow2.f32 %v5909_v63 }
0x25b7   : > { %v8889_v53 = vpop.eup %8888 }
0x25b8   : > { %v6077_v54 = vsel %vm1225_vm4, %v8889_v53, 0.0  ;;  %v8891_v58 = vpop.eup %8890 }
0x25b9   : > { %6078 = vadd.xlane.f32.xlu1 %v6077_v54  ;;  %v5911_v60 = vsel %vm1225_vm4, %v8891_v58, 0.0 }
0x25c3   : > { %5584 = vrot.lane.b32.xlu0 %v9932_v8, %s10342_s18 }
0x25ca   : > { %5916 = vrot.lane.b32.xlu1 %v9932_v8, %s10343_s28 }
0x25e2   : > { %5912 = vadd.xlane.f32.xlu0 %v5911_v60 }
0x25f8   : > { %6082 = vrot.lane.b32.xlu0 %v9932_v8, %s10344_s2 }
0x263a   : > { %v5581_v5 = vpop.xlane.xlu0 %5580 }
0x263b   : > { %8892 = vrcp.f32 %v5581_v5  ;;  %v5747_v34 = vpop.xlane.xlu1 %5746  ;;  %v7745_v5 = vld [vmem:[%s10363_s7 + $0x20] sm:$0xff] }
0x263c   : > { %8894 = vrcp.f32 %v5747_v34  ;;  %v7746_v34 = vld [vmem:[%s10363_s7 + $0x28] sm:$0xff] }
0x263e   : > { %v5585_v2 = vpop.permute.xlu0 %5584 }
0x263f   : > { %8390 = vmatpush3.msra.mxu1 %v5585_v2  ;;  %v7747_v2 = vld [vmem:[%s10363_s7 + $0x30] sm:$0xff] }
0x2640   : > { %8399 = vmatprep.subr.mxu1 %v9028_v13 }
0x2645   : > { %v8893_v16 = vpop.eup %8892 }
0x2646   : > { %v5583_v17 = vmul.f32 %v8893_v16, %v8885_v50  ;;  %v6079_v4 = vpop.xlane.xlu1 %6078  ;;  %v8895_v3 = vpop.eup %8894  ;;  %v8659_v16 = vpack.c.bf16 %v7746_v34, %v7745_v5 }
0x2647   : > { %v5749_v7 = vmul.f32 %v8895_v3, %v8887_v51 }
0x2648   : > { %8392 = vmatmul.mubr.msk.f32.vlgmr.msra.gmra.mrb[58].mxu1 %vm1225_vm4, %v5583_v17  ;;  %v7748_v17 = vld [vmem:[%s10363_s7 + $0x38] sm:$0xff] }
0x2649   : > { %8400 = vmatpush3.msra.mxu1 %v5751_v61  ;;  %8401 = vmatprep.mubr.msk.f32.mxu1 %vm9027_vm1, %v9028_v13 }
0x264a   : > { %v5917_v8 = vpop.permute.xlu1 %5916  ;;  %8409 = vmatprep.subr.mxu1 %v9028_v13 }
0x264c   : > { %8402 = vmatmul.mubr.msk.f32.vlgmr.msra.gmra.mrb[60].mxu1 %vm1225_vm4, %v5749_v7 }
0x264d   : > { %8410 = vmatpush3.msra.mxu1 %v5917_v8  ;;  %8411 = vmatprep.mubr.msk.f32.mxu1 %vm9027_vm1, %v9028_v13 }
0x264e   : > { %8419 = vmatprep.subr.mxu1 %v9028_v13 }
0x266f   : > { %v5913_v9 = vpop.xlane.xlu0 %5912 }
0x2670   : > { %8896 = vrcp.f32 %v5913_v9 }
0x2671   : > { %8898 = vrcp.f32 %v6079_v4  ;;  %v8662_v4 = vpack.c.bf16 %v7748_v17, %v7747_v2 }
0x2673   : > { %v6083_v12 = vpop.permute.xlu0 %6082 }
0x267a   : > { %v8897_v25 = vpop.eup %8896 }
0x267b   : > { %v5915_v11 = vmul.f32 %v8897_v25, %v8891_v58  ;;  %v8899_v57 = vpop.eup %8898 }
0x267c   : > { %v6081_v14 = vmul.f32 %v8899_v57, %v8889_v53 }
0x267d   : > { %8412 = vmatmul.mubr.msk.f32.vlgmr.msra.gmra.mrb[62].mxu1 %vm1225_vm4, %v5915_v11 }
0x267e   : > { %8420 = vmatpush3.msra.mxu1 %v6083_v12  ;;  %8421 = vmatprep.mubr.msk.f32.mxu1 %vm9027_vm1, %v9028_v13 }
0x267f   : > { %8658 = vmatprep.subr.bf16.mxu1 %v9026_v10 }
0x2681   : > { %8422 = vmatmul.mubr.msk.f32.vlgmr.msra.gmra.mrb[64].mxu1 %vm1225_vm4, %v6081_v14  ;;  %v6276_v14 = vrot.slane %v9919_v62, %v9436_v39 }
0x2682   : > { %8443 = vmatprep.mubr.msk.f32.mxu1 %vm9027_vm1, %v9028_v13  ;;  %8660 = vmatpush3.bf16.msra.mxu1 %v8659_v16 }
0x2683   : > { %8661 = vmatprep.subr.bf16.mxu1 %v9026_v10 }
0x2686   : > { %8663 = vmatpush3.bf16.msra.mxu1 %v8662_v4 }
0x2687   : > { %8457 = vmatprep.subr.mxu1 %v9028_v13 }
0x271b   : > { %v5656_v19 = vpop.f32.mrb[58].mxu1 }
0x271c   : > { %v8393_v21 = vpop.f32.mrb[59].mxu1 }
0x271f   : > { %v5822_v22 = vpop.f32.mrb[60].mxu1 }
0x2720   : > { %6159 = vrot.lane.b32.xlu1 %v5822_v22, %s10347_s6  ;;  %v8403_v23 = vpop.f32.mrb[61].mxu1  ;;  %v7750_v22 = vld [vmem:[%s10366_s10 + $0x1] ss:$0 sm:$0xff] }
0x2750   : > { %v5988_v59 = vpop.f32.mrb[62].mxu1 }
0x2751   : > { %6163 = vrot.lane.b32.xlu0 %v5988_v59, %s10348_s13  ;;  %v8413_v20 = vpop.f32.mrb[63].mxu1 }
0x2754   : > { %v6154_v31 = vpop.f32.mrb[64].mxu1 }
0x2755   : > { %6167 = vrot.lane.b32.xlu1 %v6154_v31, %s10349_s21  ;;  %v8423_v30 = vpop.f32.mrb[65].mxu1 }
0x2792   : > { %v6160_v32 = vpop.permute.xlu1 %6159 }
0x2793   : > { %v6170_v36 = vsel %vm1225_vm4, %v5656_v19, %v6160_v32 }
0x27c3   : > { %v6164_v35 = vpop.permute.xlu0 %6163 }
0x27c4   : > { %v6171_v41 = vsel %vm1900_vm6, %v6170_v36, %v6164_v35 }
0x27c7   : > { %v6168_v43 = vpop.permute.xlu1 %6167 }
0x27c8   : > { %v6172_v47 = vsel %vm1902_vm7, %v6171_v41, %v6168_v43 }
0x27c9   : > { %8433 = vmatmul.mubr.msk.f32.vlgmr.msra.gmra.mrb[46].mxu0 %vm1100_vm0, %v6172_v47 }
0x27ca   : > { %8666 = vmatpush3.bf16.msra.mxu0 %v8665_v40  ;;  %8454 = vmatprep.mubr.msk.f32.mxu0 %vm9027_vm1, %v9028_v13 }
0x27cb   : > { %8667 = vmatprep.subr.bf16.mxu0 %v9026_v10 }
0x27ce   : > { %8669 = vmatpush3.bf16.msra.mxu0 %v8668_v48 }
0x27cf   : > { %8467 = vmatprep.subr.mxu0 %v9028_v13 }
0x27d1   : > { %8455 = vmatmul.mubr.msk.f32.vlgmr.msra.gmra.mrb[48].mxu0 %vm1100_vm0, %v9756_v42 }
0x27d2   : > { %8469 = vmatprep.mubr.msk.f32.mxu0 %vm9027_vm1, %v9028_v13 }
0x289c   : > { %v6248_v50 = vpop.f32.mrb[46].mxu0 }
0x289d   : > { %v6249_v37 = vadd.f32 %v7743_v26, %v6248_v50  ;;  %v8434_v51 = vpop.f32.mrb[47].mxu0 }
0x289f   : > { %v10033_v27 = vadd.f32 %v6249_v37, %v9906_v38 }
0x28a1   : > { %v6253_v49 = vsel %vm1100_vm0, %v10033_v27, 0.0 }
0x28a2   : > { %6254 = vadd.xlane.f32.xlu0 %v6253_v49 }
0x28a4   : > { %v6449_v53 = vpop.f32.mrb[48].mxu0 }
0x28a5   : > { %v8456_v54 = vpop.f32.mrb[49].mxu0  ;;  %v10038_v42 = vadd.f32 %v7757_v55, %v6449_v53 }
0x28b8   : > { %6626 = vrot.lane.b32.xlu0 %v10038_v42, %s10354_s14 }
0x28bc   : > { %6792 = vrot.lane.b32.xlu0 %v10038_v42, %s10340_s11 }
0x28c0   : > { %6958 = vrot.lane.b32.xlu0 %v10038_v42, %s10341_s26 }
0x292f   : > { %v6255_v38 = vpop.xlane.xlu0 %6254 }
0x2930   : > { %v6256_v56 = vmul.f32 0.03125, %v6255_v38 }
0x2932   : > { %v6257_v63 = vsub.f32 %v10033_v27, %v6256_v56 }
0x2933   : > { %v6627_v58 = vpop.permute.xlu0 %6626 }
0x2934   : > { %8468 = vmatpush3.xpose.msk.msra.mxu0 %vm1225_vm4, %v6627_v58  ;;  %v6258_v60 = vmul.f32 %v6257_v63, %v6257_v63 }
0x2935   : > { %8477 = vmatprep.subr.mxu0 %v9028_v13 }
0x2936   : > { %v6259_v61 = vsel %vm1100_vm0, %v6258_v60, 0.0 }
0x2937   : > { %6260 = vadd.xlane.f32.xlu1 %v6259_v61  ;;  %v6793_v39 = vpop.permute.xlu0 %6792 }
0x293b   : > { %v6959_v31 = vpop.permute.xlu0 %6958 }
0x29c4   : > { %v6261_v3 = vpop.xlane.xlu1 %6260 }
0x29c5   : > { %v6262_v7 = vmul.f32 0.032258064, %v6261_v3 }
0x29c7   : > { %8900 = vrsqrt.f32 %v6262_v7  ;;  %vm6265_vm3 = vcmp.eq.f32.partialorder %v6262_v7, inf  ;;  %v6268_v25 = vand.u32 2147483648, %v6262_v7  ;;  %vm6267_vm8 = vcmp.eq.f32.partialorder %v6262_v7, 0.0 }
0x29d1   : > { %v8901_v8 = vpop.eup %8900 }
0x29d2   : > { %v6264_v9 = vmul.f32 %v8901_v8, %v6262_v7 }
0x29d4   : > { %v6266_v11 = vsel %vm6265_vm3, %v6262_v7, %v6264_v9 }
0x29d5   : > { %v6269_v57 = vsel %vm6267_vm8, %v6268_v25, %v6266_v11 }
0x29d6   : > { %v6270_v12 = vadd.f32 1e-06, %v6269_v57 }
0x29d8   : > { %8902 = vrcp.f32 %v6270_v12 }
0x29e2   : > { %v8903_v0 = vpop.eup %8902 }
0x29e3   : > { %v6272_v52 = vmul.f32 %v8903_v0, %v6257_v63 }
0x29e5   : > { %v6277_v19 = vmul.f32 %v6276_v14, %v6272_v52 }
0x29e7   : > { %v6282_v21 = vadd.f32 %v6281_v18, %v6277_v19 }
0x29e9   : > { %8444 = vmatmul.mubr.msk.f32.vlgmr.msra.gmra.mrb[66].mxu1 %vm1100_vm0, %v6282_v21 }
0x29ea   : > { %8458 = vmatpush3.xpose.msk.msra.mxu1 %vm1225_vm4, %v10038_v42  ;;  %8459 = vmatprep.mubr.msk.f32.mxu1 %vm9027_vm1, %v9028_v13 }
0x29eb   : > { %8462 = vmatprep.subr.mxu1 %v9028_v13 }
0x2abc   : > { %v6365_v23 = vpop.f32.mrb[66].mxu1 }
0x2abd   : > { %v6366_v28 = vadd.f32 %v7750_v22, %v6365_v23  ;;  %v8445_v29 = vpop.f32.mrb[67].mxu1 }
0x2abf   : > { %v6369_v24 = vmul.f32 0.35355338, %v6366_v28 }
0x2ac1   : > { %6624 = vrot.lane.b32.xlu1 %v6369_v24, %s10354_s14  ;;  %8460 = vmatmul.mubr.msk.f32.vlgmr.msra.gmra.mrb[68].mxu1 %vm1225_vm4, %v6369_v24  ;;  %s10382_s14 = sld [smem:[#allocation37_spill]] }
0x2ac2   : > { %8464 = vmatprep.mubr.msk.f32.mxu1 %vm9027_vm1, %v9028_v13 }
0x2ac5   : > { %6790 = vrot.lane.b32.xlu1 %v6369_v24, %s10340_s11 }
0x2ac9   : > { %6956 = vrot.lane.b32.xlu1 %v6369_v24, %s10341_s26 }
0x2b33   : > { %v6625_v59 = vpop.permute.xlu1 %6624 }
0x2b34   : > { %8470 = vmatmul.mubr.msk.f32.vlgmr.msra.gmra.mrb[50].mxu0 %vm1225_vm4, %v6625_v59  ;;  %v7759_v59 = vld [vmem:[%s10368_s12 + $0x20] sm:$0xff] }
0x2b35   : > { %8478 = vmatpush3.xpose.msk.msra.mxu0 %vm1225_vm4, %v6793_v39  ;;  %8479 = vmatprep.mubr.msk.f32.mxu0 %vm9027_vm1, %v9028_v13 }
0x2b36   : > { %8487 = vmatprep.subr.mxu0 %v9028_v13 }
0x2b37   : > { %v6791_v20 = vpop.permute.xlu1 %6790 }
0x2b38   : > { %8480 = vmatmul.mubr.msk.f32.vlgmr.msra.gmra.mrb[52].mxu0 %vm1225_vm4, %v6791_v20  ;;  %v7760_v20 = vld [vmem:[%s10368_s12 + $0x28] sm:$0xff] }
0x2b39   : > { %8488 = vmatpush3.xpose.msk.msra.mxu0 %vm1225_vm4, %v6959_v31  ;;  %8489 = vmatprep.mubr.msk.f32.mxu0 %vm9027_vm1, %v9028_v13  ;;  %v8671_v31 = vpack.c.bf16 %v7760_v20, %v7759_v59  ;;  %v7792_v59 = vld [vmem:[%s10374_s4 + $0x1] ss:$0 sm:$0xff] }
0x2b3a   : > { %8670 = vmatprep.subr.bf16.mxu0 %v9026_v10 }
0x2b3b   : > { %v6957_v30 = vpop.permute.xlu1 %6956 }
0x2b3c   : > { %8490 = vmatmul.mubr.msk.f32.vlgmr.msra.gmra.mrb[54].mxu0 %vm1225_vm4, %v6957_v30  ;;  %v7761_v30 = vld [vmem:[%s10368_s12 + $0x30] sm:$0xff] }
0x2b3d   : > { %8505 = vmatprep.mubr.msk.f32.mxu0 %vm9027_vm1, %v9028_v13  ;;  %8672 = vmatpush3.bf16.msra.mxu0 %v8671_v31 }
0x2b3e   : > { %8673 = vmatprep.subr.bf16.mxu0 %v9026_v10 }
0x2b94   : > { %v6532_v32 = vpop.f32.mrb[68].mxu1 }
0x2b95   : > { %v6536_v6 = vsel %vm1096_vm5, -1e+09, %v6532_v32  ;;  %v8461_v33 = vpop.f32.mrb[69].mxu1  ;;  %v7762_v32 = vld [vmem:[%s10368_s12 + $0x38] sm:$0xff] }
0x2b96   : > { %v6537_v35 = vsel %vm1225_vm4, %v6536_v6, -inf }
0x2b97   : > { %6538 = vmax.xlane.f32.xlu0 %v6537_v35 }
0x2c07   : > { %v6698_v36 = vpop.f32.mrb[50].mxu0 }
0x2c08   : > { %v6702_v40 = vsel %vm1096_vm5, -1e+09, %v6698_v36  ;;  %v8471_v41 = vpop.f32.mrb[51].mxu0 }
0x2c09   : > { %v6703_v43 = vsel %vm1225_vm4, %v6702_v40, -inf }
0x2c0a   : > { %6704 = vmax.xlane.f32.xlu1 %v6703_v43 }
0x2c0b   : > { %v6864_v44 = vpop.f32.mrb[52].mxu0 }
0x2c0c   : > { %v6868_v45 = vsel %vm1096_vm5, -1e+09, %v6864_v44  ;;  %v8481_v47 = vpop.f32.mrb[53].mxu0 }
0x2c0d   : > { %v6869_v48 = vsel %vm1225_vm4, %v6868_v45, -inf }
0x2c0e   : > { %6870 = vmax.xlane.f32.xlu0 %v6869_v48 }
0x2c0f   : > { %v7030_v26 = vpop.f32.mrb[54].mxu0 }
0x2c10   : > { %v7034_v50 = vsel %vm1096_vm5, -1e+09, %v7030_v26  ;;  %v8491_v37 = vpop.f32.mrb[55].mxu0 }
0x2c11   : > { %v7035_v51 = vsel %vm1225_vm4, %v7034_v50, -inf  ;;  %v7776_v37 = vld [vmem:[%s10377_s5 + $0x1] ss:$0 sm:$0xff]  ;;  %s8932_s5 = sshll.u32 %s9043_s15, 4  ;;  %s8933_s5 = int_to_ptr.vmem [resolvable:$false] %s8932_s5 }
0x2c12   : > { %7036 = vmax.xlane.f32.xlu0 %v7035_v51 }
0x2c1b   : > { %6548 = vrot.lane.b32.xlu1 %v10038_v42, %s10339_s1 }
0x2c24   : > { %v6539_v49 = vpop.xlane.xlu0 %6538 }
0x2c25   : > { %v6540_v53 = vsub.f32 %v6536_v6, %v6539_v49  ;;  %v8674_v6 = vpack.c.bf16 %v7762_v32, %v7761_v30 }
0x2c27   : > { %v6541_v54 = vmul.f32 1.442695, %v6540_v53  ;;  %8675 = vmatpush3.bf16.msra.mxu0 %v8674_v6 }
0x2c28   : > { %8682 = vmatprep.subr.bf16.mxu0 %v9026_v10 }
0x2c29   : > { %8904 = vpow2.f32 %v6541_v54 }
0x2c33   : > { %v8905_v55 = vpop.eup %8904 }
0x2c34   : > { %v6543_v38 = vsel %vm1225_vm4, %v8905_v55, 0.0 }
0x2c3f   : > { %6544 = vadd.xlane.f32.xlu1 %v6543_v38 }
0x2c97   : > { %v6705_v56 = vpop.xlane.xlu1 %6704 }
0x2c98   : > { %v6706_v63 = vsub.f32 %v6702_v40, %v6705_v56 }
0x2c9a   : > { %v6707_v58 = vmul.f32 1.442695, %v6706_v63 }
0x2c9b   : > { %v6549_v46 = vpop.permute.xlu1 %6548  ;;  %v6871_v60 = vpop.xlane.xlu0 %6870 }
0x2c9c   : > { %8906 = vpow2.f32 %v6707_v58  ;;  %v6872_v61 = vsub.f32 %v6868_v45, %v6871_v60  ;;  %8463 = vmatpush3.msra.mxu1 %v6549_v46 }
0x2c9d   : > { %8472 = vmatprep.subr.mxu1 %v9028_v13 }
0x2c9e   : > { %v6873_v5 = vmul.f32 1.442695, %v6872_v61 }
0x2c9f   : > { %v7037_v34 = vpop.xlane.xlu0 %7036 }
0x2ca0   : > { %8908 = vpow2.f32 %v6873_v5  ;;  %v7038_v2 = vsub.f32 %v7034_v50, %v7037_v34 }
0x2ca2   : > { %v7039_v16 = vmul.f32 1.442695, %v7038_v2  ;;  %v7783_v2 = vld [vmem:[%s10372_s17 + $0x40] sm:$0xff] }
0x2ca4   : > { %8910 = vpow2.f32 %v7039_v16  ;;  %v7784_v16 = vld [vmem:[%s10372_s17 + $0x48] sm:$0xff] }
0x2ca6   : > { %v8907_v17 = vpop.eup %8906 }
0x2ca7   : > { %v6709_v4 = vsel %vm1225_vm4, %v8907_v17, 0.0 }
0x2ca8   : > { %6710 = vadd.xlane.f32.xlu0 %v6709_v4  ;;  %v8683_v4 = vpack.c.bf16 %v7784_v16, %v7783_v2 }
0x2caa   : > { %v8909_v3 = vpop.eup %8908 }
0x2cab   : > { %v6875_v7 = vsel %vm1225_vm4, %v8909_v3, 0.0 }
0x2cac   : > { %6876 = vadd.xlane.f32.xlu1 %v6875_v7 }
0x2cae   : > { %v8911_v8 = vpop.eup %8910 }
0x2caf   : > { %v7041_v9 = vsel %vm1225_vm4, %v8911_v8, 0.0 }
0x2cb0   : > { %7042 = vadd.xlane.f32.xlu0 %v7041_v9  ;;  %v7788_v9 = vld [vmem:[%s10372_s17 + $0x68] sm:$0xff] }
0x2cbd   : > { %6880 = vrot.lane.b32.xlu1 %v10038_v42, %s10353_s9  ;;  %s10378_s9 = sld [smem:[#allocation30_spill]] }
0x2cc1   : > { %7046 = vrot.lane.b32.xlu1 %v10038_v42, %s10355_s19  ;;  %s1068_s19 = sand.u32 1, %s8982_s16  }
0x2cc2   : > { %s7463_s1 = scalar_lea.sflag [#allocation3], %s1068_s19 }
0x2cc3   : > { %v7778_v46 = vld [vmem:[%s10378_s9 + $0x20] sm:$0xff]  ;;  %v7779_v60 = vld [vmem:[%s10378_s9 + $0x28] sm:$0xff]  ;;  %v7781_v5 = vld [vmem:[%s10378_s9 + $0x38] sm:$0xff] }
0x2cc4   : > { %v8677_v61 = vpack.c.bf16 %v7779_v60, %v7778_v46 }
0x2cc6   : > { %6714 = vrot.lane.b32.xlu0 %v10038_v42, %s10352_s8  ;;  %s10381_s8 = sld [smem:[#allocation41_spill]] }
0x2ccc   : > { %v6545_v25 = vpop.xlane.xlu1 %6544  ;;  %s7799_s26 = sshll.u32 %s10381_s8, 7 }
0x2ccd   : > { %8912 = vrcp.f32 %v6545_v25  ;;  %s10181_s11 = scalar_lea.hbm %s10382_s14, %s7799_s26 }
0x2cd7   : > { %v8913_v11 = vpop.eup %8912 }
0x2cd8   : > { %v6547_v57 = vmul.f32 %v8913_v11, %v8905_v55 }
0x2cda   : > { %8465 = vmatmul.mubr.msk.f32.vlgmr.msra.gmra.mrb[70].mxu1 %vm1225_vm4, %v6547_v57 }
0x2cdb   : > { %8474 = vmatprep.mubr.msk.f32.mxu1 %vm9027_vm1, %v9028_v13 }
0x2d35   : > { %v6711_v12 = vpop.xlane.xlu0 %6710 }
0x2d36   : > { %8914 = vrcp.f32 %v6711_v12 }
0x2d39   : > { %v6877_v14 = vpop.xlane.xlu1 %6876 }
0x2d3a   : > { %8916 = vrcp.f32 %v6877_v14 }
0x2d3d   : > { %v7043_v0 = vpop.xlane.xlu0 %7042  ;;  %v6881_v19 = vpop.permute.xlu1 %6880 }
0x2d3e   : > { %8918 = vrcp.f32 %v7043_v0 }
0x2d40   : > { %v8915_v52 = vpop.eup %8914 }
0x2d41   : > { %v6713_v18 = vmul.f32 %v8915_v52, %v8907_v17  ;;  %v6715_v21 = vpop.permute.xlu0 %6714  ;;  %v7047_v23 = vpop.permute.xlu1 %7046  ;;  %v7785_v17 = vld [vmem:[%s10372_s17 + $0x50] sm:$0xff] }
0x2d42   : > { %8473 = vmatpush3.msra.mxu1 %v6715_v21  ;;  %v7240_v21 = vrot.slane %v9919_v62, %v9888_v15  ;;  %v7794_v62 = vld [vmem:[%s10376_s0 + $0x1] ss:$0 sm:$0xff] }
0x2d43   : > { %8475 = vmatmul.mubr.msk.f32.vlgmr.msra.gmra.mrb[72].mxu1 %vm1225_vm4, %v6713_v18  ;;  %8482 = vmatprep.subr.mxu1 %v9028_v13 }
0x2d44   : > { %v8917_v42 = vpop.eup %8916  ;;  %8483 = vmatpush3.msra.mxu1 %v6881_v19  ;;  %8484 = vmatprep.mubr.msk.f32.mxu1 %vm9027_vm1, %v9028_v13 }
0x2d45   : > { %v6879_v22 = vmul.f32 %v8917_v42, %v8909_v3  ;;  %8492 = vmatprep.subr.mxu1 %v9028_v13  ;;  %v7786_v3 = vld [vmem:[%s10372_s17 + $0x58] sm:$0xff] }
0x2d46   : > { %v8686_v7 = vpack.c.bf16 %v7786_v3, %v7785_v17 }
0x2d47   : > { %8485 = vmatmul.mubr.msk.f32.vlgmr.msra.gmra.mrb[74].mxu1 %vm1225_vm4, %v6879_v22  ;;  %v7245_v22 = vrot.slane %v9922_v1, %v9888_v15 }
0x2d48   : > { %v8919_v28 = vpop.eup %8918  ;;  %8493 = vmatpush3.msra.mxu1 %v7047_v23  ;;  %8494 = vmatprep.mubr.msk.f32.mxu1 %vm9027_vm1, %v9028_v13 }
0x2d49   : > { %v7045_v29 = vmul.f32 %v8919_v28, %v8911_v8  ;;  %8676 = vmatprep.subr.bf16.mxu1 %v9026_v10  ;;  %v7787_v8 = vld [vmem:[%s10372_s17 + $0x60] sm:$0xff] }
0x2d4a   : > { %v8689_v25 = vpack.c.bf16 %v7788_v9, %v7787_v8 }
0x2d4b   : > { %8495 = vmatmul.mubr.msk.f32.vlgmr.msra.gmra.mrb[76].mxu1 %vm1225_vm4, %v7045_v29  ;;  %v7789_v29 = vld [vmem:[%s10372_s17 + $0x70] sm:$0xff] }
0x2d4c   : > { %8516 = vmatprep.mubr.msk.f32.mxu1 %vm9027_vm1, %v9028_v13  ;;  %8678 = vmatpush3.bf16.msra.mxu1 %v8677_v61 }
0x2d4d   : > { %8679 = vmatprep.subr.bf16.mxu1 %v9026_v10 }
0x2dad   : > { %v6620_v24 = vpop.f32.mrb[70].mxu1 }
0x2dae   : > { %v8466_v39 = vpop.f32.mrb[71].mxu1 }
0x2e16   : > { %v6786_v33 = vpop.f32.mrb[72].mxu1 }
0x2e17   : > { %7123 = vrot.lane.b32.xlu0 %v6786_v33, %s10347_s6  ;;  %v8476_v35 = vpop.f32.mrb[73].mxu1  ;;  %s7606_s6 = sshll.u32 %s1068_s19, 3 }
0x2e18   : > { %s1070_s2 = scalar_lea.vmem [#allocation2], %s7606_s6 }
0x2e19   : > { %s7476_s28 = sshll.u32 %s1070_s2, 4  ;;  %s10183_s28 = int_to_ptr.vmem [resolvable:$true] %s7476_s28 }
0x2e1a   : > { %v6952_v36 = vpop.f32.mrb[74].mxu1  ;;  %s8928_s22 = scalar_lea.vmem %s10183_s28, 128  ;;  %p8935_p0 = scmp.lt.s32.totalorder %s10183_s28, %s8933_s5 }
0x2e1b   : > { %7127 = vrot.lane.b32.xlu1 %v6952_v36, %s10348_s13  ;;  %v8486_v40 = vpop.f32.mrb[75].mxu1  ;;  %s10379_s13 = sld [smem:[#allocation35_spill]]  ;;  %p8929_p11 = scmp.ne.s32.totalorder %s10183_s28, %s8928_s22 }
0x2e1d   : > { %p8930_p12 = pnand %p8929_p11, %p9262_p5 }
0x2e1e   : > { %v7118_v41 = vpop.f32.mrb[76].mxu1 }
0x2e1f   : > { %7131 = vrot.lane.b32.xlu0 %v7118_v41, %s10349_s21  ;;  %v8496_v43 = vpop.f32.mrb[77].mxu1  ;;  %s10380_s21 = sld [smem:[#allocation36_spill]]  ;;  %p8931_p13 = pneg %p8930_p12 }
0x2e89   : > { %v7124_v44 = vpop.permute.xlu0 %7123 }
0x2e8a   : > { %v7134_v47 = vsel %vm1225_vm4, %v6620_v24, %v7124_v44  ;;  %v7790_v24 = vld [vmem:[%s10372_s17 + $0x78] sm:$0xff] }
0x2e8b   : > { %v8692_v39 = vpack.c.bf16 %v7790_v24, %v7789_v29 }
0x2e8d   : > { %v7128_v45 = vpop.permute.xlu1 %7127 }
0x2e8e   : > { %v7135_v48 = vsel %vm1900_vm6, %v7134_v47, %v7128_v45 }
0x2e91   : > { %v7132_v26 = vpop.permute.xlu0 %7131 }
0x2e92   : > { %v7136_v50 = vsel %vm1902_vm7, %v7135_v48, %v7132_v26 }
0x2e93   : > { %8506 = vmatmul.mubr.msk.f32.vlgmr.msra.gmra.mrb[56].mxu0 %vm1100_vm0, %v7136_v50 }
0x2e94   : > { %8535 = vmatprep.mubr.msk.f32.mxu0 %vm9027_vm1, %v9028_v13  ;;  %8684 = vmatpush3.bf16.msra.mxu0 %v8683_v4 }
0x2e95   : > { %8685 = vmatprep.subr.bf16.mxu0 %v9026_v10 }
0x2e98   : > { %8687 = vmatpush3.bf16.msra.mxu0 %v8686_v7 }
0x2e99   : > { %8688 = vmatprep.subr.bf16.mxu0 %v9026_v10 }
0x2e9c   : > { %8690 = vmatpush3.bf16.msra.mxu0 %v8689_v25 }
0x2e9d   : > { %8691 = vmatprep.subr.bf16.mxu0 %v9026_v10 }
0x2ea0   : > { %8693 = vmatpush3.bf16.msra.mxu0 %v8692_v39 }
0x2f66   : > { %v7212_v51 = vpop.f32.mrb[56].mxu0 }
0x2f67   : > { %v7213_v49 = vadd.f32 %v7776_v37, %v7212_v51  ;;  %v8507_v53 = vpop.f32.mrb[57].mxu0 }
0x2f69   : > { %v10143_v54 = vadd.f32 %v7213_v49, %v10033_v27  ;;  %v7780_v27 = vld [vmem:[%s10378_s9 + $0x30] sm:$0xff] }
0x2f6a   : > { %v8680_v34 = vpack.c.bf16 %v7781_v5, %v7780_v27 }
0x2f6b   : > { %v7217_v55 = vsel %vm1100_vm0, %v10143_v54, 0.0 }
0x2f6c   : > { %7218 = vadd.xlane.f32.xlu1 %v7217_v55  ;;  %8681 = vmatpush3.bf16.msra.mxu1 %v8680_v34 }
0x2ff9   : > { %v7219_v38 = vpop.xlane.xlu1 %7218 }
0x2ffa   : > { %v7220_v56 = vmul.f32 0.03125, %v7219_v38  ;;  %v7797_v38 = vld [vmem:[%s10380_s21] ss:$0 sm:$0xff] }
0x2ffc   : > { %v7221_v13 = vsub.f32 %v10143_v54, %v7220_v56 }
0x2ffe   : > { %v7222_v63 = vmul.f32 %v7221_v13, %v7221_v13 }
0x3000   : > { %v7223_v58 = vsel %vm1100_vm0, %v7222_v63, 0.0 }
0x3001   : > { %7224 = vadd.xlane.f32.xlu0 %v7223_v58 }
0x308e   : > { %v7225_v11 = vpop.xlane.xlu0 %7224 }
0x308f   : > { %v7226_v57 = vmul.f32 0.032258064, %v7225_v11 }
0x3091   : > { %8920 = vrsqrt.f32 %v7226_v57  ;;  %vm7229_vm1 = vcmp.eq.f32.partialorder %v7226_v57, inf  ;;  %v7232_v0 = vand.u32 2147483648, %v7226_v57  ;;  %vm7231_vm4 = vcmp.eq.f32.partialorder %v7226_v57, 0.0 }
0x309b   : > { %v8921_v12 = vpop.eup %8920 }
0x309c   : > { %v7228_v14 = vmul.f32 %v8921_v12, %v7226_v57 }
0x309e   : > { %v7230_v52 = vsel %vm7229_vm1, %v7226_v57, %v7228_v14 }
0x309f   : > { %v7233_v18 = vsel %vm7231_vm4, %v7232_v0, %v7230_v52 }
0x30a0   : > { %v7234_v19 = vadd.f32 1e-06, %v7233_v18 }
0x30a2   : > { %8922 = vrcp.f32 %v7234_v19 }
0x30ac   : > { %v8923_v42 = vpop.eup %8922 }
0x30ad   : > { %v7236_v10 = vmul.f32 %v8923_v42, %v7221_v13 }
0x30af   : > { %v7241_v23 = vmul.f32 %v7240_v21, %v7236_v10 }
0x30b1   : > { %v7246_v28 = vadd.f32 %v7245_v22, %v7241_v23 }
0x30b3   : > { %8517 = vmatmul.mubr.msk.f32.vlgmr.msra.gmra.mrb[78].mxu1 %vm1100_vm0, %v7246_v28 }
0x3186   : > { %v7340_v20 = vpop.f32.mrb[78].mxu1 }
0x3187   : > { %v7341_v31 = vadd.f32 %v7792_v59, %v7340_v20  ;;  %v8518_v30 = vpop.f32.mrb[79].mxu1 }
0x3189   : > { %v7344_v32 = vmax.f32 %v7341_v31, 0.0 }
0x318b   : > { %8536 = vmatmul.mubr.msk.f32.vlgmr.msra.gmra.mrb[58].mxu0 %vm2114_vm10, %v7344_v32 }
0x325e   : > { %v7420_v6 = vpop.f32.mrb[58].mxu0 }
0x325f   : > { %v7421_v33 = vadd.f32 %v7794_v62, %v7420_v6  ;;  %v8537_v35 = vpop.f32.mrb[59].mxu0 }
0x3261   : > { %v7424_v15 = vadd.f32 %v7421_v33, %v10143_v54  ;;  %v7796_v54 = vld [vmem:[%s10379_s13] ss:$0 sm:$0xff]  ;;  %s8934_s13 = scalar_lea.vmem %s8933_s5, 256 }
0x3262   : > { %p8936_p1 = scmp.lt.s32.totalorder %s8934_s13, %s8928_s22 }
0x3263   : > { %v7427_v1 = vsel %vm1100_vm0, %v7424_v15, 0.0 }
0x3264   : > { %7428 = vadd.xlane.f32.xlu0 %v7427_v1  ;;  %p8937_p2 = por %p8936_p1, %p8935_p0 }
0x3266   : > { %p8938_p3 = pnand %p8937_p2, %p8931_p13 }
0x32f1   : > { %v7429_v36 = vpop.xlane.xlu0 %7428 }
0x32f2   : > { %v7430_v40 = vmul.f32 0.03125, %v7429_v36 }
0x32f4   : > { %v7431_v41 = vsub.f32 %v7424_v15, %v7430_v40 }
0x32f6   : > { %v7432_v43 = vmul.f32 %v7431_v41, %v7431_v41 }
0x32f8   : > { %v7433_v44 = vsel %vm1100_vm0, %v7432_v43, 0.0 }
0x32f9   : > { %7434 = vadd.xlane.f32.xlu1 %v7433_v44 }
0x3386   : > { %v7435_v45 = vpop.xlane.xlu1 %7434 }
0x3387   : > { %v7436_v47 = vmul.f32 0.032258064, %v7435_v45 }
0x3389   : > { %8924 = vrsqrt.f32 %v7436_v47  ;;  %vm7439_vm5 = vcmp.eq.f32.partialorder %v7436_v47, inf  ;;  %v7442_v50 = vand.u32 2147483648, %v7436_v47  ;;  %vm7441_vm6 = vcmp.eq.f32.partialorder %v7436_v47, 0.0 }
0x3393   : > { %v8925_v48 = vpop.eup %8924 }
0x3394   : > { %v7438_v26 = vmul.f32 %v8925_v48, %v7436_v47 }
0x3396   : > { %v7440_v37 = vsel %vm7439_vm5, %v7436_v47, %v7438_v26 }
0x3397   : > { %v7443_v51 = vsel %vm7441_vm6, %v7442_v50, %v7440_v37 }
0x3398   : > { %v7444_v49 = vadd.f32 1e-06, %v7443_v51 }
0x339a   : > { %8926 = vrcp.f32 %v7444_v49 }
0x33a4   : > { %v8927_v53 = vpop.eup %8926 }
0x33a5   : > { %v7446_v55 = vmul.f32 %v8927_v53, %v7431_v41 }
0x33a7   : > { %v7453_v56 = vmul.f32 %v7796_v54, %v7446_v55 }
0x33a9   : > { %v7460_v13 = vadd.f32 %v7797_v38, %v7453_v56 }
0x33ab   : > { %7461 = vst.msk [vmem:[%s1070_s2] sm:$0xff] %vm1100_vm0, %v7460_v13 }
0x33ac   : > { %8941 = shalt.err (!%p8938_p3)
}
0x33ad   : > { %s8942_s21 = scalar_lea.hbm %s10181_s11, 128  ;;  %s8946_s8 = scalar_lea.hbm %s10382_s14, 256 }
0x33ae   : > { %p8943_p4 = scmp.ne.s32.totalorder %s10181_s11, %s8942_s21  ;;  %p8947_p9 = scmp.lt.u32.totalorder %s10181_s11, %s10382_s14 }
0x33af   : > { %p8948_p10 = scmp.lt.u32.totalorder %s8946_s8, %s8942_s21  ;;  %p8950_p12 = scmp.lt.u32.totalorder %s8942_s21, %s10181_s11 }
0x33b0   : > { %p8944_p7 = pnand %p8943_p4, %p9262_p5 }
0x33b1   : > { %p8949_p11 = por %p8948_p10, %p8947_p9 }
0x33b2   : > { %p8945_p8 = pneg %p8944_p7 }
0x33b3   : > { %p8951_p0 = por %p8950_p12, %p8949_p11 }
0x33b5   : > { %p8952_p13 = pnand %p8951_p0, %p8945_p8 }
0x33b7   : > { %8955 = shalt.err (!%p8952_p13)
}
0x33b8   : > { %8694 = dma.vmem_to_hbm [thread:$0]  (%p9262_p5), %s10183_s28, 128, %s10181_s11, %s7463_s1  }
0x33b9 PF: > { %s10384_s19 = sld [smem:[#allocation40_spill]]  ;;  %s10385_s6 = sld [smem:[#allocation38_spill]] }
0x33bf   : > { %p8700_p1 = scmp.ge.s32.totalorder %s10384_s19, 2  ;;  %s7488_s2 = sand.u32 1, %s10385_s6  }
0x33c0   : > { %s7489_s22 = scalar_lea.sflag [#allocation3], %s7488_s2 }
0x33c1   : > { %p8697_p2 = pnand %p8700_p1, %p9266_p6 }
0x33c3   : > { %8973 = dma.done.wait (!%p8697_p2), %s7489_s22, 128  }
0x33c4   : > { %8975 = vsyncadd (!%p8697_p2), %s7489_s22, 4294967168  ;;  %s10387_s22 = sld [smem:[#allocation42_spill]]  ;;  %s10388_s5 = sld [smem:[#allocation39_spill]] }
0x33c5   : > { %s10389_s18 = sld [smem:[#allocation43_spill]]  ;;  %s10390_s15 = smov %s8982_s16 }
0x33ca   : > { %p79_p3 = scmp.ge.s32.totalorder %s10387_s22, 4   ;;  %s10391_s16 = smov %s10388_s5 }
0x33cc   :  { %81 = sbr.rel (!%p79_p3) target bundleno = 78 (0x4e), region = 260 }
0x33d3   :  { %7494 = vsyncpa [#allocation3], 1 }
0x33d4   :  { %7496 = vsyncpa [#allocation3 + $0x1], 1 }

</bundles_post_ra>
